<compile_context>
chip_gen: v7x
topology: tpu7x:2x2x1
jax: 0.10.0
libtpu: 0.0.40
codegen_flags: <defaults>
</compile_context>

<pallas_src>
import functools
import math

import jax
import jax.numpy as jnp
from jax.experimental import pallas as pl
from jax.experimental.pallas import tpu as pltpu


@functools.lru_cache(maxsize=None)
def _vmem_limit_bytes():
    """Per-chip scoped-VMEM budget: ~3/4 of physical, capped at 96 MiB, 32 MiB fallback."""
    fallback = 32 * 1024 * 1024
    try:
        info = pltpu.get_tpu_info()
        cap = getattr(info, "vmem_capacity_bytes", None)
        if not cap:
            return fallback
        return int(min(cap * 3 // 4, 96 * 1024 * 1024))
    except Exception:
        return fallback


# ----------------------------------------------------------------------------
# Fused conv(same, stride 1) + bias + ReLU + 2x2 max-pool (stride 2) kernel
# ----------------------------------------------------------------------------
def _conv_relu_pool_kernel(xe_ref, xo_ref, w_ref, b_ref, o_ref, *, H, W2, kh, rt, bb):
    """One block of `bb` images per grid step.

    xe_ref / xo_ref: (bb, Hp*W2, K)   even / odd output-column streams (bf16); rows are
                     (padded_row, out_col_pair), kw taps folded into the lane (K) dim.
    w_ref:           (kh, K, Cp)      one (K, Cp) bf16 slab per row tap (VMEM resident).
    b_ref:           (1, Cp)          f32 bias (VMEM resident).
    o_ref:           (bb, (H//2)*W2, Cp) pooled bf16 output, rows ordered (h2, w2).
    """
    rows = rt * W2                 # conv-output rows per tile (per parity stream)
    n_tiles = H // rt
    hint8 = (W2 % 8 == 0)
    bias = b_ref[...]              # hoisted once (JAX does not CSE broadcasts)

    def make_tile_body(b):
        def tile_body(t):
            base = t * rows        # flattened row offset of this tile's first conv row

            def ld(ref, ky):
                s = base + ky * W2
                if hint8 and not isinstance(s, int):
                    s = pl.multiple_of(s, 8)
                return ref[b, pl.ds(s, rows), :]

            # kh-tap accumulation in registers (f32) — no scratch round trips.
            acc_e = jnp.dot(ld(xe_ref, 0), w_ref[0], preferred_element_type=jnp.float32)
            acc_o = jnp.dot(ld(xo_ref, 0), w_ref[0], preferred_element_type=jnp.float32)
            for ky in range(1, kh):
                acc_e += jnp.dot(ld(xe_ref, ky), w_ref[ky],
                                 preferred_element_type=jnp.float32)
                acc_o += jnp.dot(ld(xo_ref, ky), w_ref[ky],
                                 preferred_element_type=jnp.float32)

            # Fused epilogue: W-pool (parity max) + bias + ReLU, still in registers.
            # relu(max(a, b) + bias) == max(relu(a + bias), relu(b + bias)).
            m = jnp.maximum(jnp.maximum(acc_e, acc_o) + bias, 0.0)

            # H-pool: max over row pairs inside the tile; write pooled rows exactly once.
            obase = t * (rt // 2) * W2
            for j in range(rt // 2):
                pooled = jnp.maximum(m[2 * j * W2:(2 * j + 1) * W2, :],
                                     m[(2 * j + 1) * W2:(2 * j + 2) * W2, :])
                s = obase + j * W2
                if hint8 and not isinstance(s, int):
                    s = pl.multiple_of(s, 8)
                o_ref[b, pl.ds(s, W2), :] = pooled.astype(o_ref.dtype)

        return tile_body

    for b in range(bb):            # static, small (images blocked per grid step)
        body = make_tile_body(b)
        if n_tiles <= 8:
            for t in range(n_tiles):
                body(t)
        else:
            pl.loop(0, n_tiles)(body)   # no giant static unroll at large H


def _pick_rt(H, W2, cap_rows=256):
    """Largest even divisor of H with rt*W2 <= cap_rows (keeps accumulators in vregs)."""
    rt = 2
    for cand in range(2, H + 1, 2):
        if H % cand == 0 and cand * W2 <= cap_rows:
            rt = cand
    return rt


def _pick_bb(B, H):
    """Images per conv grid step: block small-spatial inputs, 1 image at large H."""
    if H >= 64:
        return 1
    for cand in (8, 4, 2):
        if cand <= B and B % cand == 0:
            return cand
    return 1


def conv_relu_pool(x_nhwc, w_oihw, bias):
    """y = maxpool2(relu(conv2d_same(x) + b)); x: (B,H,W,Cin) NHWC, w: (Cout,Cin,kh,kw)."""
    B, H, W, Cin = x_nhwc.shape
    Cout, _, kh, kw = w_oihw.shape
    ph, pw = kh // 2, kw // 2
    assert H % 2 == 0 and W % 2 == 0, "spatial dims must be even for 2x2 pooling"
    H2, W2 = H // 2, W // 2
    Hp = H + 2 * ph
    K = kw * Cin
    Cp = ((Cout + 127) // 128) * 128        # lane-dense output channels

    # XLA-side prep (fused by XLA): pad, build even/odd output-column streams directly
    # from the padded input (kw taps folded into channels), flatten (row, col) so kh row
    # taps become contiguous row windows inside the kernel.
    xp = jnp.pad(x_nhwc.astype(jnp.bfloat16), ((0, 0), (ph, ph), (pw, pw), (0, 0)))
    xe = jnp.concatenate([xp[:, :, kx:kx + W:2, :] for kx in range(kw)], axis=-1)
    xo = jnp.concatenate([xp[:, :, kx + 1:kx + W:2, :] for kx in range(kw)], axis=-1)
    xe = xe.reshape(B, Hp * W2, K)
    xo = xo.reshape(B, Hp * W2, K)
    # (Cout, Cin, kh, kw) -> (kh, kw, Cin, Cout) -> (kh, kw*Cin, Cp), bf16, Cout padded.
    wk = jnp.transpose(w_oihw.astype(jnp.bfloat16), (2, 3, 1, 0)).reshape(kh, K, Cout)
    wk = jnp.pad(wk, ((0, 0), (0, 0), (0, Cp - Cout)))
    b2 = jnp.pad(bias.astype(jnp.float32).reshape(1, Cout), ((0, 0), (0, Cp - Cout)))

    bb = _pick_bb(B, H)
    rt = _pick_rt(H, W2)

    out = pl.pallas_call(
        functools.partial(_conv_relu_pool_kernel, H=H, W2=W2, kh=kh, rt=rt, bb=bb),
        grid=(B // bb,),
        in_specs=[
            pl.BlockSpec((bb, Hp * W2, K), lambda g: (g, 0, 0)),
            pl.BlockSpec((bb, Hp * W2, K), lambda g: (g, 0, 0)),
            pl.BlockSpec((kh, K, Cp), lambda g: (0, 0, 0)),    # weights stay resident
            pl.BlockSpec((1, Cp), lambda g: (0, 0)),           # bias stays resident
        ],
        out_specs=pl.BlockSpec((bb, H2 * W2, Cp), lambda g: (g, 0, 0)),
        out_shape=jax.ShapeDtypeStruct((B, H2 * W2, Cp), jnp.bfloat16),
        compiler_params=pltpu.CompilerParams(
            dimension_semantics=("parallel",),
            vmem_limit_bytes=_vmem_limit_bytes()),
    )(xe, xo, wk, b2)
    # Drop the lane padding; the slice fuses into the next layer's prep / the flatten.
    return out.reshape(B, H2, W2, Cp)[:, :, :, :Cout]


# ----------------------------------------------------------------------------
# Dense (matmul + bias [+ ReLU]) kernels
# ----------------------------------------------------------------------------
def _dense_simple_kernel(x_ref, w_ref, b_ref, o_ref, *, apply_relu):
    # Single K tile: no accumulator scratch, no @pl.when branches.
    y = jnp.dot(x_ref[...], w_ref[...], preferred_element_type=jnp.float32) + b_ref[...]
    if apply_relu:
        y = jnp.maximum(y, 0.0)
    o_ref[...] = y.astype(o_ref.dtype)


def _dense_kernel(x_ref, w_ref, b_ref, o_ref, acc_ref, *, apply_relu):
    k = pl.program_id(2)

    @pl.when(k == 0)
    def _():
        acc_ref[...] = jnp.zeros_like(acc_ref)

    acc_ref[...] += jnp.dot(x_ref[...], w_ref[...], preferred_element_type=jnp.float32)

    @pl.when(k == pl.num_programs(2) - 1)
    def _():
        y = acc_ref[...] + b_ref[...]
        if apply_relu:
            y = jnp.maximum(y, 0.0)
        o_ref[...] = y.astype(o_ref.dtype)


def _pad_to(a, rows, cols):
    r, c = a.shape
    if r == rows and c == cols:
        return a
    return jnp.pad(a, ((0, rows - r), (0, cols - c)))


def dense(x, w, b, apply_relu, out_dtype, *, tm_max=256, tn_max=256, tk_max=None):
    """y = relu?(x @ w + b); x: (M, K), w: (K, N) pre-transposed, b: (N,). bf16 streams."""
    M, K = x.shape
    Kw, N = w.shape
    assert Kw == K
    x = x.astype(jnp.bfloat16)
    w = w.astype(jnp.bfloat16)
    b = b.astype(jnp.float32)

    vmem = _vmem_limit_bytes()
    if tk_max is None:
        tk_max = 4096 if vmem >= (64 * 1024 * 1024) else 2048

    tm = M if M <= tm_max else tm_max
    n_lane = ((N + 127) // 128) * 128          # lane-dense N (dense2: 10 -> 128)
    tn = n_lane if n_lane <= tn_max else tn_max
    tk = K if K <= tk_max else tk_max
    Mp = pl.cdiv(M, tm) * tm
    Np = pl.cdiv(n_lane, tn) * tn
    Kp = pl.cdiv(K, tk) * tk

    xp = _pad_to(x, Mp, Kp)
    wp = _pad_to(w, Kp, Np)
    bp = _pad_to(b.reshape(1, N), 1, Np)
    nk = Kp // tk

    if nk == 1:
        out = pl.pallas_call(
            functools.partial(_dense_simple_kernel, apply_relu=apply_relu),
            grid=(Mp // tm, Np // tn),
            in_specs=[
                pl.BlockSpec((tm, Kp), lambda i, j: (i, 0)),
                pl.BlockSpec((Kp, tn), lambda i, j: (0, j)),
                pl.BlockSpec((1, tn), lambda i, j: (0, j)),
            ],
            out_specs=pl.BlockSpec((tm, tn), lambda i, j: (i, j)),
            out_shape=jax.ShapeDtypeStruct((Mp, Np), out_dtype),
            compiler_params=pltpu.CompilerParams(
                dimension_semantics=("parallel", "parallel"),
                vmem_limit_bytes=vmem),
        )(xp, wp, bp)
    else:
        out = pl.pallas_call(
            functools.partial(_dense_kernel, apply_relu=apply_relu),
            grid=(Mp // tm, Np // tn, nk),                 # reduction axis last
            in_specs=[
                pl.BlockSpec((tm, tk), lambda i, j, k: (i, k)),
                pl.BlockSpec((tk, tn), lambda i, j, k: (k, j)),
                pl.BlockSpec((1, tn), lambda i, j, k: (0, j)),
            ],
            out_specs=pl.BlockSpec((tm, tn), lambda i, j, k: (i, j)),
            out_shape=jax.ShapeDtypeStruct((Mp, Np), out_dtype),
            scratch_shapes=[pltpu.VMEM((tm, tn), jnp.float32)],
            compiler_params=pltpu.CompilerParams(
                dimension_semantics=("parallel", "parallel", "arbitrary"),
                vmem_limit_bytes=vmem),
        )(xp, wp, bp)
    return out[:M, :N]


# ----------------------------------------------------------------------------
# Parameter init (xavier_uniform weights, zero bias) — deterministic, in-script
# ----------------------------------------------------------------------------
def xavier_uniform(key, shape, fan_in, fan_out):
    limit = math.sqrt(6.0 / (fan_in + fan_out))
    return jax.random.uniform(key, shape, jnp.float32, minval=-limit, maxval=limit)


def init_params(key, input_channels, output_channels, flat_features):
    ks = jax.random.split(key, 5)
    p = {}
    # conv weights: (Cout, Cin, kh, kw), stored bf16 (f32 accumulation in-kernel)
    p["w1"] = xavier_uniform(ks[0], (32, input_channels, 5, 5),
                             input_channels * 25, 32 * 25).astype(jnp.bfloat16)
    p["b1"] = jnp.zeros((32,), jnp.float32)
    p["w2"] = xavier_uniform(ks[1], (32, 32, 3, 3), 32 * 9, 32 * 9).astype(jnp.bfloat16)
    p["b2"] = jnp.zeros((32,), jnp.float32)
    p["w3"] = xavier_uniform(ks[2], (64, 32, 3, 3), 32 * 9, 64 * 9).astype(jnp.bfloat16)
    p["b3"] = jnp.zeros((64,), jnp.float32)
    # dense weights stored pre-transposed as (in, out), bf16 (halves the HBM weight stream)
    p["wd1"] = xavier_uniform(ks[3], (flat_features, 512),
                              flat_features, 512).astype(jnp.bfloat16)
    p["bd1"] = jnp.zeros((512,), jnp.float32)
    p["wd2"] = xavier_uniform(ks[4], (512, output_channels),
                              512, output_channels).astype(jnp.bfloat16)
    p["bd2"] = jnp.zeros((output_channels,), jnp.float32)
    return p


# ----------------------------------------------------------------------------
# Forward pass (matches CNN.forward)
# ----------------------------------------------------------------------------
@jax.jit
def cnn_forward(params, x_nchw):
    B = x_nchw.shape[0]
    x = jnp.transpose(x_nchw, (0, 2, 3, 1))                  # NCHW -> NHWC
    x = conv_relu_pool(x, params["w1"], params["b1"])
    x = conv_relu_pool(x, params["w2"], params["b2"])
    x = conv_relu_pool(x, params["w3"], params["b3"])
    # PyTorch flattens NCHW: transpose back before the flatten so dense1 sees (C, H, W).
    x = jnp.transpose(x, (0, 3, 1, 2)).reshape(B, -1)
    x = dense(x, params["wd1"], params["bd1"], apply_relu=True, out_dtype=jnp.bfloat16)
    x = dense(x, params["wd2"], params["bd2"], apply_relu=False, out_dtype=jnp.float32)
    return x


if __name__ == "__main__":
    # Small shapes consistent with the module: spatial divisible by 8 (three 2x2 pools).
    # (The original dense1 in_features=57600 implies a 240x240 input; scaled down to
    #  16x16 -> flat = 64 * 2 * 2 = 256.)
    batch, input_channels, output_channels, spatial = 2, 4, 10, 16
    flat_features = 64 * (spatial // 8) * (spatial // 8)

    key = jax.random.PRNGKey(0)
    pkey, xkey = jax.random.split(key)
    params = init_params(pkey, input_channels, output_channels, flat_features)
    x = jax.random.normal(xkey, (batch, input_channels, spatial, spatial), jnp.float32)

    out = cnn_forward(params, x)
    out = jax.block_until_ready(out)
    assert out.shape == (batch, output_channels), out.shape
    print("KERNEL_OK")
</pallas_src>

<mosaic_0001>
module attributes {stable_mosaic.version = 11 : i64} {
  func.func @_conv_relu_pool_kernel(%arg0: i32, %arg1: memref<2x160x20xbf16, #tpu.memory_space<vmem>>, %arg2: memref<2x160x20xbf16, #tpu.memory_space<vmem>>, %arg3: memref<5x20x128xbf16, #tpu.memory_space<vmem>>, %arg4: memref<1x128xf32, #tpu.memory_space<vmem>>, %arg5: memref<2x64x128xbf16, #tpu.memory_space<vmem>>) attributes {dimension_semantics = [#tpu.dimension_semantics<parallel>], iteration_bounds = array<i64: 1>, scalar_prefetch = 0 : i64, scratch_operands = 0 : i64, tpu.core_type = #tpu.core_type<tc>, window_params = [{transform_indices = @transform_0, window_bounds = array<i64: 2, 160, 20>}, {transform_indices = @transform_1, window_bounds = array<i64: 2, 160, 20>}, {pipeline_mode = #tpu.pipeline_mode<synchronous>, transform_indices = @transform_2, window_bounds = array<i64: 5, 20, 128>}, {pipeline_mode = #tpu.pipeline_mode<synchronous>, transform_indices = @transform_3, window_bounds = array<i64: 1, 128>}, {transform_indices = @transform_4, window_bounds = array<i64: 2, 64, 128>}]} {
    %c0 = arith.constant 0 : index
    %c0_0 = arith.constant 0 : index
    %0 = vector.load %arg4[%c0, %c0_0] : memref<1x128xf32, #tpu.memory_space<vmem>>, vector<1x128xf32>
    %c0_1 = arith.constant 0 : index
    %c0_2 = arith.constant 0 : index
    %c0_3 = arith.constant 0 : index
    %1 = vector.load %arg1[%c0_1, %c0_2, %c0_3] : memref<2x160x20xbf16, #tpu.memory_space<vmem>>, vector<1x128x20xbf16>
    %2 = vector.shape_cast %1 : vector<1x128x20xbf16> to vector<128x20xbf16>
    %c0_4 = arith.constant 0 : index
    %c0_5 = arith.constant 0 : index
    %c0_6 = arith.constant 0 : index
    %3 = vector.load %arg3[%c0_4, %c0_5, %c0_6] : memref<5x20x128xbf16, #tpu.memory_space<vmem>>, vector<1x20x128xbf16>
    %4 = vector.shape_cast %3 : vector<1x20x128xbf16> to vector<20x128xbf16>
    %cst = arith.constant dense<0.000000e+00> : vector<128x128xf32>
    %5 = tpu.matmul %2, %4, %cst {dimension_numbers = #tpu.dot_dimension_numbers<[1], [0], [0], [1], [0, 0, 1, 1], [], []>} : vector<128x20xbf16>, vector<20x128xbf16>, vector<128x128xf32> -> vector<128x128xf32>
    %c0_7 = arith.constant 0 : index
    %c0_8 = arith.constant 0 : index
    %c0_9 = arith.constant 0 : index
    %6 = vector.load %arg2[%c0_7, %c0_8, %c0_9] : memref<2x160x20xbf16, #tpu.memory_space<vmem>>, vector<1x128x20xbf16>
    %7 = vector.shape_cast %6 : vector<1x128x20xbf16> to vector<128x20xbf16>
    %c0_10 = arith.constant 0 : index
    %c0_11 = arith.constant 0 : index
    %c0_12 = arith.constant 0 : index
    %8 = vector.load %arg3[%c0_10, %c0_11, %c0_12] : memref<5x20x128xbf16, #tpu.memory_space<vmem>>, vector<1x20x128xbf16>
    %9 = vector.shape_cast %8 : vector<1x20x128xbf16> to vector<20x128xbf16>
    %cst_13 = arith.constant dense<0.000000e+00> : vector<128x128xf32>
    %10 = tpu.matmul %7, %9, %cst_13 {dimension_numbers = #tpu.dot_dimension_numbers<[1], [0], [0], [1], [0, 0, 1, 1], [], []>} : vector<128x20xbf16>, vector<20x128xbf16>, vector<128x128xf32> -> vector<128x128xf32>
    %c0_14 = arith.constant 0 : index
    %c8 = arith.constant 8 : index
    %c0_15 = arith.constant 0 : index
    %11 = vector.load %arg1[%c0_14, %c8, %c0_15] : memref<2x160x20xbf16, #tpu.memory_space<vmem>>, vector<1x128x20xbf16>
    %12 = vector.shape_cast %11 : vector<1x128x20xbf16> to vector<128x20xbf16>
    %c1 = arith.constant 1 : index
    %c0_16 = arith.constant 0 : index
    %c0_17 = arith.constant 0 : index
    %13 = vector.load %arg3[%c1, %c0_16, %c0_17] : memref<5x20x128xbf16, #tpu.memory_space<vmem>>, vector<1x20x128xbf16>
    %14 = vector.shape_cast %13 : vector<1x20x128xbf16> to vector<20x128xbf16>
    %cst_18 = arith.constant dense<0.000000e+00> : vector<128x128xf32>
    %15 = tpu.matmul %12, %14, %cst_18 {dimension_numbers = #tpu.dot_dimension_numbers<[1], [0], [0], [1], [0, 0, 1, 1], [], []>} : vector<128x20xbf16>, vector<20x128xbf16>, vector<128x128xf32> -> vector<128x128xf32>
    %16 = arith.addf %5, %15 : vector<128x128xf32>
    %c0_19 = arith.constant 0 : index
    %c8_20 = arith.constant 8 : index
    %c0_21 = arith.constant 0 : index
    %17 = vector.load %arg2[%c0_19, %c8_20, %c0_21] : memref<2x160x20xbf16, #tpu.memory_space<vmem>>, vector<1x128x20xbf16>
    %18 = vector.shape_cast %17 : vector<1x128x20xbf16> to vector<128x20xbf16>
    %c1_22 = arith.constant 1 : index
    %c0_23 = arith.constant 0 : index
    %c0_24 = arith.constant 0 : index
    %19 = vector.load %arg3[%c1_22, %c0_23, %c0_24] : memref<5x20x128xbf16, #tpu.memory_space<vmem>>, vector<1x20x128xbf16>
    %20 = vector.shape_cast %19 : vector<1x20x128xbf16> to vector<20x128xbf16>
    %cst_25 = arith.constant dense<0.000000e+00> : vector<128x128xf32>
    %21 = tpu.matmul %18, %20, %cst_25 {dimension_numbers = #tpu.dot_dimension_numbers<[1], [0], [0], [1], [0, 0, 1, 1], [], []>} : vector<128x20xbf16>, vector<20x128xbf16>, vector<128x128xf32> -> vector<128x128xf32>
    %22 = arith.addf %10, %21 : vector<128x128xf32>
    %c0_26 = arith.constant 0 : index
    %c16 = arith.constant 16 : index
    %c0_27 = arith.constant 0 : index
    %23 = vector.load %arg1[%c0_26, %c16, %c0_27] : memref<2x160x20xbf16, #tpu.memory_space<vmem>>, vector<1x128x20xbf16>
    %24 = vector.shape_cast %23 : vector<1x128x20xbf16> to vector<128x20xbf16>
    %c2 = arith.constant 2 : index
    %c0_28 = arith.constant 0 : index
    %c0_29 = arith.constant 0 : index
    %25 = vector.load %arg3[%c2, %c0_28, %c0_29] : memref<5x20x128xbf16, #tpu.memory_space<vmem>>, vector<1x20x128xbf16>
    %26 = vector.shape_cast %25 : vector<1x20x128xbf16> to vector<20x128xbf16>
    %cst_30 = arith.constant dense<0.000000e+00> : vector<128x128xf32>
    %27 = tpu.matmul %24, %26, %cst_30 {dimension_numbers = #tpu.dot_dimension_numbers<[1], [0], [0], [1], [0, 0, 1, 1], [], []>} : vector<128x20xbf16>, vector<20x128xbf16>, vector<128x128xf32> -> vector<128x128xf32>
    %28 = arith.addf %16, %27 : vector<128x128xf32>
    %c0_31 = arith.constant 0 : index
    %c16_32 = arith.constant 16 : index
    %c0_33 = arith.constant 0 : index
    %29 = vector.load %arg2[%c0_31, %c16_32, %c0_33] : memref<2x160x20xbf16, #tpu.memory_space<vmem>>, vector<1x128x20xbf16>
    %30 = vector.shape_cast %29 : vector<1x128x20xbf16> to vector<128x20xbf16>
    %c2_34 = arith.constant 2 : index
    %c0_35 = arith.constant 0 : index
    %c0_36 = arith.constant 0 : index
    %31 = vector.load %arg3[%c2_34, %c0_35, %c0_36] : memref<5x20x128xbf16, #tpu.memory_space<vmem>>, vector<1x20x128xbf16>
    %32 = vector.shape_cast %31 : vector<1x20x128xbf16> to vector<20x128xbf16>
    %cst_37 = arith.constant dense<0.000000e+00> : vector<128x128xf32>
    %33 = tpu.matmul %30, %32, %cst_37 {dimension_numbers = #tpu.dot_dimension_numbers<[1], [0], [0], [1], [0, 0, 1, 1], [], []>} : vector<128x20xbf16>, vector<20x128xbf16>, vector<128x128xf32> -> vector<128x128xf32>
    %34 = arith.addf %22, %33 : vector<128x128xf32>
    %c0_38 = arith.constant 0 : index
    %c24 = arith.constant 24 : index
    %c0_39 = arith.constant 0 : index
    %35 = vector.load %arg1[%c0_38, %c24, %c0_39] : memref<2x160x20xbf16, #tpu.memory_space<vmem>>, vector<1x128x20xbf16>
    %36 = vector.shape_cast %35 : vector<1x128x20xbf16> to vector<128x20xbf16>
    %c3 = arith.constant 3 : index
    %c0_40 = arith.constant 0 : index
    %c0_41 = arith.constant 0 : index
    %37 = vector.load %arg3[%c3, %c0_40, %c0_41] : memref<5x20x128xbf16, #tpu.memory_space<vmem>>, vector<1x20x128xbf16>
    %38 = vector.shape_cast %37 : vector<1x20x128xbf16> to vector<20x128xbf16>
    %cst_42 = arith.constant dense<0.000000e+00> : vector<128x128xf32>
    %39 = tpu.matmul %36, %38, %cst_42 {dimension_numbers = #tpu.dot_dimension_numbers<[1], [0], [0], [1], [0, 0, 1, 1], [], []>} : vector<128x20xbf16>, vector<20x128xbf16>, vector<128x128xf32> -> vector<128x128xf32>
    %40 = arith.addf %28, %39 : vector<128x128xf32>
    %c0_43 = arith.constant 0 : index
    %c24_44 = arith.constant 24 : index
    %c0_45 = arith.constant 0 : index
    %41 = vector.load %arg2[%c0_43, %c24_44, %c0_45] : memref<2x160x20xbf16, #tpu.memory_space<vmem>>, vector<1x128x20xbf16>
    %42 = vector.shape_cast %41 : vector<1x128x20xbf16> to vector<128x20xbf16>
    %c3_46 = arith.constant 3 : index
    %c0_47 = arith.constant 0 : index
    %c0_48 = arith.constant 0 : index
    %43 = vector.load %arg3[%c3_46, %c0_47, %c0_48] : memref<5x20x128xbf16, #tpu.memory_space<vmem>>, vector<1x20x128xbf16>
    %44 = vector.shape_cast %43 : vector<1x20x128xbf16> to vector<20x128xbf16>
    %cst_49 = arith.constant dense<0.000000e+00> : vector<128x128xf32>
    %45 = tpu.matmul %42, %44, %cst_49 {dimension_numbers = #tpu.dot_dimension_numbers<[1], [0], [0], [1], [0, 0, 1, 1], [], []>} : vector<128x20xbf16>, vector<20x128xbf16>, vector<128x128xf32> -> vector<128x128xf32>
    %46 = arith.addf %34, %45 : vector<128x128xf32>
    %c0_50 = arith.constant 0 : index
    %c32 = arith.constant 32 : index
    %c0_51 = arith.constant 0 : index
    %47 = vector.load %arg1[%c0_50, %c32, %c0_51] : memref<2x160x20xbf16, #tpu.memory_space<vmem>>, vector<1x128x20xbf16>
    %48 = vector.shape_cast %47 : vector<1x128x20xbf16> to vector<128x20xbf16>
    %c4 = arith.constant 4 : index
    %c0_52 = arith.constant 0 : index
    %c0_53 = arith.constant 0 : index
    %49 = vector.load %arg3[%c4, %c0_52, %c0_53] : memref<5x20x128xbf16, #tpu.memory_space<vmem>>, vector<1x20x128xbf16>
    %50 = vector.shape_cast %49 : vector<1x20x128xbf16> to vector<20x128xbf16>
    %cst_54 = arith.constant dense<0.000000e+00> : vector<128x128xf32>
    %51 = tpu.matmul %48, %50, %cst_54 {dimension_numbers = #tpu.dot_dimension_numbers<[1], [0], [0], [1], [0, 0, 1, 1], [], []>} : vector<128x20xbf16>, vector<20x128xbf16>, vector<128x128xf32> -> vector<128x128xf32>
    %52 = arith.addf %40, %51 : vector<128x128xf32>
    %c0_55 = arith.constant 0 : index
    %c32_56 = arith.constant 32 : index
    %c0_57 = arith.constant 0 : index
    %53 = vector.load %arg2[%c0_55, %c32_56, %c0_57] : memref<2x160x20xbf16, #tpu.memory_space<vmem>>, vector<1x128x20xbf16>
    %54 = vector.shape_cast %53 : vector<1x128x20xbf16> to vector<128x20xbf16>
    %c4_58 = arith.constant 4 : index
    %c0_59 = arith.constant 0 : index
    %c0_60 = arith.constant 0 : index
    %55 = vector.load %arg3[%c4_58, %c0_59, %c0_60] : memref<5x20x128xbf16, #tpu.memory_space<vmem>>, vector<1x20x128xbf16>
    %56 = vector.shape_cast %55 : vector<1x20x128xbf16> to vector<20x128xbf16>
    %cst_61 = arith.constant dense<0.000000e+00> : vector<128x128xf32>
    %57 = tpu.matmul %54, %56, %cst_61 {dimension_numbers = #tpu.dot_dimension_numbers<[1], [0], [0], [1], [0, 0, 1, 1], [], []>} : vector<128x20xbf16>, vector<20x128xbf16>, vector<128x128xf32> -> vector<128x128xf32>
    %58 = arith.addf %46, %57 : vector<128x128xf32>
    %59 = arith.maximumf %52, %58 : vector<128x128xf32>
    %60 = vector.broadcast %0 : vector<1x128xf32> to vector<128x128xf32>
    %61 = arith.addf %59, %60 : vector<128x128xf32>
    %cst_62 = arith.constant 0.000000e+00 : f32
    %62 = vector.broadcast %cst_62 : f32 to vector<128x128xf32>
    %63 = arith.maximumf %61, %62 : vector<128x128xf32>
    %64 = vector.extract_strided_slice %63 {offsets = [0, 0], sizes = [8, 128], strides = [1, 1]} : vector<128x128xf32> to vector<8x128xf32>
    %65 = vector.extract_strided_slice %63 {offsets = [8, 0], sizes = [8, 128], strides = [1, 1]} : vector<128x128xf32> to vector<8x128xf32>
    %66 = arith.maximumf %64, %65 : vector<8x128xf32>
    %67 = arith.truncf %66 : vector<8x128xf32> to vector<8x128xbf16>
    %c0_63 = arith.constant 0 : index
    %c0_64 = arith.constant 0 : index
    %c0_65 = arith.constant 0 : index
    %68 = vector.load %arg5[%c0_63, %c0_64, %c0_65] : memref<2x64x128xbf16, #tpu.memory_space<vmem>>, vector<1x8x128xbf16>
    %69 = vector.shape_cast %68 : vector<1x8x128xbf16> to vector<8x128xbf16>
    %70 = vector.shape_cast %67 : vector<8x128xbf16> to vector<1x8x128xbf16>
    tpu.vector_store %arg5[%c0_63, %c0_64, %c0_65], %70 {strides = array<i32>} : memref<2x64x128xbf16, #tpu.memory_space<vmem>>, vector<1x8x128xbf16>,
    %71 = vector.extract_strided_slice %63 {offsets = [16, 0], sizes = [8, 128], strides = [1, 1]} : vector<128x128xf32> to vector<8x128xf32>
    %72 = vector.extract_strided_slice %63 {offsets = [24, 0], sizes = [8, 128], strides = [1, 1]} : vector<128x128xf32> to vector<8x128xf32>
    %73 = arith.maximumf %71, %72 : vector<8x128xf32>
    %74 = arith.truncf %73 : vector<8x128xf32> to vector<8x128xbf16>
    %c0_66 = arith.constant 0 : index
    %c8_67 = arith.constant 8 : index
    %c0_68 = arith.constant 0 : index
    %75 = vector.load %arg5[%c0_66, %c8_67, %c0_68] : memref<2x64x128xbf16, #tpu.memory_space<vmem>>, vector<1x8x128xbf16>
    %76 = vector.shape_cast %75 : vector<1x8x128xbf16> to vector<8x128xbf16>
    %77 = vector.shape_cast %74 : vector<8x128xbf16> to vector<1x8x128xbf16>
    tpu.vector_store %arg5[%c0_66, %c8_67, %c0_68], %77 {strides = array<i32>} : memref<2x64x128xbf16, #tpu.memory_space<vmem>>, vector<1x8x128xbf16>,
    %78 = vector.extract_strided_slice %63 {offsets = [32, 0], sizes = [8, 128], strides = [1, 1]} : vector<128x128xf32> to vector<8x128xf32>
    %79 = vector.extract_strided_slice %63 {offsets = [40, 0], sizes = [8, 128], strides = [1, 1]} : vector<128x128xf32> to vector<8x128xf32>
    %80 = arith.maximumf %78, %79 : vector<8x128xf32>
    %81 = arith.truncf %80 : vector<8x128xf32> to vector<8x128xbf16>
    %c0_69 = arith.constant 0 : index
    %c16_70 = arith.constant 16 : index
    %c0_71 = arith.constant 0 : index
    %82 = vector.load %arg5[%c0_69, %c16_70, %c0_71] : memref<2x64x128xbf16, #tpu.memory_space<vmem>>, vector<1x8x128xbf16>
    %83 = vector.shape_cast %82 : vector<1x8x128xbf16> to vector<8x128xbf16>
    %84 = vector.shape_cast %81 : vector<8x128xbf16> to vector<1x8x128xbf16>
    tpu.vector_store %arg5[%c0_69, %c16_70, %c0_71], %84 {strides = array<i32>} : memref<2x64x128xbf16, #tpu.memory_space<vmem>>, vector<1x8x128xbf16>,
    %85 = vector.extract_strided_slice %63 {offsets = [48, 0], sizes = [8, 128], strides = [1, 1]} : vector<128x128xf32> to vector<8x128xf32>
    %86 = vector.extract_strided_slice %63 {offsets = [56, 0], sizes = [8, 128], strides = [1, 1]} : vector<128x128xf32> to vector<8x128xf32>
    %87 = arith.maximumf %85, %86 : vector<8x128xf32>
    %88 = arith.truncf %87 : vector<8x128xf32> to vector<8x128xbf16>
    %c0_72 = arith.constant 0 : index
    %c24_73 = arith.constant 24 : index
    %c0_74 = arith.constant 0 : index
    %89 = vector.load %arg5[%c0_72, %c24_73, %c0_74] : memref<2x64x128xbf16, #tpu.memory_space<vmem>>, vector<1x8x128xbf16>
    %90 = vector.shape_cast %89 : vector<1x8x128xbf16> to vector<8x128xbf16>
    %91 = vector.shape_cast %88 : vector<8x128xbf16> to vector<1x8x128xbf16>
    tpu.vector_store %arg5[%c0_72, %c24_73, %c0_74], %91 {strides = array<i32>} : memref<2x64x128xbf16, #tpu.memory_space<vmem>>, vector<1x8x128xbf16>,
    %92 = vector.extract_strided_slice %63 {offsets = [64, 0], sizes = [8, 128], strides = [1, 1]} : vector<128x128xf32> to vector<8x128xf32>
    %93 = vector.extract_strided_slice %63 {offsets = [72, 0], sizes = [8, 128], strides = [1, 1]} : vector<128x128xf32> to vector<8x128xf32>
    %94 = arith.maximumf %92, %93 : vector<8x128xf32>
    %95 = arith.truncf %94 : vector<8x128xf32> to vector<8x128xbf16>
    %c0_75 = arith.constant 0 : index
    %c32_76 = arith.constant 32 : index
    %c0_77 = arith.constant 0 : index
    %96 = vector.load %arg5[%c0_75, %c32_76, %c0_77] : memref<2x64x128xbf16, #tpu.memory_space<vmem>>, vector<1x8x128xbf16>
    %97 = vector.shape_cast %96 : vector<1x8x128xbf16> to vector<8x128xbf16>
    %98 = vector.shape_cast %95 : vector<8x128xbf16> to vector<1x8x128xbf16>
    tpu.vector_store %arg5[%c0_75, %c32_76, %c0_77], %98 {strides = array<i32>} : memref<2x64x128xbf16, #tpu.memory_space<vmem>>, vector<1x8x128xbf16>,
    %99 = vector.extract_strided_slice %63 {offsets = [80, 0], sizes = [8, 128], strides = [1, 1]} : vector<128x128xf32> to vector<8x128xf32>
    %100 = vector.extract_strided_slice %63 {offsets = [88, 0], sizes = [8, 128], strides = [1, 1]} : vector<128x128xf32> to vector<8x128xf32>
    %101 = arith.maximumf %99, %100 : vector<8x128xf32>
    %102 = arith.truncf %101 : vector<8x128xf32> to vector<8x128xbf16>
    %c0_78 = arith.constant 0 : index
    %c40 = arith.constant 40 : index
    %c0_79 = arith.constant 0 : index
    %103 = vector.load %arg5[%c0_78, %c40, %c0_79] : memref<2x64x128xbf16, #tpu.memory_space<vmem>>, vector<1x8x128xbf16>
    %104 = vector.shape_cast %103 : vector<1x8x128xbf16> to vector<8x128xbf16>
    %105 = vector.shape_cast %102 : vector<8x128xbf16> to vector<1x8x128xbf16>
    tpu.vector_store %arg5[%c0_78, %c40, %c0_79], %105 {strides = array<i32>} : memref<2x64x128xbf16, #tpu.memory_space<vmem>>, vector<1x8x128xbf16>,
    %106 = vector.extract_strided_slice %63 {offsets = [96, 0], sizes = [8, 128], strides = [1, 1]} : vector<128x128xf32> to vector<8x128xf32>
    %107 = vector.extract_strided_slice %63 {offsets = [104, 0], sizes = [8, 128], strides = [1, 1]} : vector<128x128xf32> to vector<8x128xf32>
    %108 = arith.maximumf %106, %107 : vector<8x128xf32>
    %109 = arith.truncf %108 : vector<8x128xf32> to vector<8x128xbf16>
    %c0_80 = arith.constant 0 : index
    %c48 = arith.constant 48 : index
    %c0_81 = arith.constant 0 : index
    %110 = vector.load %arg5[%c0_80, %c48, %c0_81] : memref<2x64x128xbf16, #tpu.memory_space<vmem>>, vector<1x8x128xbf16>
    %111 = vector.shape_cast %110 : vector<1x8x128xbf16> to vector<8x128xbf16>
    %112 = vector.shape_cast %109 : vector<8x128xbf16> to vector<1x8x128xbf16>
    tpu.vector_store %arg5[%c0_80, %c48, %c0_81], %112 {strides = array<i32>} : memref<2x64x128xbf16, #tpu.memory_space<vmem>>, vector<1x8x128xbf16>,
    %113 = vector.extract_strided_slice %63 {offsets = [112, 0], sizes = [8, 128], strides = [1, 1]} : vector<128x128xf32> to vector<8x128xf32>
    %114 = vector.extract_strided_slice %63 {offsets = [120, 0], sizes = [8, 128], strides = [1, 1]} : vector<128x128xf32> to vector<8x128xf32>
    %115 = arith.maximumf %113, %114 : vector<8x128xf32>
    %116 = arith.truncf %115 : vector<8x128xf32> to vector<8x128xbf16>
    %c0_82 = arith.constant 0 : index
    %c56 = arith.constant 56 : index
    %c0_83 = arith.constant 0 : index
    %117 = vector.load %arg5[%c0_82, %c56, %c0_83] : memref<2x64x128xbf16, #tpu.memory_space<vmem>>, vector<1x8x128xbf16>
    %118 = vector.shape_cast %117 : vector<1x8x128xbf16> to vector<8x128xbf16>
    %119 = vector.shape_cast %116 : vector<8x128xbf16> to vector<1x8x128xbf16>
    tpu.vector_store %arg5[%c0_82, %c56, %c0_83], %119 {strides = array<i32>} : memref<2x64x128xbf16, #tpu.memory_space<vmem>>, vector<1x8x128xbf16>,
    %c1_84 = arith.constant 1 : index
    %c0_85 = arith.constant 0 : index
    %c0_86 = arith.constant 0 : index
    %120 = vector.load %arg1[%c1_84, %c0_85, %c0_86] : memref<2x160x20xbf16, #tpu.memory_space<vmem>>, vector<1x128x20xbf16>
    %121 = vector.shape_cast %120 : vector<1x128x20xbf16> to vector<128x20xbf16>
    %c0_87 = arith.constant 0 : index
    %c0_88 = arith.constant 0 : index
    %c0_89 = arith.constant 0 : index
    %122 = vector.load %arg3[%c0_87, %c0_88, %c0_89] : memref<5x20x128xbf16, #tpu.memory_space<vmem>>, vector<1x20x128xbf16>
    %123 = vector.shape_cast %122 : vector<1x20x128xbf16> to vector<20x128xbf16>
    %cst_90 = arith.constant dense<0.000000e+00> : vector<128x128xf32>
    %124 = tpu.matmul %121, %123, %cst_90 {dimension_numbers = #tpu.dot_dimension_numbers<[1], [0], [0], [1], [0, 0, 1, 1], [], []>} : vector<128x20xbf16>, vector<20x128xbf16>, vector<128x128xf32> -> vector<128x128xf32>
    %c1_91 = arith.constant 1 : index
    %c0_92 = arith.constant 0 : index
    %c0_93 = arith.constant 0 : index
    %125 = vector.load %arg2[%c1_91, %c0_92, %c0_93] : memref<2x160x20xbf16, #tpu.memory_space<vmem>>, vector<1x128x20xbf16>
    %126 = vector.shape_cast %125 : vector<1x128x20xbf16> to vector<128x20xbf16>
    %c0_94 = arith.constant 0 : index
    %c0_95 = arith.constant 0 : index
    %c0_96 = arith.constant 0 : index
    %127 = vector.load %arg3[%c0_94, %c0_95, %c0_96] : memref<5x20x128xbf16, #tpu.memory_space<vmem>>, vector<1x20x128xbf16>
    %128 = vector.shape_cast %127 : vector<1x20x128xbf16> to vector<20x128xbf16>
    %cst_97 = arith.constant dense<0.000000e+00> : vector<128x128xf32>
    %129 = tpu.matmul %126, %128, %cst_97 {dimension_numbers = #tpu.dot_dimension_numbers<[1], [0], [0], [1], [0, 0, 1, 1], [], []>} : vector<128x20xbf16>, vector<20x128xbf16>, vector<128x128xf32> -> vector<128x128xf32>
    %c1_98 = arith.constant 1 : index
    %c8_99 = arith.constant 8 : index
    %c0_100 = arith.constant 0 : index
    %130 = vector.load %arg1[%c1_98, %c8_99, %c0_100] : memref<2x160x20xbf16, #tpu.memory_space<vmem>>, vector<1x128x20xbf16>
    %131 = vector.shape_cast %130 : vector<1x128x20xbf16> to vector<128x20xbf16>
    %c1_101 = arith.constant 1 : index
    %c0_102 = arith.constant 0 : index
    %c0_103 = arith.constant 0 : index
    %132 = vector.load %arg3[%c1_101, %c0_102, %c0_103] : memref<5x20x128xbf16, #tpu.memory_space<vmem>>, vector<1x20x128xbf16>
    %133 = vector.shape_cast %132 : vector<1x20x128xbf16> to vector<20x128xbf16>
    %cst_104 = arith.constant dense<0.000000e+00> : vector<128x128xf32>
    %134 = tpu.matmul %131, %133, %cst_104 {dimension_numbers = #tpu.dot_dimension_numbers<[1], [0], [0], [1], [0, 0, 1, 1], [], []>} : vector<128x20xbf16>, vector<20x128xbf16>, vector<128x128xf32> -> vector<128x128xf32>
    %135 = arith.addf %124, %134 : vector<128x128xf32>
    %c1_105 = arith.constant 1 : index
    %c8_106 = arith.constant 8 : index
    %c0_107 = arith.constant 0 : index
    %136 = vector.load %arg2[%c1_105, %c8_106, %c0_107] : memref<2x160x20xbf16, #tpu.memory_space<vmem>>, vector<1x128x20xbf16>
    %137 = vector.shape_cast %136 : vector<1x128x20xbf16> to vector<128x20xbf16>
    %c1_108 = arith.constant 1 : index
    %c0_109 = arith.constant 0 : index
    %c0_110 = arith.constant 0 : index
    %138 = vector.load %arg3[%c1_108, %c0_109, %c0_110] : memref<5x20x128xbf16, #tpu.memory_space<vmem>>, vector<1x20x128xbf16>
    %139 = vector.shape_cast %138 : vector<1x20x128xbf16> to vector<20x128xbf16>
    %cst_111 = arith.constant dense<0.000000e+00> : vector<128x128xf32>
    %140 = tpu.matmul %137, %139, %cst_111 {dimension_numbers = #tpu.dot_dimension_numbers<[1], [0], [0], [1], [0, 0, 1, 1], [], []>} : vector<128x20xbf16>, vector<20x128xbf16>, vector<128x128xf32> -> vector<128x128xf32>
    %141 = arith.addf %129, %140 : vector<128x128xf32>
    %c1_112 = arith.constant 1 : index
    %c16_113 = arith.constant 16 : index
    %c0_114 = arith.constant 0 : index
    %142 = vector.load %arg1[%c1_112, %c16_113, %c0_114] : memref<2x160x20xbf16, #tpu.memory_space<vmem>>, vector<1x128x20xbf16>
    %143 = vector.shape_cast %142 : vector<1x128x20xbf16> to vector<128x20xbf16>
    %c2_115 = arith.constant 2 : index
    %c0_116 = arith.constant 0 : index
    %c0_117 = arith.constant 0 : index
    %144 = vector.load %arg3[%c2_115, %c0_116, %c0_117] : memref<5x20x128xbf16, #tpu.memory_space<vmem>>, vector<1x20x128xbf16>
    %145 = vector.shape_cast %144 : vector<1x20x128xbf16> to vector<20x128xbf16>
    %cst_118 = arith.constant dense<0.000000e+00> : vector<128x128xf32>
    %146 = tpu.matmul %143, %145, %cst_118 {dimension_numbers = #tpu.dot_dimension_numbers<[1], [0], [0], [1], [0, 0, 1, 1], [], []>} : vector<128x20xbf16>, vector<20x128xbf16>, vector<128x128xf32> -> vector<128x128xf32>
    %147 = arith.addf %135, %146 : vector<128x128xf32>
    %c1_119 = arith.constant 1 : index
    %c16_120 = arith.constant 16 : index
    %c0_121 = arith.constant 0 : index
    %148 = vector.load %arg2[%c1_119, %c16_120, %c0_121] : memref<2x160x20xbf16, #tpu.memory_space<vmem>>, vector<1x128x20xbf16>
    %149 = vector.shape_cast %148 : vector<1x128x20xbf16> to vector<128x20xbf16>
    %c2_122 = arith.constant 2 : index
    %c0_123 = arith.constant 0 : index
    %c0_124 = arith.constant 0 : index
    %150 = vector.load %arg3[%c2_122, %c0_123, %c0_124] : memref<5x20x128xbf16, #tpu.memory_space<vmem>>, vector<1x20x128xbf16>
    %151 = vector.shape_cast %150 : vector<1x20x128xbf16> to vector<20x128xbf16>
    %cst_125 = arith.constant dense<0.000000e+00> : vector<128x128xf32>
    %152 = tpu.matmul %149, %151, %cst_125 {dimension_numbers = #tpu.dot_dimension_numbers<[1], [0], [0], [1], [0, 0, 1, 1], [], []>} : vector<128x20xbf16>, vector<20x128xbf16>, vector<128x128xf32> -> vector<128x128xf32>
    %153 = arith.addf %141, %152 : vector<128x128xf32>
    %c1_126 = arith.constant 1 : index
    %c24_127 = arith.constant 24 : index
    %c0_128 = arith.constant 0 : index
    %154 = vector.load %arg1[%c1_126, %c24_127, %c0_128] : memref<2x160x20xbf16, #tpu.memory_space<vmem>>, vector<1x128x20xbf16>
    %155 = vector.shape_cast %154 : vector<1x128x20xbf16> to vector<128x20xbf16>
    %c3_129 = arith.constant 3 : index
    %c0_130 = arith.constant 0 : index
    %c0_131 = arith.constant 0 : index
    %156 = vector.load %arg3[%c3_129, %c0_130, %c0_131] : memref<5x20x128xbf16, #tpu.memory_space<vmem>>, vector<1x20x128xbf16>
    %157 = vector.shape_cast %156 : vector<1x20x128xbf16> to vector<20x128xbf16>
    %cst_132 = arith.constant dense<0.000000e+00> : vector<128x128xf32>
    %158 = tpu.matmul %155, %157, %cst_132 {dimension_numbers = #tpu.dot_dimension_numbers<[1], [0], [0], [1], [0, 0, 1, 1], [], []>} : vector<128x20xbf16>, vector<20x128xbf16>, vector<128x128xf32> -> vector<128x128xf32>
    %159 = arith.addf %147, %158 : vector<128x128xf32>
    %c1_133 = arith.constant 1 : index
    %c24_134 = arith.constant 24 : index
    %c0_135 = arith.constant 0 : index
    %160 = vector.load %arg2[%c1_133, %c24_134, %c0_135] : memref<2x160x20xbf16, #tpu.memory_space<vmem>>, vector<1x128x20xbf16>
    %161 = vector.shape_cast %160 : vector<1x128x20xbf16> to vector<128x20xbf16>
    %c3_136 = arith.constant 3 : index
    %c0_137 = arith.constant 0 : index
    %c0_138 = arith.constant 0 : index
    %162 = vector.load %arg3[%c3_136, %c0_137, %c0_138] : memref<5x20x128xbf16, #tpu.memory_space<vmem>>, vector<1x20x128xbf16>
    %163 = vector.shape_cast %162 : vector<1x20x128xbf16> to vector<20x128xbf16>
    %cst_139 = arith.constant dense<0.000000e+00> : vector<128x128xf32>
    %164 = tpu.matmul %161, %163, %cst_139 {dimension_numbers = #tpu.dot_dimension_numbers<[1], [0], [0], [1], [0, 0, 1, 1], [], []>} : vector<128x20xbf16>, vector<20x128xbf16>, vector<128x128xf32> -> vector<128x128xf32>
    %165 = arith.addf %153, %164 : vector<128x128xf32>
    %c1_140 = arith.constant 1 : index
    %c32_141 = arith.constant 32 : index
    %c0_142 = arith.constant 0 : index
    %166 = vector.load %arg1[%c1_140, %c32_141, %c0_142] : memref<2x160x20xbf16, #tpu.memory_space<vmem>>, vector<1x128x20xbf16>
    %167 = vector.shape_cast %166 : vector<1x128x20xbf16> to vector<128x20xbf16>
    %c4_143 = arith.constant 4 : index
    %c0_144 = arith.constant 0 : index
    %c0_145 = arith.constant 0 : index
    %168 = vector.load %arg3[%c4_143, %c0_144, %c0_145] : memref<5x20x128xbf16, #tpu.memory_space<vmem>>, vector<1x20x128xbf16>
    %169 = vector.shape_cast %168 : vector<1x20x128xbf16> to vector<20x128xbf16>
    %cst_146 = arith.constant dense<0.000000e+00> : vector<128x128xf32>
    %170 = tpu.matmul %167, %169, %cst_146 {dimension_numbers = #tpu.dot_dimension_numbers<[1], [0], [0], [1], [0, 0, 1, 1], [], []>} : vector<128x20xbf16>, vector<20x128xbf16>, vector<128x128xf32> -> vector<128x128xf32>
    %171 = arith.addf %159, %170 : vector<128x128xf32>
    %c1_147 = arith.constant 1 : index
    %c32_148 = arith.constant 32 : index
    %c0_149 = arith.constant 0 : index
    %172 = vector.load %arg2[%c1_147, %c32_148, %c0_149] : memref<2x160x20xbf16, #tpu.memory_space<vmem>>, vector<1x128x20xbf16>
    %173 = vector.shape_cast %172 : vector<1x128x20xbf16> to vector<128x20xbf16>
    %c4_150 = arith.constant 4 : index
    %c0_151 = arith.constant 0 : index
    %c0_152 = arith.constant 0 : index
    %174 = vector.load %arg3[%c4_150, %c0_151, %c0_152] : memref<5x20x128xbf16, #tpu.memory_space<vmem>>, vector<1x20x128xbf16>
    %175 = vector.shape_cast %174 : vector<1x20x128xbf16> to vector<20x128xbf16>
    %cst_153 = arith.constant dense<0.000000e+00> : vector<128x128xf32>
    %176 = tpu.matmul %173, %175, %cst_153 {dimension_numbers = #tpu.dot_dimension_numbers<[1], [0], [0], [1], [0, 0, 1, 1], [], []>} : vector<128x20xbf16>, vector<20x128xbf16>, vector<128x128xf32> -> vector<128x128xf32>
    %177 = arith.addf %165, %176 : vector<128x128xf32>
    %178 = arith.maximumf %171, %177 : vector<128x128xf32>
    %179 = vector.broadcast %0 : vector<1x128xf32> to vector<128x128xf32>
    %180 = arith.addf %178, %179 : vector<128x128xf32>
    %cst_154 = arith.constant 0.000000e+00 : f32
    %181 = vector.broadcast %cst_154 : f32 to vector<128x128xf32>
    %182 = arith.maximumf %180, %181 : vector<128x128xf32>
    %183 = vector.extract_strided_slice %182 {offsets = [0, 0], sizes = [8, 128], strides = [1, 1]} : vector<128x128xf32> to vector<8x128xf32>
    %184 = vector.extract_strided_slice %182 {offsets = [8, 0], sizes = [8, 128], strides = [1, 1]} : vector<128x128xf32> to vector<8x128xf32>
    %185 = arith.maximumf %183, %184 : vector<8x128xf32>
    %186 = arith.truncf %185 : vector<8x128xf32> to vector<8x128xbf16>
    %c1_155 = arith.constant 1 : index
    %c0_156 = arith.constant 0 : index
    %c0_157 = arith.constant 0 : index
    %187 = vector.load %arg5[%c1_155, %c0_156, %c0_157] : memref<2x64x128xbf16, #tpu.memory_space<vmem>>, vector<1x8x128xbf16>
    %188 = vector.shape_cast %187 : vector<1x8x128xbf16> to vector<8x128xbf16>
    %189 = vector.shape_cast %186 : vector<8x128xbf16> to vector<1x8x128xbf16>
    tpu.vector_store %arg5[%c1_155, %c0_156, %c0_157], %189 {strides = array<i32>} : memref<2x64x128xbf16, #tpu.memory_space<vmem>>, vector<1x8x128xbf16>,
    %190 = vector.extract_strided_slice %182 {offsets = [16, 0], sizes = [8, 128], strides = [1, 1]} : vector<128x128xf32> to vector<8x128xf32>
    %191 = vector.extract_strided_slice %182 {offsets = [24, 0], sizes = [8, 128], strides = [1, 1]} : vector<128x128xf32> to vector<8x128xf32>
    %192 = arith.maximumf %190, %191 : vector<8x128xf32>
    %193 = arith.truncf %192 : vector<8x128xf32> to vector<8x128xbf16>
    %c1_158 = arith.constant 1 : index
    %c8_159 = arith.constant 8 : index
    %c0_160 = arith.constant 0 : index
    %194 = vector.load %arg5[%c1_158, %c8_159, %c0_160] : memref<2x64x128xbf16, #tpu.memory_space<vmem>>, vector<1x8x128xbf16>
    %195 = vector.shape_cast %194 : vector<1x8x128xbf16> to vector<8x128xbf16>
    %196 = vector.shape_cast %193 : vector<8x128xbf16> to vector<1x8x128xbf16>
    tpu.vector_store %arg5[%c1_158, %c8_159, %c0_160], %196 {strides = array<i32>} : memref<2x64x128xbf16, #tpu.memory_space<vmem>>, vector<1x8x128xbf16>,
    %197 = vector.extract_strided_slice %182 {offsets = [32, 0], sizes = [8, 128], strides = [1, 1]} : vector<128x128xf32> to vector<8x128xf32>
    %198 = vector.extract_strided_slice %182 {offsets = [40, 0], sizes = [8, 128], strides = [1, 1]} : vector<128x128xf32> to vector<8x128xf32>
    %199 = arith.maximumf %197, %198 : vector<8x128xf32>
    %200 = arith.truncf %199 : vector<8x128xf32> to vector<8x128xbf16>
    %c1_161 = arith.constant 1 : index
    %c16_162 = arith.constant 16 : index
    %c0_163 = arith.constant 0 : index
    %201 = vector.load %arg5[%c1_161, %c16_162, %c0_163] : memref<2x64x128xbf16, #tpu.memory_space<vmem>>, vector<1x8x128xbf16>
    %202 = vector.shape_cast %201 : vector<1x8x128xbf16> to vector<8x128xbf16>
    %203 = vector.shape_cast %200 : vector<8x128xbf16> to vector<1x8x128xbf16>
    tpu.vector_store %arg5[%c1_161, %c16_162, %c0_163], %203 {strides = array<i32>} : memref<2x64x128xbf16, #tpu.memory_space<vmem>>, vector<1x8x128xbf16>,
    %204 = vector.extract_strided_slice %182 {offsets = [48, 0], sizes = [8, 128], strides = [1, 1]} : vector<128x128xf32> to vector<8x128xf32>
    %205 = vector.extract_strided_slice %182 {offsets = [56, 0], sizes = [8, 128], strides = [1, 1]} : vector<128x128xf32> to vector<8x128xf32>
    %206 = arith.maximumf %204, %205 : vector<8x128xf32>
    %207 = arith.truncf %206 : vector<8x128xf32> to vector<8x128xbf16>
    %c1_164 = arith.constant 1 : index
    %c24_165 = arith.constant 24 : index
    %c0_166 = arith.constant 0 : index
    %208 = vector.load %arg5[%c1_164, %c24_165, %c0_166] : memref<2x64x128xbf16, #tpu.memory_space<vmem>>, vector<1x8x128xbf16>
    %209 = vector.shape_cast %208 : vector<1x8x128xbf16> to vector<8x128xbf16>
    %210 = vector.shape_cast %207 : vector<8x128xbf16> to vector<1x8x128xbf16>
    tpu.vector_store %arg5[%c1_164, %c24_165, %c0_166], %210 {strides = array<i32>} : memref<2x64x128xbf16, #tpu.memory_space<vmem>>, vector<1x8x128xbf16>,
    %211 = vector.extract_strided_slice %182 {offsets = [64, 0], sizes = [8, 128], strides = [1, 1]} : vector<128x128xf32> to vector<8x128xf32>
    %212 = vector.extract_strided_slice %182 {offsets = [72, 0], sizes = [8, 128], strides = [1, 1]} : vector<128x128xf32> to vector<8x128xf32>
    %213 = arith.maximumf %211, %212 : vector<8x128xf32>
    %214 = arith.truncf %213 : vector<8x128xf32> to vector<8x128xbf16>
    %c1_167 = arith.constant 1 : index
    %c32_168 = arith.constant 32 : index
    %c0_169 = arith.constant 0 : index
    %215 = vector.load %arg5[%c1_167, %c32_168, %c0_169] : memref<2x64x128xbf16, #tpu.memory_space<vmem>>, vector<1x8x128xbf16>
    %216 = vector.shape_cast %215 : vector<1x8x128xbf16> to vector<8x128xbf16>
    %217 = vector.shape_cast %214 : vector<8x128xbf16> to vector<1x8x128xbf16>
    tpu.vector_store %arg5[%c1_167, %c32_168, %c0_169], %217 {strides = array<i32>} : memref<2x64x128xbf16, #tpu.memory_space<vmem>>, vector<1x8x128xbf16>,
    %218 = vector.extract_strided_slice %182 {offsets = [80, 0], sizes = [8, 128], strides = [1, 1]} : vector<128x128xf32> to vector<8x128xf32>
    %219 = vector.extract_strided_slice %182 {offsets = [88, 0], sizes = [8, 128], strides = [1, 1]} : vector<128x128xf32> to vector<8x128xf32>
    %220 = arith.maximumf %218, %219 : vector<8x128xf32>
    %221 = arith.truncf %220 : vector<8x128xf32> to vector<8x128xbf16>
    %c1_170 = arith.constant 1 : index
    %c40_171 = arith.constant 40 : index
    %c0_172 = arith.constant 0 : index
    %222 = vector.load %arg5[%c1_170, %c40_171, %c0_172] : memref<2x64x128xbf16, #tpu.memory_space<vmem>>, vector<1x8x128xbf16>
    %223 = vector.shape_cast %222 : vector<1x8x128xbf16> to vector<8x128xbf16>
    %224 = vector.shape_cast %221 : vector<8x128xbf16> to vector<1x8x128xbf16>
    tpu.vector_store %arg5[%c1_170, %c40_171, %c0_172], %224 {strides = array<i32>} : memref<2x64x128xbf16, #tpu.memory_space<vmem>>, vector<1x8x128xbf16>,
    %225 = vector.extract_strided_slice %182 {offsets = [96, 0], sizes = [8, 128], strides = [1, 1]} : vector<128x128xf32> to vector<8x128xf32>
    %226 = vector.extract_strided_slice %182 {offsets = [104, 0], sizes = [8, 128], strides = [1, 1]} : vector<128x128xf32> to vector<8x128xf32>
    %227 = arith.maximumf %225, %226 : vector<8x128xf32>
    %228 = arith.truncf %227 : vector<8x128xf32> to vector<8x128xbf16>
    %c1_173 = arith.constant 1 : index
    %c48_174 = arith.constant 48 : index
    %c0_175 = arith.constant 0 : index
    %229 = vector.load %arg5[%c1_173, %c48_174, %c0_175] : memref<2x64x128xbf16, #tpu.memory_space<vmem>>, vector<1x8x128xbf16>
    %230 = vector.shape_cast %229 : vector<1x8x128xbf16> to vector<8x128xbf16>
    %231 = vector.shape_cast %228 : vector<8x128xbf16> to vector<1x8x128xbf16>
    tpu.vector_store %arg5[%c1_173, %c48_174, %c0_175], %231 {strides = array<i32>} : memref<2x64x128xbf16, #tpu.memory_space<vmem>>, vector<1x8x128xbf16>,
    %232 = vector.extract_strided_slice %182 {offsets = [112, 0], sizes = [8, 128], strides = [1, 1]} : vector<128x128xf32> to vector<8x128xf32>
    %233 = vector.extract_strided_slice %182 {offsets = [120, 0], sizes = [8, 128], strides = [1, 1]} : vector<128x128xf32> to vector<8x128xf32>
    %234 = arith.maximumf %232, %233 : vector<8x128xf32>
    %235 = arith.truncf %234 : vector<8x128xf32> to vector<8x128xbf16>
    %c1_176 = arith.constant 1 : index
    %c56_177 = arith.constant 56 : index
    %c0_178 = arith.constant 0 : index
    %236 = vector.load %arg5[%c1_176, %c56_177, %c0_178] : memref<2x64x128xbf16, #tpu.memory_space<vmem>>, vector<1x8x128xbf16>
    %237 = vector.shape_cast %236 : vector<1x8x128xbf16> to vector<8x128xbf16>
    %238 = vector.shape_cast %235 : vector<8x128xbf16> to vector<1x8x128xbf16>
    tpu.vector_store %arg5[%c1_176, %c56_177, %c0_178], %238 {strides = array<i32>} : memref<2x64x128xbf16, #tpu.memory_space<vmem>>, vector<1x8x128xbf16>,
    return
  }
  func.func @transform_0(%arg0: i32) -> (i32, i32, i32) {
    %c0_i32 = arith.constant 0 : i32
    %c0_i32_0 = arith.constant 0 : i32
    %c0_i32_1 = arith.constant 0 : i32
    return %arg0, %c0_i32, %c0_i32_0 : i32, i32, i32
  }
  func.func @transform_1(%arg0: i32) -> (i32, i32, i32) {
    %c0_i32 = arith.constant 0 : i32
    %c0_i32_0 = arith.constant 0 : i32
    %c0_i32_1 = arith.constant 0 : i32
    return %arg0, %c0_i32, %c0_i32_0 : i32, i32, i32
  }
  func.func @transform_2(%arg0: i32) -> (i32, i32, i32) {
    %c0_i32 = arith.constant 0 : i32
    %c0_i32_0 = arith.constant 0 : i32
    %c0_i32_1 = arith.constant 0 : i32
    %c0_i32_2 = arith.constant 0 : i32
    return %c0_i32, %c0_i32_0, %c0_i32_1 : i32, i32, i32
  }
  func.func @transform_3(%arg0: i32) -> (i32, i32) {
    %c0_i32 = arith.constant 0 : i32
    %c0_i32_0 = arith.constant 0 : i32
    %c0_i32_1 = arith.constant 0 : i32
    return %c0_i32, %c0_i32_0 : i32, i32
  }
  func.func @transform_4(%arg0: i32) -> (i32, i32, i32) {
    %c0_i32 = arith.constant 0 : i32
    %c0_i32_0 = arith.constant 0 : i32
    %c0_i32_1 = arith.constant 0 : i32
    return %arg0, %c0_i32, %c0_i32_0 : i32, i32, i32
  }
}

module attributes {stable_mosaic.version = 11 : i64} {
  func.func @_conv_relu_pool_kernel(%arg0: i32, %arg1: memref<2x40x96xbf16, #tpu.memory_space<vmem>>, %arg2: memref<2x40x96xbf16, #tpu.memory_space<vmem>>, %arg3: memref<3x96x128xbf16, #tpu.memory_space<vmem>>, %arg4: memref<1x128xf32, #tpu.memory_space<vmem>>, %arg5: memref<2x16x128xbf16, #tpu.memory_space<vmem>>) attributes {dimension_semantics = [#tpu.dimension_semantics<parallel>], iteration_bounds = array<i64: 1>, scalar_prefetch = 0 : i64, scratch_operands = 0 : i64, tpu.core_type = #tpu.core_type<tc>, window_params = [{transform_indices = @transform_0, window_bounds = array<i64: 2, 40, 96>}, {transform_indices = @transform_1, window_bounds = array<i64: 2, 40, 96>}, {pipeline_mode = #tpu.pipeline_mode<synchronous>, transform_indices = @transform_2, window_bounds = array<i64: 3, 96, 128>}, {pipeline_mode = #tpu.pipeline_mode<synchronous>, transform_indices = @transform_3, window_bounds = array<i64: 1, 128>}, {transform_indices = @transform_4, window_bounds = array<i64: 2, 16, 128>}]} {
    %c0 = arith.constant 0 : index
    %c0_0 = arith.constant 0 : index
    %0 = vector.load %arg4[%c0, %c0_0] : memref<1x128xf32, #tpu.memory_space<vmem>>, vector<1x128xf32>
    %c0_1 = arith.constant 0 : index
    %c0_2 = arith.constant 0 : index
    %c0_3 = arith.constant 0 : index
    %1 = vector.load %arg1[%c0_1, %c0_2, %c0_3] : memref<2x40x96xbf16, #tpu.memory_space<vmem>>, vector<1x32x96xbf16>
    %2 = vector.shape_cast %1 : vector<1x32x96xbf16> to vector<32x96xbf16>
    %c0_4 = arith.constant 0 : index
    %c0_5 = arith.constant 0 : index
    %c0_6 = arith.constant 0 : index
    %3 = vector.load %arg3[%c0_4, %c0_5, %c0_6] : memref<3x96x128xbf16, #tpu.memory_space<vmem>>, vector<1x96x128xbf16>
    %4 = vector.shape_cast %3 : vector<1x96x128xbf16> to vector<96x128xbf16>
    %cst = arith.constant dense<0.000000e+00> : vector<32x128xf32>
    %5 = tpu.matmul %2, %4, %cst {dimension_numbers = #tpu.dot_dimension_numbers<[1], [0], [0], [1], [0, 0, 1, 1], [], []>} : vector<32x96xbf16>, vector<96x128xbf16>, vector<32x128xf32> -> vector<32x128xf32>
    %c0_7 = arith.constant 0 : index
    %c0_8 = arith.constant 0 : index
    %c0_9 = arith.constant 0 : index
    %6 = vector.load %arg2[%c0_7, %c0_8, %c0_9] : memref<2x40x96xbf16, #tpu.memory_space<vmem>>, vector<1x32x96xbf16>
    %7 = vector.shape_cast %6 : vector<1x32x96xbf16> to vector<32x96xbf16>
    %c0_10 = arith.constant 0 : index
    %c0_11 = arith.constant 0 : index
    %c0_12 = arith.constant 0 : index
    %8 = vector.load %arg3[%c0_10, %c0_11, %c0_12] : memref<3x96x128xbf16, #tpu.memory_space<vmem>>, vector<1x96x128xbf16>
    %9 = vector.shape_cast %8 : vector<1x96x128xbf16> to vector<96x128xbf16>
    %cst_13 = arith.constant dense<0.000000e+00> : vector<32x128xf32>
    %10 = tpu.matmul %7, %9, %cst_13 {dimension_numbers = #tpu.dot_dimension_numbers<[1], [0], [0], [1], [0, 0, 1, 1], [], []>} : vector<32x96xbf16>, vector<96x128xbf16>, vector<32x128xf32> -> vector<32x128xf32>
    %c0_14 = arith.constant 0 : index
    %c4 = arith.constant 4 : index
    %c0_15 = arith.constant 0 : index
    %11 = vector.load %arg1[%c0_14, %c4, %c0_15] : memref<2x40x96xbf16, #tpu.memory_space<vmem>>, vector<1x32x96xbf16>
    %12 = vector.shape_cast %11 : vector<1x32x96xbf16> to vector<32x96xbf16>
    %c1 = arith.constant 1 : index
    %c0_16 = arith.constant 0 : index
    %c0_17 = arith.constant 0 : index
    %13 = vector.load %arg3[%c1, %c0_16, %c0_17] : memref<3x96x128xbf16, #tpu.memory_space<vmem>>, vector<1x96x128xbf16>
    %14 = vector.shape_cast %13 : vector<1x96x128xbf16> to vector<96x128xbf16>
    %cst_18 = arith.constant dense<0.000000e+00> : vector<32x128xf32>
    %15 = tpu.matmul %12, %14, %cst_18 {dimension_numbers = #tpu.dot_dimension_numbers<[1], [0], [0], [1], [0, 0, 1, 1], [], []>} : vector<32x96xbf16>, vector<96x128xbf16>, vector<32x128xf32> -> vector<32x128xf32>
    %16 = arith.addf %5, %15 : vector<32x128xf32>
    %c0_19 = arith.constant 0 : index
    %c4_20 = arith.constant 4 : index
    %c0_21 = arith.constant 0 : index
    %17 = vector.load %arg2[%c0_19, %c4_20, %c0_21] : memref<2x40x96xbf16, #tpu.memory_space<vmem>>, vector<1x32x96xbf16>
    %18 = vector.shape_cast %17 : vector<1x32x96xbf16> to vector<32x96xbf16>
    %c1_22 = arith.constant 1 : index
    %c0_23 = arith.constant 0 : index
    %c0_24 = arith.constant 0 : index
    %19 = vector.load %arg3[%c1_22, %c0_23, %c0_24] : memref<3x96x128xbf16, #tpu.memory_space<vmem>>, vector<1x96x128xbf16>
    %20 = vector.shape_cast %19 : vector<1x96x128xbf16> to vector<96x128xbf16>
    %cst_25 = arith.constant dense<0.000000e+00> : vector<32x128xf32>
    %21 = tpu.matmul %18, %20, %cst_25 {dimension_numbers = #tpu.dot_dimension_numbers<[1], [0], [0], [1], [0, 0, 1, 1], [], []>} : vector<32x96xbf16>, vector<96x128xbf16>, vector<32x128xf32> -> vector<32x128xf32>
    %22 = arith.addf %10, %21 : vector<32x128xf32>
    %c0_26 = arith.constant 0 : index
    %c8 = arith.constant 8 : index
    %c0_27 = arith.constant 0 : index
    %23 = vector.load %arg1[%c0_26, %c8, %c0_27] : memref<2x40x96xbf16, #tpu.memory_space<vmem>>, vector<1x32x96xbf16>
    %24 = vector.shape_cast %23 : vector<1x32x96xbf16> to vector<32x96xbf16>
    %c2 = arith.constant 2 : index
    %c0_28 = arith.constant 0 : index
    %c0_29 = arith.constant 0 : index
    %25 = vector.load %arg3[%c2, %c0_28, %c0_29] : memref<3x96x128xbf16, #tpu.memory_space<vmem>>, vector<1x96x128xbf16>
    %26 = vector.shape_cast %25 : vector<1x96x128xbf16> to vector<96x128xbf16>
    %cst_30 = arith.constant dense<0.000000e+00> : vector<32x128xf32>
    %27 = tpu.matmul %24, %26, %cst_30 {dimension_numbers = #tpu.dot_dimension_numbers<[1], [0], [0], [1], [0, 0, 1, 1], [], []>} : vector<32x96xbf16>, vector<96x128xbf16>, vector<32x128xf32> -> vector<32x128xf32>
    %28 = arith.addf %16, %27 : vector<32x128xf32>
    %c0_31 = arith.constant 0 : index
    %c8_32 = arith.constant 8 : index
    %c0_33 = arith.constant 0 : index
    %29 = vector.load %arg2[%c0_31, %c8_32, %c0_33] : memref<2x40x96xbf16, #tpu.memory_space<vmem>>, vector<1x32x96xbf16>
    %30 = vector.shape_cast %29 : vector<1x32x96xbf16> to vector<32x96xbf16>
    %c2_34 = arith.constant 2 : index
    %c0_35 = arith.constant 0 : index
    %c0_36 = arith.constant 0 : index
    %31 = vector.load %arg3[%c2_34, %c0_35, %c0_36] : memref<3x96x128xbf16, #tpu.memory_space<vmem>>, vector<1x96x128xbf16>
    %32 = vector.shape_cast %31 : vector<1x96x128xbf16> to vector<96x128xbf16>
    %cst_37 = arith.constant dense<0.000000e+00> : vector<32x128xf32>
    %33 = tpu.matmul %30, %32, %cst_37 {dimension_numbers = #tpu.dot_dimension_numbers<[1], [0], [0], [1], [0, 0, 1, 1], [], []>} : vector<32x96xbf16>, vector<96x128xbf16>, vector<32x128xf32> -> vector<32x128xf32>
    %34 = arith.addf %22, %33 : vector<32x128xf32>
    %35 = arith.maximumf %28, %34 : vector<32x128xf32>
    %36 = vector.broadcast %0 : vector<1x128xf32> to vector<32x128xf32>
    %37 = arith.addf %35, %36 : vector<32x128xf32>
    %cst_38 = arith.constant 0.000000e+00 : f32
    %38 = vector.broadcast %cst_38 : f32 to vector<32x128xf32>
    %39 = arith.maximumf %37, %38 : vector<32x128xf32>
    %40 = vector.extract_strided_slice %39 {offsets = [0, 0], sizes = [4, 128], strides = [1, 1]} : vector<32x128xf32> to vector<4x128xf32>
    %41 = vector.extract_strided_slice %39 {offsets = [4, 0], sizes = [4, 128], strides = [1, 1]} : vector<32x128xf32> to vector<4x128xf32>
    %42 = arith.maximumf %40, %41 : vector<4x128xf32>
    %43 = arith.truncf %42 : vector<4x128xf32> to vector<4x128xbf16>
    %c0_39 = arith.constant 0 : index
    %c0_40 = arith.constant 0 : index
    %c0_41 = arith.constant 0 : index
    %44 = vector.load %arg5[%c0_39, %c0_40, %c0_41] : memref<2x16x128xbf16, #tpu.memory_space<vmem>>, vector<1x4x128xbf16>
    %45 = vector.shape_cast %44 : vector<1x4x128xbf16> to vector<4x128xbf16>
    %46 = vector.shape_cast %43 : vector<4x128xbf16> to vector<1x4x128xbf16>
    tpu.vector_store %arg5[%c0_39, %c0_40, %c0_41], %46 {strides = array<i32>} : memref<2x16x128xbf16, #tpu.memory_space<vmem>>, vector<1x4x128xbf16>,
    %47 = vector.extract_strided_slice %39 {offsets = [8, 0], sizes = [4, 128], strides = [1, 1]} : vector<32x128xf32> to vector<4x128xf32>
    %48 = vector.extract_strided_slice %39 {offsets = [12, 0], sizes = [4, 128], strides = [1, 1]} : vector<32x128xf32> to vector<4x128xf32>
    %49 = arith.maximumf %47, %48 : vector<4x128xf32>
    %50 = arith.truncf %49 : vector<4x128xf32> to vector<4x128xbf16>
    %c0_42 = arith.constant 0 : index
    %c4_43 = arith.constant 4 : index
    %c0_44 = arith.constant 0 : index
    %51 = vector.load %arg5[%c0_42, %c4_43, %c0_44] : memref<2x16x128xbf16, #tpu.memory_space<vmem>>, vector<1x4x128xbf16>
    %52 = vector.shape_cast %51 : vector<1x4x128xbf16> to vector<4x128xbf16>
    %53 = vector.shape_cast %50 : vector<4x128xbf16> to vector<1x4x128xbf16>
    tpu.vector_store %arg5[%c0_42, %c4_43, %c0_44], %53 {strides = array<i32>} : memref<2x16x128xbf16, #tpu.memory_space<vmem>>, vector<1x4x128xbf16>,
    %54 = vector.extract_strided_slice %39 {offsets = [16, 0], sizes = [4, 128], strides = [1, 1]} : vector<32x128xf32> to vector<4x128xf32>
    %55 = vector.extract_strided_slice %39 {offsets = [20, 0], sizes = [4, 128], strides = [1, 1]} : vector<32x128xf32> to vector<4x128xf32>
    %56 = arith.maximumf %54, %55 : vector<4x128xf32>
    %57 = arith.truncf %56 : vector<4x128xf32> to vector<4x128xbf16>
    %c0_45 = arith.constant 0 : index
    %c8_46 = arith.constant 8 : index
    %c0_47 = arith.constant 0 : index
    %58 = vector.load %arg5[%c0_45, %c8_46, %c0_47] : memref<2x16x128xbf16, #tpu.memory_space<vmem>>, vector<1x4x128xbf16>
    %59 = vector.shape_cast %58 : vector<1x4x128xbf16> to vector<4x128xbf16>
    %60 = vector.shape_cast %57 : vector<4x128xbf16> to vector<1x4x128xbf16>
    tpu.vector_store %arg5[%c0_45, %c8_46, %c0_47], %60 {strides = array<i32>} : memref<2x16x128xbf16, #tpu.memory_space<vmem>>, vector<1x4x128xbf16>,
    %61 = vector.extract_strided_slice %39 {offsets = [24, 0], sizes = [4, 128], strides = [1, 1]} : vector<32x128xf32> to vector<4x128xf32>
    %62 = vector.extract_strided_slice %39 {offsets = [28, 0], sizes = [4, 128], strides = [1, 1]} : vector<32x128xf32> to vector<4x128xf32>
    %63 = arith.maximumf %61, %62 : vector<4x128xf32>
    %64 = arith.truncf %63 : vector<4x128xf32> to vector<4x128xbf16>
    %c0_48 = arith.constant 0 : index
    %c12 = arith.constant 12 : index
    %c0_49 = arith.constant 0 : index
    %65 = vector.load %arg5[%c0_48, %c12, %c0_49] : memref<2x16x128xbf16, #tpu.memory_space<vmem>>, vector<1x4x128xbf16>
    %66 = vector.shape_cast %65 : vector<1x4x128xbf16> to vector<4x128xbf16>
    %67 = vector.shape_cast %64 : vector<4x128xbf16> to vector<1x4x128xbf16>
    tpu.vector_store %arg5[%c0_48, %c12, %c0_49], %67 {strides = array<i32>} : memref<2x16x128xbf16, #tpu.memory_space<vmem>>, vector<1x4x128xbf16>,
    %c1_50 = arith.constant 1 : index
    %c0_51 = arith.constant 0 : index
    %c0_52 = arith.constant 0 : index
    %68 = vector.load %arg1[%c1_50, %c0_51, %c0_52] : memref<2x40x96xbf16, #tpu.memory_space<vmem>>, vector<1x32x96xbf16>
    %69 = vector.shape_cast %68 : vector<1x32x96xbf16> to vector<32x96xbf16>
    %c0_53 = arith.constant 0 : index
    %c0_54 = arith.constant 0 : index
    %c0_55 = arith.constant 0 : index
    %70 = vector.load %arg3[%c0_53, %c0_54, %c0_55] : memref<3x96x128xbf16, #tpu.memory_space<vmem>>, vector<1x96x128xbf16>
    %71 = vector.shape_cast %70 : vector<1x96x128xbf16> to vector<96x128xbf16>
    %cst_56 = arith.constant dense<0.000000e+00> : vector<32x128xf32>
    %72 = tpu.matmul %69, %71, %cst_56 {dimension_numbers = #tpu.dot_dimension_numbers<[1], [0], [0], [1], [0, 0, 1, 1], [], []>} : vector<32x96xbf16>, vector<96x128xbf16>, vector<32x128xf32> -> vector<32x128xf32>
    %c1_57 = arith.constant 1 : index
    %c0_58 = arith.constant 0 : index
    %c0_59 = arith.constant 0 : index
    %73 = vector.load %arg2[%c1_57, %c0_58, %c0_59] : memref<2x40x96xbf16, #tpu.memory_space<vmem>>, vector<1x32x96xbf16>
    %74 = vector.shape_cast %73 : vector<1x32x96xbf16> to vector<32x96xbf16>
    %c0_60 = arith.constant 0 : index
    %c0_61 = arith.constant 0 : index
    %c0_62 = arith.constant 0 : index
    %75 = vector.load %arg3[%c0_60, %c0_61, %c0_62] : memref<3x96x128xbf16, #tpu.memory_space<vmem>>, vector<1x96x128xbf16>
    %76 = vector.shape_cast %75 : vector<1x96x128xbf16> to vector<96x128xbf16>
    %cst_63 = arith.constant dense<0.000000e+00> : vector<32x128xf32>
    %77 = tpu.matmul %74, %76, %cst_63 {dimension_numbers = #tpu.dot_dimension_numbers<[1], [0], [0], [1], [0, 0, 1, 1], [], []>} : vector<32x96xbf16>, vector<96x128xbf16>, vector<32x128xf32> -> vector<32x128xf32>
    %c1_64 = arith.constant 1 : index
    %c4_65 = arith.constant 4 : index
    %c0_66 = arith.constant 0 : index
    %78 = vector.load %arg1[%c1_64, %c4_65, %c0_66] : memref<2x40x96xbf16, #tpu.memory_space<vmem>>, vector<1x32x96xbf16>
    %79 = vector.shape_cast %78 : vector<1x32x96xbf16> to vector<32x96xbf16>
    %c1_67 = arith.constant 1 : index
    %c0_68 = arith.constant 0 : index
    %c0_69 = arith.constant 0 : index
    %80 = vector.load %arg3[%c1_67, %c0_68, %c0_69] : memref<3x96x128xbf16, #tpu.memory_space<vmem>>, vector<1x96x128xbf16>
    %81 = vector.shape_cast %80 : vector<1x96x128xbf16> to vector<96x128xbf16>
    %cst_70 = arith.constant dense<0.000000e+00> : vector<32x128xf32>
    %82 = tpu.matmul %79, %81, %cst_70 {dimension_numbers = #tpu.dot_dimension_numbers<[1], [0], [0], [1], [0, 0, 1, 1], [], []>} : vector<32x96xbf16>, vector<96x128xbf16>, vector<32x128xf32> -> vector<32x128xf32>
    %83 = arith.addf %72, %82 : vector<32x128xf32>
    %c1_71 = arith.constant 1 : index
    %c4_72 = arith.constant 4 : index
    %c0_73 = arith.constant 0 : index
    %84 = vector.load %arg2[%c1_71, %c4_72, %c0_73] : memref<2x40x96xbf16, #tpu.memory_space<vmem>>, vector<1x32x96xbf16>
    %85 = vector.shape_cast %84 : vector<1x32x96xbf16> to vector<32x96xbf16>
    %c1_74 = arith.constant 1 : index
    %c0_75 = arith.constant 0 : index
    %c0_76 = arith.constant 0 : index
    %86 = vector.load %arg3[%c1_74, %c0_75, %c0_76] : memref<3x96x128xbf16, #tpu.memory_space<vmem>>, vector<1x96x128xbf16>
    %87 = vector.shape_cast %86 : vector<1x96x128xbf16> to vector<96x128xbf16>
    %cst_77 = arith.constant dense<0.000000e+00> : vector<32x128xf32>
    %88 = tpu.matmul %85, %87, %cst_77 {dimension_numbers = #tpu.dot_dimension_numbers<[1], [0], [0], [1], [0, 0, 1, 1], [], []>} : vector<32x96xbf16>, vector<96x128xbf16>, vector<32x128xf32> -> vector<32x128xf32>
    %89 = arith.addf %77, %88 : vector<32x128xf32>
    %c1_78 = arith.constant 1 : index
    %c8_79 = arith.constant 8 : index
    %c0_80 = arith.constant 0 : index
    %90 = vector.load %arg1[%c1_78, %c8_79, %c0_80] : memref<2x40x96xbf16, #tpu.memory_space<vmem>>, vector<1x32x96xbf16>
    %91 = vector.shape_cast %90 : vector<1x32x96xbf16> to vector<32x96xbf16>
    %c2_81 = arith.constant 2 : index
    %c0_82 = arith.constant 0 : index
    %c0_83 = arith.constant 0 : index
    %92 = vector.load %arg3[%c2_81, %c0_82, %c0_83] : memref<3x96x128xbf16, #tpu.memory_space<vmem>>, vector<1x96x128xbf16>
    %93 = vector.shape_cast %92 : vector<1x96x128xbf16> to vector<96x128xbf16>
    %cst_84 = arith.constant dense<0.000000e+00> : vector<32x128xf32>
    %94 = tpu.matmul %91, %93, %cst_84 {dimension_numbers = #tpu.dot_dimension_numbers<[1], [0], [0], [1], [0, 0, 1, 1], [], []>} : vector<32x96xbf16>, vector<96x128xbf16>, vector<32x128xf32> -> vector<32x128xf32>
    %95 = arith.addf %83, %94 : vector<32x128xf32>
    %c1_85 = arith.constant 1 : index
    %c8_86 = arith.constant 8 : index
    %c0_87 = arith.constant 0 : index
    %96 = vector.load %arg2[%c1_85, %c8_86, %c0_87] : memref<2x40x96xbf16, #tpu.memory_space<vmem>>, vector<1x32x96xbf16>
    %97 = vector.shape_cast %96 : vector<1x32x96xbf16> to vector<32x96xbf16>
    %c2_88 = arith.constant 2 : index
    %c0_89 = arith.constant 0 : index
    %c0_90 = arith.constant 0 : index
    %98 = vector.load %arg3[%c2_88, %c0_89, %c0_90] : memref<3x96x128xbf16, #tpu.memory_space<vmem>>, vector<1x96x128xbf16>
    %99 = vector.shape_cast %98 : vector<1x96x128xbf16> to vector<96x128xbf16>
    %cst_91 = arith.constant dense<0.000000e+00> : vector<32x128xf32>
    %100 = tpu.matmul %97, %99, %cst_91 {dimension_numbers = #tpu.dot_dimension_numbers<[1], [0], [0], [1], [0, 0, 1, 1], [], []>} : vector<32x96xbf16>, vector<96x128xbf16>, vector<32x128xf32> -> vector<32x128xf32>
    %101 = arith.addf %89, %100 : vector<32x128xf32>
    %102 = arith.maximumf %95, %101 : vector<32x128xf32>
    %103 = vector.broadcast %0 : vector<1x128xf32> to vector<32x128xf32>
    %104 = arith.addf %102, %103 : vector<32x128xf32>
    %cst_92 = arith.constant 0.000000e+00 : f32
    %105 = vector.broadcast %cst_92 : f32 to vector<32x128xf32>
    %106 = arith.maximumf %104, %105 : vector<32x128xf32>
    %107 = vector.extract_strided_slice %106 {offsets = [0, 0], sizes = [4, 128], strides = [1, 1]} : vector<32x128xf32> to vector<4x128xf32>
    %108 = vector.extract_strided_slice %106 {offsets = [4, 0], sizes = [4, 128], strides = [1, 1]} : vector<32x128xf32> to vector<4x128xf32>
    %109 = arith.maximumf %107, %108 : vector<4x128xf32>
    %110 = arith.truncf %109 : vector<4x128xf32> to vector<4x128xbf16>
    %c1_93 = arith.constant 1 : index
    %c0_94 = arith.constant 0 : index
    %c0_95 = arith.constant 0 : index
    %111 = vector.load %arg5[%c1_93, %c0_94, %c0_95] : memref<2x16x128xbf16, #tpu.memory_space<vmem>>, vector<1x4x128xbf16>
    %112 = vector.shape_cast %111 : vector<1x4x128xbf16> to vector<4x128xbf16>
    %113 = vector.shape_cast %110 : vector<4x128xbf16> to vector<1x4x128xbf16>
    tpu.vector_store %arg5[%c1_93, %c0_94, %c0_95], %113 {strides = array<i32>} : memref<2x16x128xbf16, #tpu.memory_space<vmem>>, vector<1x4x128xbf16>,
    %114 = vector.extract_strided_slice %106 {offsets = [8, 0], sizes = [4, 128], strides = [1, 1]} : vector<32x128xf32> to vector<4x128xf32>
    %115 = vector.extract_strided_slice %106 {offsets = [12, 0], sizes = [4, 128], strides = [1, 1]} : vector<32x128xf32> to vector<4x128xf32>
    %116 = arith.maximumf %114, %115 : vector<4x128xf32>
    %117 = arith.truncf %116 : vector<4x128xf32> to vector<4x128xbf16>
    %c1_96 = arith.constant 1 : index
    %c4_97 = arith.constant 4 : index
    %c0_98 = arith.constant 0 : index
    %118 = vector.load %arg5[%c1_96, %c4_97, %c0_98] : memref<2x16x128xbf16, #tpu.memory_space<vmem>>, vector<1x4x128xbf16>
    %119 = vector.shape_cast %118 : vector<1x4x128xbf16> to vector<4x128xbf16>
    %120 = vector.shape_cast %117 : vector<4x128xbf16> to vector<1x4x128xbf16>
    tpu.vector_store %arg5[%c1_96, %c4_97, %c0_98], %120 {strides = array<i32>} : memref<2x16x128xbf16, #tpu.memory_space<vmem>>, vector<1x4x128xbf16>,
    %121 = vector.extract_strided_slice %106 {offsets = [16, 0], sizes = [4, 128], strides = [1, 1]} : vector<32x128xf32> to vector<4x128xf32>
    %122 = vector.extract_strided_slice %106 {offsets = [20, 0], sizes = [4, 128], strides = [1, 1]} : vector<32x128xf32> to vector<4x128xf32>
    %123 = arith.maximumf %121, %122 : vector<4x128xf32>
    %124 = arith.truncf %123 : vector<4x128xf32> to vector<4x128xbf16>
    %c1_99 = arith.constant 1 : index
    %c8_100 = arith.constant 8 : index
    %c0_101 = arith.constant 0 : index
    %125 = vector.load %arg5[%c1_99, %c8_100, %c0_101] : memref<2x16x128xbf16, #tpu.memory_space<vmem>>, vector<1x4x128xbf16>
    %126 = vector.shape_cast %125 : vector<1x4x128xbf16> to vector<4x128xbf16>
    %127 = vector.shape_cast %124 : vector<4x128xbf16> to vector<1x4x128xbf16>
    tpu.vector_store %arg5[%c1_99, %c8_100, %c0_101], %127 {strides = array<i32>} : memref<2x16x128xbf16, #tpu.memory_space<vmem>>, vector<1x4x128xbf16>,
    %128 = vector.extract_strided_slice %106 {offsets = [24, 0], sizes = [4, 128], strides = [1, 1]} : vector<32x128xf32> to vector<4x128xf32>
    %129 = vector.extract_strided_slice %106 {offsets = [28, 0], sizes = [4, 128], strides = [1, 1]} : vector<32x128xf32> to vector<4x128xf32>
    %130 = arith.maximumf %128, %129 : vector<4x128xf32>
    %131 = arith.truncf %130 : vector<4x128xf32> to vector<4x128xbf16>
    %c1_102 = arith.constant 1 : index
    %c12_103 = arith.constant 12 : index
    %c0_104 = arith.constant 0 : index
    %132 = vector.load %arg5[%c1_102, %c12_103, %c0_104] : memref<2x16x128xbf16, #tpu.memory_space<vmem>>, vector<1x4x128xbf16>
    %133 = vector.shape_cast %132 : vector<1x4x128xbf16> to vector<4x128xbf16>
    %134 = vector.shape_cast %131 : vector<4x128xbf16> to vector<1x4x128xbf16>
    tpu.vector_store %arg5[%c1_102, %c12_103, %c0_104], %134 {strides = array<i32>} : memref<2x16x128xbf16, #tpu.memory_space<vmem>>, vector<1x4x128xbf16>,
    return
  }
  func.func @transform_0(%arg0: i32) -> (i32, i32, i32) {
    %c0_i32 = arith.constant 0 : i32
    %c0_i32_0 = arith.constant 0 : i32
    %c0_i32_1 = arith.constant 0 : i32
    return %arg0, %c0_i32, %c0_i32_0 : i32, i32, i32
  }
  func.func @transform_1(%arg0: i32) -> (i32, i32, i32) {
    %c0_i32 = arith.constant 0 : i32
    %c0_i32_0 = arith.constant 0 : i32
    %c0_i32_1 = arith.constant 0 : i32
    return %arg0, %c0_i32, %c0_i32_0 : i32, i32, i32
  }
  func.func @transform_2(%arg0: i32) -> (i32, i32, i32) {
    %c0_i32 = arith.constant 0 : i32
    %c0_i32_0 = arith.constant 0 : i32
    %c0_i32_1 = arith.constant 0 : i32
    %c0_i32_2 = arith.constant 0 : i32
    return %c0_i32, %c0_i32_0, %c0_i32_1 : i32, i32, i32
  }
  func.func @transform_3(%arg0: i32) -> (i32, i32) {
    %c0_i32 = arith.constant 0 : i32
    %c0_i32_0 = arith.constant 0 : i32
    %c0_i32_1 = arith.constant 0 : i32
    return %c0_i32, %c0_i32_0 : i32, i32
  }
  func.func @transform_4(%arg0: i32) -> (i32, i32, i32) {
    %c0_i32 = arith.constant 0 : i32
    %c0_i32_0 = arith.constant 0 : i32
    %c0_i32_1 = arith.constant 0 : i32
    return %arg0, %c0_i32, %c0_i32_0 : i32, i32, i32
  }
}

module attributes {stable_mosaic.version = 11 : i64} {
  func.func @_conv_relu_pool_kernel(%arg0: i32, %arg1: memref<2x12x96xbf16, #tpu.memory_space<vmem>>, %arg2: memref<2x12x96xbf16, #tpu.memory_space<vmem>>, %arg3: memref<3x96x128xbf16, #tpu.memory_space<vmem>>, %arg4: memref<1x128xf32, #tpu.memory_space<vmem>>, %arg5: memref<2x4x128xbf16, #tpu.memory_space<vmem>>) attributes {dimension_semantics = [#tpu.dimension_semantics<parallel>], iteration_bounds = array<i64: 1>, scalar_prefetch = 0 : i64, scratch_operands = 0 : i64, tpu.core_type = #tpu.core_type<tc>, window_params = [{transform_indices = @transform_0, window_bounds = array<i64: 2, 12, 96>}, {transform_indices = @transform_1, window_bounds = array<i64: 2, 12, 96>}, {pipeline_mode = #tpu.pipeline_mode<synchronous>, transform_indices = @transform_2, window_bounds = array<i64: 3, 96, 128>}, {pipeline_mode = #tpu.pipeline_mode<synchronous>, transform_indices = @transform_3, window_bounds = array<i64: 1, 128>}, {transform_indices = @transform_4, window_bounds = array<i64: 2, 4, 128>}]} {
    %c0 = arith.constant 0 : index
    %c0_0 = arith.constant 0 : index
    %0 = vector.load %arg4[%c0, %c0_0] : memref<1x128xf32, #tpu.memory_space<vmem>>, vector<1x128xf32>
    %c0_1 = arith.constant 0 : index
    %c0_2 = arith.constant 0 : index
    %c0_3 = arith.constant 0 : index
    %1 = vector.load %arg1[%c0_1, %c0_2, %c0_3] : memref<2x12x96xbf16, #tpu.memory_space<vmem>>, vector<1x8x96xbf16>
    %2 = vector.shape_cast %1 : vector<1x8x96xbf16> to vector<8x96xbf16>
    %c0_4 = arith.constant 0 : index
    %c0_5 = arith.constant 0 : index
    %c0_6 = arith.constant 0 : index
    %3 = vector.load %arg3[%c0_4, %c0_5, %c0_6] : memref<3x96x128xbf16, #tpu.memory_space<vmem>>, vector<1x96x128xbf16>
    %4 = vector.shape_cast %3 : vector<1x96x128xbf16> to vector<96x128xbf16>
    %cst = arith.constant dense<0.000000e+00> : vector<8x128xf32>
    %5 = tpu.matmul %2, %4, %cst {dimension_numbers = #tpu.dot_dimension_numbers<[1], [0], [0], [1], [0, 0, 1, 1], [], []>} : vector<8x96xbf16>, vector<96x128xbf16>, vector<8x128xf32> -> vector<8x128xf32>
    %c0_7 = arith.constant 0 : index
    %c0_8 = arith.constant 0 : index
    %c0_9 = arith.constant 0 : index
    %6 = vector.load %arg2[%c0_7, %c0_8, %c0_9] : memref<2x12x96xbf16, #tpu.memory_space<vmem>>, vector<1x8x96xbf16>
    %7 = vector.shape_cast %6 : vector<1x8x96xbf16> to vector<8x96xbf16>
    %c0_10 = arith.constant 0 : index
    %c0_11 = arith.constant 0 : index
    %c0_12 = arith.constant 0 : index
    %8 = vector.load %arg3[%c0_10, %c0_11, %c0_12] : memref<3x96x128xbf16, #tpu.memory_space<vmem>>, vector<1x96x128xbf16>
    %9 = vector.shape_cast %8 : vector<1x96x128xbf16> to vector<96x128xbf16>
    %cst_13 = arith.constant dense<0.000000e+00> : vector<8x128xf32>
    %10 = tpu.matmul %7, %9, %cst_13 {dimension_numbers = #tpu.dot_dimension_numbers<[1], [0], [0], [1], [0, 0, 1, 1], [], []>} : vector<8x96xbf16>, vector<96x128xbf16>, vector<8x128xf32> -> vector<8x128xf32>
    %c0_14 = arith.constant 0 : index
    %c2 = arith.constant 2 : index
    %c0_15 = arith.constant 0 : index
    %11 = vector.load %arg1[%c0_14, %c2, %c0_15] : memref<2x12x96xbf16, #tpu.memory_space<vmem>>, vector<1x8x96xbf16>
    %12 = vector.shape_cast %11 : vector<1x8x96xbf16> to vector<8x96xbf16>
    %c1 = arith.constant 1 : index
    %c0_16 = arith.constant 0 : index
    %c0_17 = arith.constant 0 : index
    %13 = vector.load %arg3[%c1, %c0_16, %c0_17] : memref<3x96x128xbf16, #tpu.memory_space<vmem>>, vector<1x96x128xbf16>
    %14 = vector.shape_cast %13 : vector<1x96x128xbf16> to vector<96x128xbf16>
    %cst_18 = arith.constant dense<0.000000e+00> : vector<8x128xf32>
    %15 = tpu.matmul %12, %14, %cst_18 {dimension_numbers = #tpu.dot_dimension_numbers<[1], [0], [0], [1], [0, 0, 1, 1], [], []>} : vector<8x96xbf16>, vector<96x128xbf16>, vector<8x128xf32> -> vector<8x128xf32>
    %16 = arith.addf %5, %15 : vector<8x128xf32>
    %c0_19 = arith.constant 0 : index
    %c2_20 = arith.constant 2 : index
    %c0_21 = arith.constant 0 : index
    %17 = vector.load %arg2[%c0_19, %c2_20, %c0_21] : memref<2x12x96xbf16, #tpu.memory_space<vmem>>, vector<1x8x96xbf16>
    %18 = vector.shape_cast %17 : vector<1x8x96xbf16> to vector<8x96xbf16>
    %c1_22 = arith.constant 1 : index
    %c0_23 = arith.constant 0 : index
    %c0_24 = arith.constant 0 : index
    %19 = vector.load %arg3[%c1_22, %c0_23, %c0_24] : memref<3x96x128xbf16, #tpu.memory_space<vmem>>, vector<1x96x128xbf16>
    %20 = vector.shape_cast %19 : vector<1x96x128xbf16> to vector<96x128xbf16>
    %cst_25 = arith.constant dense<0.000000e+00> : vector<8x128xf32>
    %21 = tpu.matmul %18, %20, %cst_25 {dimension_numbers = #tpu.dot_dimension_numbers<[1], [0], [0], [1], [0, 0, 1, 1], [], []>} : vector<8x96xbf16>, vector<96x128xbf16>, vector<8x128xf32> -> vector<8x128xf32>
    %22 = arith.addf %10, %21 : vector<8x128xf32>
    %c0_26 = arith.constant 0 : index
    %c4 = arith.constant 4 : index
    %c0_27 = arith.constant 0 : index
    %23 = vector.load %arg1[%c0_26, %c4, %c0_27] : memref<2x12x96xbf16, #tpu.memory_space<vmem>>, vector<1x8x96xbf16>
    %24 = vector.shape_cast %23 : vector<1x8x96xbf16> to vector<8x96xbf16>
    %c2_28 = arith.constant 2 : index
    %c0_29 = arith.constant 0 : index
    %c0_30 = arith.constant 0 : index
    %25 = vector.load %arg3[%c2_28, %c0_29, %c0_30] : memref<3x96x128xbf16, #tpu.memory_space<vmem>>, vector<1x96x128xbf16>
    %26 = vector.shape_cast %25 : vector<1x96x128xbf16> to vector<96x128xbf16>
    %cst_31 = arith.constant dense<0.000000e+00> : vector<8x128xf32>
    %27 = tpu.matmul %24, %26, %cst_31 {dimension_numbers = #tpu.dot_dimension_numbers<[1], [0], [0], [1], [0, 0, 1, 1], [], []>} : vector<8x96xbf16>, vector<96x128xbf16>, vector<8x128xf32> -> vector<8x128xf32>
    %28 = arith.addf %16, %27 : vector<8x128xf32>
    %c0_32 = arith.constant 0 : index
    %c4_33 = arith.constant 4 : index
    %c0_34 = arith.constant 0 : index
    %29 = vector.load %arg2[%c0_32, %c4_33, %c0_34] : memref<2x12x96xbf16, #tpu.memory_space<vmem>>, vector<1x8x96xbf16>
    %30 = vector.shape_cast %29 : vector<1x8x96xbf16> to vector<8x96xbf16>
    %c2_35 = arith.constant 2 : index
    %c0_36 = arith.constant 0 : index
    %c0_37 = arith.constant 0 : index
    %31 = vector.load %arg3[%c2_35, %c0_36, %c0_37] : memref<3x96x128xbf16, #tpu.memory_space<vmem>>, vector<1x96x128xbf16>
    %32 = vector.shape_cast %31 : vector<1x96x128xbf16> to vector<96x128xbf16>
    %cst_38 = arith.constant dense<0.000000e+00> : vector<8x128xf32>
    %33 = tpu.matmul %30, %32, %cst_38 {dimension_numbers = #tpu.dot_dimension_numbers<[1], [0], [0], [1], [0, 0, 1, 1], [], []>} : vector<8x96xbf16>, vector<96x128xbf16>, vector<8x128xf32> -> vector<8x128xf32>
    %34 = arith.addf %22, %33 : vector<8x128xf32>
    %35 = arith.maximumf %28, %34 : vector<8x128xf32>
    %36 = vector.broadcast %0 : vector<1x128xf32> to vector<8x128xf32>
    %37 = arith.addf %35, %36 : vector<8x128xf32>
    %cst_39 = arith.constant 0.000000e+00 : f32
    %38 = vector.broadcast %cst_39 : f32 to vector<8x128xf32>
    %39 = arith.maximumf %37, %38 : vector<8x128xf32>
    %40 = vector.extract_strided_slice %39 {offsets = [0, 0], sizes = [2, 128], strides = [1, 1]} : vector<8x128xf32> to vector<2x128xf32>
    %41 = vector.extract_strided_slice %39 {offsets = [2, 0], sizes = [2, 128], strides = [1, 1]} : vector<8x128xf32> to vector<2x128xf32>
    %42 = arith.maximumf %40, %41 : vector<2x128xf32>
    %43 = arith.truncf %42 : vector<2x128xf32> to vector<2x128xbf16>
    %c0_40 = arith.constant 0 : index
    %c0_41 = arith.constant 0 : index
    %c0_42 = arith.constant 0 : index
    %44 = vector.load %arg5[%c0_40, %c0_41, %c0_42] : memref<2x4x128xbf16, #tpu.memory_space<vmem>>, vector<1x2x128xbf16>
    %45 = vector.shape_cast %44 : vector<1x2x128xbf16> to vector<2x128xbf16>
    %46 = vector.shape_cast %43 : vector<2x128xbf16> to vector<1x2x128xbf16>
    tpu.vector_store %arg5[%c0_40, %c0_41, %c0_42], %46 {strides = array<i32>} : memref<2x4x128xbf16, #tpu.memory_space<vmem>>, vector<1x2x128xbf16>,
    %47 = vector.extract_strided_slice %39 {offsets = [4, 0], sizes = [2, 128], strides = [1, 1]} : vector<8x128xf32> to vector<2x128xf32>
    %48 = vector.extract_strided_slice %39 {offsets = [6, 0], sizes = [2, 128], strides = [1, 1]} : vector<8x128xf32> to vector<2x128xf32>
    %49 = arith.maximumf %47, %48 : vector<2x128xf32>
    %50 = arith.truncf %49 : vector<2x128xf32> to vector<2x128xbf16>
    %c0_43 = arith.constant 0 : index
    %c2_44 = arith.constant 2 : index
    %c0_45 = arith.constant 0 : index
    %51 = vector.load %arg5[%c0_43, %c2_44, %c0_45] : memref<2x4x128xbf16, #tpu.memory_space<vmem>>, vector<1x2x128xbf16>
    %52 = vector.shape_cast %51 : vector<1x2x128xbf16> to vector<2x128xbf16>
    %53 = vector.shape_cast %50 : vector<2x128xbf16> to vector<1x2x128xbf16>
    tpu.vector_store %arg5[%c0_43, %c2_44, %c0_45], %53 {strides = array<i32>} : memref<2x4x128xbf16, #tpu.memory_space<vmem>>, vector<1x2x128xbf16>,
    %c1_46 = arith.constant 1 : index
    %c0_47 = arith.constant 0 : index
    %c0_48 = arith.constant 0 : index
    %54 = vector.load %arg1[%c1_46, %c0_47, %c0_48] : memref<2x12x96xbf16, #tpu.memory_space<vmem>>, vector<1x8x96xbf16>
    %55 = vector.shape_cast %54 : vector<1x8x96xbf16> to vector<8x96xbf16>
    %c0_49 = arith.constant 0 : index
    %c0_50 = arith.constant 0 : index
    %c0_51 = arith.constant 0 : index
    %56 = vector.load %arg3[%c0_49, %c0_50, %c0_51] : memref<3x96x128xbf16, #tpu.memory_space<vmem>>, vector<1x96x128xbf16>
    %57 = vector.shape_cast %56 : vector<1x96x128xbf16> to vector<96x128xbf16>
    %cst_52 = arith.constant dense<0.000000e+00> : vector<8x128xf32>
    %58 = tpu.matmul %55, %57, %cst_52 {dimension_numbers = #tpu.dot_dimension_numbers<[1], [0], [0], [1], [0, 0, 1, 1], [], []>} : vector<8x96xbf16>, vector<96x128xbf16>, vector<8x128xf32> -> vector<8x128xf32>
    %c1_53 = arith.constant 1 : index
    %c0_54 = arith.constant 0 : index
    %c0_55 = arith.constant 0 : index
    %59 = vector.load %arg2[%c1_53, %c0_54, %c0_55] : memref<2x12x96xbf16, #tpu.memory_space<vmem>>, vector<1x8x96xbf16>
    %60 = vector.shape_cast %59 : vector<1x8x96xbf16> to vector<8x96xbf16>
    %c0_56 = arith.constant 0 : index
    %c0_57 = arith.constant 0 : index
    %c0_58 = arith.constant 0 : index
    %61 = vector.load %arg3[%c0_56, %c0_57, %c0_58] : memref<3x96x128xbf16, #tpu.memory_space<vmem>>, vector<1x96x128xbf16>
    %62 = vector.shape_cast %61 : vector<1x96x128xbf16> to vector<96x128xbf16>
    %cst_59 = arith.constant dense<0.000000e+00> : vector<8x128xf32>
    %63 = tpu.matmul %60, %62, %cst_59 {dimension_numbers = #tpu.dot_dimension_numbers<[1], [0], [0], [1], [0, 0, 1, 1], [], []>} : vector<8x96xbf16>, vector<96x128xbf16>, vector<8x128xf32> -> vector<8x128xf32>
    %c1_60 = arith.constant 1 : index
    %c2_61 = arith.constant 2 : index
    %c0_62 = arith.constant 0 : index
    %64 = vector.load %arg1[%c1_60, %c2_61, %c0_62] : memref<2x12x96xbf16, #tpu.memory_space<vmem>>, vector<1x8x96xbf16>
    %65 = vector.shape_cast %64 : vector<1x8x96xbf16> to vector<8x96xbf16>
    %c1_63 = arith.constant 1 : index
    %c0_64 = arith.constant 0 : index
    %c0_65 = arith.constant 0 : index
    %66 = vector.load %arg3[%c1_63, %c0_64, %c0_65] : memref<3x96x128xbf16, #tpu.memory_space<vmem>>, vector<1x96x128xbf16>
    %67 = vector.shape_cast %66 : vector<1x96x128xbf16> to vector<96x128xbf16>
    %cst_66 = arith.constant dense<0.000000e+00> : vector<8x128xf32>
    %68 = tpu.matmul %65, %67, %cst_66 {dimension_numbers = #tpu.dot_dimension_numbers<[1], [0], [0], [1], [0, 0, 1, 1], [], []>} : vector<8x96xbf16>, vector<96x128xbf16>, vector<8x128xf32> -> vector<8x128xf32>
    %69 = arith.addf %58, %68 : vector<8x128xf32>
    %c1_67 = arith.constant 1 : index
    %c2_68 = arith.constant 2 : index
    %c0_69 = arith.constant 0 : index
    %70 = vector.load %arg2[%c1_67, %c2_68, %c0_69] : memref<2x12x96xbf16, #tpu.memory_space<vmem>>, vector<1x8x96xbf16>
    %71 = vector.shape_cast %70 : vector<1x8x96xbf16> to vector<8x96xbf16>
    %c1_70 = arith.constant 1 : index
    %c0_71 = arith.constant 0 : index
    %c0_72 = arith.constant 0 : index
    %72 = vector.load %arg3[%c1_70, %c0_71, %c0_72] : memref<3x96x128xbf16, #tpu.memory_space<vmem>>, vector<1x96x128xbf16>
    %73 = vector.shape_cast %72 : vector<1x96x128xbf16> to vector<96x128xbf16>
    %cst_73 = arith.constant dense<0.000000e+00> : vector<8x128xf32>
    %74 = tpu.matmul %71, %73, %cst_73 {dimension_numbers = #tpu.dot_dimension_numbers<[1], [0], [0], [1], [0, 0, 1, 1], [], []>} : vector<8x96xbf16>, vector<96x128xbf16>, vector<8x128xf32> -> vector<8x128xf32>
    %75 = arith.addf %63, %74 : vector<8x128xf32>
    %c1_74 = arith.constant 1 : index
    %c4_75 = arith.constant 4 : index
    %c0_76 = arith.constant 0 : index
    %76 = vector.load %arg1[%c1_74, %c4_75, %c0_76] : memref<2x12x96xbf16, #tpu.memory_space<vmem>>, vector<1x8x96xbf16>
    %77 = vector.shape_cast %76 : vector<1x8x96xbf16> to vector<8x96xbf16>
    %c2_77 = arith.constant 2 : index
    %c0_78 = arith.constant 0 : index
    %c0_79 = arith.constant 0 : index
    %78 = vector.load %arg3[%c2_77, %c0_78, %c0_79] : memref<3x96x128xbf16, #tpu.memory_space<vmem>>, vector<1x96x128xbf16>
    %79 = vector.shape_cast %78 : vector<1x96x128xbf16> to vector<96x128xbf16>
    %cst_80 = arith.constant dense<0.000000e+00> : vector<8x128xf32>
    %80 = tpu.matmul %77, %79, %cst_80 {dimension_numbers = #tpu.dot_dimension_numbers<[1], [0], [0], [1], [0, 0, 1, 1], [], []>} : vector<8x96xbf16>, vector<96x128xbf16>, vector<8x128xf32> -> vector<8x128xf32>
    %81 = arith.addf %69, %80 : vector<8x128xf32>
    %c1_81 = arith.constant 1 : index
    %c4_82 = arith.constant 4 : index
    %c0_83 = arith.constant 0 : index
    %82 = vector.load %arg2[%c1_81, %c4_82, %c0_83] : memref<2x12x96xbf16, #tpu.memory_space<vmem>>, vector<1x8x96xbf16>
    %83 = vector.shape_cast %82 : vector<1x8x96xbf16> to vector<8x96xbf16>
    %c2_84 = arith.constant 2 : index
    %c0_85 = arith.constant 0 : index
    %c0_86 = arith.constant 0 : index
    %84 = vector.load %arg3[%c2_84, %c0_85, %c0_86] : memref<3x96x128xbf16, #tpu.memory_space<vmem>>, vector<1x96x128xbf16>
    %85 = vector.shape_cast %84 : vector<1x96x128xbf16> to vector<96x128xbf16>
    %cst_87 = arith.constant dense<0.000000e+00> : vector<8x128xf32>
    %86 = tpu.matmul %83, %85, %cst_87 {dimension_numbers = #tpu.dot_dimension_numbers<[1], [0], [0], [1], [0, 0, 1, 1], [], []>} : vector<8x96xbf16>, vector<96x128xbf16>, vector<8x128xf32> -> vector<8x128xf32>
    %87 = arith.addf %75, %86 : vector<8x128xf32>
    %88 = arith.maximumf %81, %87 : vector<8x128xf32>
    %89 = vector.broadcast %0 : vector<1x128xf32> to vector<8x128xf32>
    %90 = arith.addf %88, %89 : vector<8x128xf32>
    %cst_88 = arith.constant 0.000000e+00 : f32
    %91 = vector.broadcast %cst_88 : f32 to vector<8x128xf32>
    %92 = arith.maximumf %90, %91 : vector<8x128xf32>
    %93 = vector.extract_strided_slice %92 {offsets = [0, 0], sizes = [2, 128], strides = [1, 1]} : vector<8x128xf32> to vector<2x128xf32>
    %94 = vector.extract_strided_slice %92 {offsets = [2, 0], sizes = [2, 128], strides = [1, 1]} : vector<8x128xf32> to vector<2x128xf32>
    %95 = arith.maximumf %93, %94 : vector<2x128xf32>
    %96 = arith.truncf %95 : vector<2x128xf32> to vector<2x128xbf16>
    %c1_89 = arith.constant 1 : index
    %c0_90 = arith.constant 0 : index
    %c0_91 = arith.constant 0 : index
    %97 = vector.load %arg5[%c1_89, %c0_90, %c0_91] : memref<2x4x128xbf16, #tpu.memory_space<vmem>>, vector<1x2x128xbf16>
    %98 = vector.shape_cast %97 : vector<1x2x128xbf16> to vector<2x128xbf16>
    %99 = vector.shape_cast %96 : vector<2x128xbf16> to vector<1x2x128xbf16>
    tpu.vector_store %arg5[%c1_89, %c0_90, %c0_91], %99 {strides = array<i32>} : memref<2x4x128xbf16, #tpu.memory_space<vmem>>, vector<1x2x128xbf16>,
    %100 = vector.extract_strided_slice %92 {offsets = [4, 0], sizes = [2, 128], strides = [1, 1]} : vector<8x128xf32> to vector<2x128xf32>
    %101 = vector.extract_strided_slice %92 {offsets = [6, 0], sizes = [2, 128], strides = [1, 1]} : vector<8x128xf32> to vector<2x128xf32>
    %102 = arith.maximumf %100, %101 : vector<2x128xf32>
    %103 = arith.truncf %102 : vector<2x128xf32> to vector<2x128xbf16>
    %c1_92 = arith.constant 1 : index
    %c2_93 = arith.constant 2 : index
    %c0_94 = arith.constant 0 : index
    %104 = vector.load %arg5[%c1_92, %c2_93, %c0_94] : memref<2x4x128xbf16, #tpu.memory_space<vmem>>, vector<1x2x128xbf16>
    %105 = vector.shape_cast %104 : vector<1x2x128xbf16> to vector<2x128xbf16>
    %106 = vector.shape_cast %103 : vector<2x128xbf16> to vector<1x2x128xbf16>
    tpu.vector_store %arg5[%c1_92, %c2_93, %c0_94], %106 {strides = array<i32>} : memref<2x4x128xbf16, #tpu.memory_space<vmem>>, vector<1x2x128xbf16>,
    return
  }
  func.func @transform_0(%arg0: i32) -> (i32, i32, i32) {
    %c0_i32 = arith.constant 0 : i32
    %c0_i32_0 = arith.constant 0 : i32
    %c0_i32_1 = arith.constant 0 : i32
    return %arg0, %c0_i32, %c0_i32_0 : i32, i32, i32
  }
  func.func @transform_1(%arg0: i32) -> (i32, i32, i32) {
    %c0_i32 = arith.constant 0 : i32
    %c0_i32_0 = arith.constant 0 : i32
    %c0_i32_1 = arith.constant 0 : i32
    return %arg0, %c0_i32, %c0_i32_0 : i32, i32, i32
  }
  func.func @transform_2(%arg0: i32) -> (i32, i32, i32) {
    %c0_i32 = arith.constant 0 : i32
    %c0_i32_0 = arith.constant 0 : i32
    %c0_i32_1 = arith.constant 0 : i32
    %c0_i32_2 = arith.constant 0 : i32
    return %c0_i32, %c0_i32_0, %c0_i32_1 : i32, i32, i32
  }
  func.func @transform_3(%arg0: i32) -> (i32, i32) {
    %c0_i32 = arith.constant 0 : i32
    %c0_i32_0 = arith.constant 0 : i32
    %c0_i32_1 = arith.constant 0 : i32
    return %c0_i32, %c0_i32_0 : i32, i32
  }
  func.func @transform_4(%arg0: i32) -> (i32, i32, i32) {
    %c0_i32 = arith.constant 0 : i32
    %c0_i32_0 = arith.constant 0 : i32
    %c0_i32_1 = arith.constant 0 : i32
    return %arg0, %c0_i32, %c0_i32_0 : i32, i32, i32
  }
}

module attributes {stable_mosaic.version = 11 : i64} {
  func.func @_dense_simple_kernel(%arg0: i32, %arg1: i32, %arg2: memref<2x256xbf16, #tpu.memory_space<vmem>>, %arg3: memref<256x256xbf16, #tpu.memory_space<vmem>>, %arg4: memref<1x256xf32, #tpu.memory_space<vmem>>, %arg5: memref<2x256xbf16, #tpu.memory_space<vmem>>) attributes {dimension_semantics = [#tpu.dimension_semantics<parallel>, #tpu.dimension_semantics<parallel>], iteration_bounds = array<i64: 1, 2>, scalar_prefetch = 0 : i64, scratch_operands = 0 : i64, tpu.core_type = #tpu.core_type<tc>, window_params = [{transform_indices = @transform_0, window_bounds = array<i64: 2, 256>}, {transform_indices = @transform_1, window_bounds = array<i64: 256, 256>}, {transform_indices = @transform_2, window_bounds = array<i64: 1, 256>}, {transform_indices = @transform_3, window_bounds = array<i64: 2, 256>}]} {
    %c0 = arith.constant 0 : index
    %c0_0 = arith.constant 0 : index
    %0 = vector.load %arg2[%c0, %c0_0] : memref<2x256xbf16, #tpu.memory_space<vmem>>, vector<2x256xbf16>
    %c0_1 = arith.constant 0 : index
    %c0_2 = arith.constant 0 : index
    %1 = vector.load %arg3[%c0_1, %c0_2] : memref<256x256xbf16, #tpu.memory_space<vmem>>, vector<256x256xbf16>
    %cst = arith.constant dense<0.000000e+00> : vector<2x256xf32>
    %2 = tpu.matmul %0, %1, %cst {dimension_numbers = #tpu.dot_dimension_numbers<[1], [0], [0], [1], [0, 0, 1, 1], [], []>} : vector<2x256xbf16>, vector<256x256xbf16>, vector<2x256xf32> -> vector<2x256xf32>
    %c0_3 = arith.constant 0 : index
    %c0_4 = arith.constant 0 : index
    %3 = vector.load %arg4[%c0_3, %c0_4] : memref<1x256xf32, #tpu.memory_space<vmem>>, vector<1x256xf32>
    %4 = vector.broadcast %3 : vector<1x256xf32> to vector<2x256xf32>
    %5 = arith.addf %2, %4 : vector<2x256xf32>
    %cst_5 = arith.constant 0.000000e+00 : f32
    %6 = vector.broadcast %cst_5 : f32 to vector<2x256xf32>
    %7 = arith.maximumf %5, %6 : vector<2x256xf32>
    %8 = arith.truncf %7 : vector<2x256xf32> to vector<2x256xbf16>
    %c0_6 = arith.constant 0 : index
    %c0_7 = arith.constant 0 : index
    %9 = vector.load %arg5[%c0_6, %c0_7] : memref<2x256xbf16, #tpu.memory_space<vmem>>, vector<2x256xbf16>
    tpu.vector_store %arg5[%c0_6, %c0_7], %8 {strides = array<i32>} : memref<2x256xbf16, #tpu.memory_space<vmem>>, vector<2x256xbf16>,
    return
  }
  func.func @transform_0(%arg0: i32, %arg1: i32) -> (i32, i32) {
    %c0_i32 = arith.constant 0 : i32
    %c0_i32_0 = arith.constant 0 : i32
    return %arg0, %c0_i32 : i32, i32
  }
  func.func @transform_1(%arg0: i32, %arg1: i32) -> (i32, i32) {
    %c0_i32 = arith.constant 0 : i32
    %c0_i32_0 = arith.constant 0 : i32
    return %c0_i32, %arg1 : i32, i32
  }
  func.func @transform_2(%arg0: i32, %arg1: i32) -> (i32, i32) {
    %c0_i32 = arith.constant 0 : i32
    %c0_i32_0 = arith.constant 0 : i32
    return %c0_i32, %arg1 : i32, i32
  }
  func.func @transform_3(%arg0: i32, %arg1: i32) -> (i32, i32) {
    %c0_i32 = arith.constant 0 : i32
    return %arg0, %arg1 : i32, i32
  }
}

module attributes {stable_mosaic.version = 11 : i64} {
  func.func @_dense_simple_kernel(%arg0: i32, %arg1: i32, %arg2: memref<2x512xbf16, #tpu.memory_space<vmem>>, %arg3: memref<512x128xbf16, #tpu.memory_space<vmem>>, %arg4: memref<1x128xf32, #tpu.memory_space<vmem>>, %arg5: memref<2x128xf32, #tpu.memory_space<vmem>>) attributes {dimension_semantics = [#tpu.dimension_semantics<parallel>, #tpu.dimension_semantics<parallel>], iteration_bounds = array<i64: 1, 1>, scalar_prefetch = 0 : i64, scratch_operands = 0 : i64, tpu.core_type = #tpu.core_type<tc>, window_params = [{transform_indices = @transform_0, window_bounds = array<i64: 2, 512>}, {transform_indices = @transform_1, window_bounds = array<i64: 512, 128>}, {transform_indices = @transform_2, window_bounds = array<i64: 1, 128>}, {transform_indices = @transform_3, window_bounds = array<i64: 2, 128>}]} {
    %c0 = arith.constant 0 : index
    %c0_0 = arith.constant 0 : index
    %0 = vector.load %arg2[%c0, %c0_0] : memref<2x512xbf16, #tpu.memory_space<vmem>>, vector<2x512xbf16>
    %c0_1 = arith.constant 0 : index
    %c0_2 = arith.constant 0 : index
    %1 = vector.load %arg3[%c0_1, %c0_2] : memref<512x128xbf16, #tpu.memory_space<vmem>>, vector<512x128xbf16>
    %cst = arith.constant dense<0.000000e+00> : vector<2x128xf32>
    %2 = tpu.matmul %0, %1, %cst {dimension_numbers = #tpu.dot_dimension_numbers<[1], [0], [0], [1], [0, 0, 1, 1], [], []>} : vector<2x512xbf16>, vector<512x128xbf16>, vector<2x128xf32> -> vector<2x128xf32>
    %c0_3 = arith.constant 0 : index
    %c0_4 = arith.constant 0 : index
    %3 = vector.load %arg4[%c0_3, %c0_4] : memref<1x128xf32, #tpu.memory_space<vmem>>, vector<1x128xf32>
    %4 = vector.broadcast %3 : vector<1x128xf32> to vector<2x128xf32>
    %5 = arith.addf %2, %4 : vector<2x128xf32>
    %c0_5 = arith.constant 0 : index
    %c0_6 = arith.constant 0 : index
    %6 = vector.load %arg5[%c0_5, %c0_6] : memref<2x128xf32, #tpu.memory_space<vmem>>, vector<2x128xf32>
    tpu.vector_store %arg5[%c0_5, %c0_6], %5 {strides = array<i32>} : memref<2x128xf32, #tpu.memory_space<vmem>>, vector<2x128xf32>,
    return
  }
  func.func @transform_0(%arg0: i32, %arg1: i32) -> (i32, i32) {
    %c0_i32 = arith.constant 0 : i32
    %c0_i32_0 = arith.constant 0 : i32
    return %arg0, %c0_i32 : i32, i32
  }
  func.func @transform_1(%arg0: i32, %arg1: i32) -> (i32, i32) {
    %c0_i32 = arith.constant 0 : i32
    %c0_i32_0 = arith.constant 0 : i32
    return %c0_i32, %arg1 : i32, i32
  }
  func.func @transform_2(%arg0: i32, %arg1: i32) -> (i32, i32) {
    %c0_i32 = arith.constant 0 : i32
    %c0_i32_0 = arith.constant 0 : i32
    return %c0_i32, %arg1 : i32, i32
  }
  func.func @transform_3(%arg0: i32, %arg1: i32) -> (i32, i32) {
    %c0_i32 = arith.constant 0 : i32
    return %arg0, %arg1 : i32, i32
  }
}

</mosaic_0001>

<bundles_post_ra>
// kernel: cnn_forward.6
= control target key start
LH: loop header
LB: loop body
LE: loop exit
PB: predicated region body
PF: predicated region fallthrough
CT: control target
= control target key end

     0   :  { %vm67_vm0 = vcmask 1045504   ;;  %vm109_vm1 = vcmask 785408   ;;  %s2157_s2 = inlined_call_operand.vmem [shape: bf16[3,96,128], index: 2, kind: input, shape index: {}]   ;;  %s2158_s0 = inlined_call_operand.vmem [shape: bf16[2,40,96], index: 0, kind: input, shape index: {}]   ;;  %s2159_s1 = inlined_call_operand.vmem [shape: bf16[2,40,96], index: 1, kind: input, shape index: {}]   ;;  %s2160_s3 = inlined_call_operand.vmem [shape: f32[1,128], index: 3, kind: input, shape index: {}]   ;;  %s2161_s4 = inlined_call_operand.vmem [shape: bf16[2,16,128], index: 4, kind: output, shape index: {}]  }
   0x1   :  { %v1724_v0 = vld [vmem:[%s2157_s2 + $0x30] sm:$0xff]   ;;  %v1725_v1 = vld [vmem:[%s2157_s2 + $0x38] sm:$0xff]   ;;  %v1726_v2 = vld [vmem:[%s2157_s2 + $0x40] sm:$0xff]  }
   0x2   :  { %1500 = vmatprep.subr.bf16.mxu0 %v1724_v0  ;;  %1532 = vmatprep.subr.bf16.mxu1 %v1724_v0  ;;  %v1823_v3 = vld [vmem:[%s2158_s0 + $0x4] sm:$0xf]  ;;  %v1828_v4 = vld [vmem:[%s2158_s0 + $0x8] sm:$0xf]  ;;  %v1833_v5 = vld [vmem:[%s2158_s0 + $0xc] sm:$0xf] }
   0x3   :  { %1501 = vmatpush3.bf16.msra.mxu0 %v1724_v0  ;;  %1533 = vmatpush3.bf16.msra.mxu1 %v1724_v0  ;;  %v39_v6 = vld [vmem:[%s2158_s0] sm:$0xc]  ;;  %v1840_v7 = vcombine.low %v1828_v4, %v1833_v5  ;;  %v1845_v8 = vld [vmem:[%s2158_s0 + $0x10] sm:$0xf]  ;;  %v1727_v9 = vld [vmem:[%s2157_s2 + $0x48] sm:$0xff]  }
   0x4   :  { %1502 = vmatprep.subr.bf16.mxu0 %v1725_v1  ;;  %1534 = vmatprep.subr.bf16.mxu1 %v1725_v1  ;;  %v1252_v10 = vcombine.low %v39_v6, %v1823_v3  ;;  %v1294_v11 = vcombine.low %v1833_v5, %v1845_v8  ;;  %v259_v12 = vld [vmem:[%s2159_s1] sm:$0xc]  ;;  %v1860_v14 = vld [vmem:[%s2159_s1 + $0x4] sm:$0xf]  ;;  %v1865_v15 = vld [vmem:[%s2159_s1 + $0x8] sm:$0xf] }
   0x5   :  { %v69_v13 = vrot.slane %v1840_v7, 2  ;;  %v1870_v17 = vld [vmem:[%s2159_s1 + $0xc] sm:$0xf]  ;;  %v1272_v18 = vcombine.low %v259_v12, %v1860_v14  ;;  %v1728_v20 = vld [vmem:[%s2157_s2 + $0x50] sm:$0xff]   ;;  %v1729_v26 = vld [vmem:[%s2157_s2 + $0x58] sm:$0xff]  }
   0x6   :  { %v68_v16 = vrot.slane %v1252_v10, 2  ;;  %v1273_v19 = vcombine.low %v1865_v15, %v1870_v17  ;;  %v1737_v24 = vld [vmem:[%s2158_s0 + $0x10] ss:$0 sps:$4 sm:$0x33]   ;;  %v1733_v30 = vld [vmem:[%s2157_s2] sm:$0xff]   ;;  %v1739_v34 = vld [vmem:[%s2157_s2 + $0x8] sm:$0xff]  }
   0x7   :  { %1503 = vmatpush3.bf16.msra.mxu0 %v1725_v1  ;;  %1535 = vmatpush3.bf16.msra.mxu1 %v1725_v1  ;;  %v277_v22 = vrot.slane %v1272_v18, 2  ;;  %v1738_v25 = vld [vmem:[%s2159_s1 + $0x10] ss:$0 sps:$4 sm:$0x33]   ;;  %v71_v28 = vrot.slane %v1737_v24, 2  ;;  %v1745_v36 = vld [vmem:[%s2159_s1] sm:$0xff]   ;;  %v1293_v1 = vcombine.low %v1823_v3, %v1828_v4 }
   0x8   :  { %1504 = vmatprep.subr.bf16.mxu0 %v1726_v2  ;;  %1536 = vmatprep.subr.bf16.mxu1 %v1726_v2  ;;  %v70_v21 = vsel %vm67_vm0, %v68_v16, %v69_v13  ;;  %v278_v23 = vrot.slane %v1273_v19, 2  ;;  %v280_v29 = vrot.slane %v1738_v25, 2  ;;  %v19_v31 = vld [vmem:[%s2158_s0] sm:$0xf]  ;;  %v1740_v37 = vld [vmem:[%s2157_s2 + $0x10] sm:$0xff]   ;;  %v1741_v38 = vld [vmem:[%s2157_s2 + $0x18] sm:$0xff]  }
   0x9   :  { %1512 = vmatprep.mubr.msk.bf16.mxu0 %vm109_vm1, %v70_v21  ;;  %v72_v32 = vsel %vm67_vm0, %v69_v13, %v71_v28  ;;  %v1263_v35 = vcombine.low %v19_v31, %v1823_v3  ;;  %v1919_v39 = vld [vmem:[%s2158_s0 + $0x18] sm:$0xf]  ;;  %v1924_v40 = vld [vmem:[%s2158_s0 + $0x1c] sm:$0xf]  ;;  %v1929_v41 = vld [vmem:[%s2158_s0 + $0x20] sm:$0xf] }
   0xa   :  { %v279_v27 = vsel %vm67_vm0, %v277_v22, %v278_v23  ;;  %v281_v33 = vsel %vm67_vm0, %v278_v23, %v280_v29  ;;  %v1318_v42 = vld [vmem:[%s2158_s0 + $0x14] sm:$0xc]  ;;  %v1937_v44 = vcombine.low %v1924_v40, %v1929_v41  ;;  %v1942_v45 = vld [vmem:[%s2159_s1 + $0x1c] sm:$0xf]  ;;  %v1948_v48 = vld [vmem:[%s2159_s1 + $0x20] sm:$0xf] }
   0xb   :  { %1505 = vmatpush3.bf16.msra.mxu0 %v1726_v2  ;;  %1537 = vmatpush3.bf16.msra.mxu1 %v1726_v2  ;;  %v1332_v43 = vcombine.low %v1318_v42, %v1919_v39  ;;  %v1953_v49 = vld [vmem:[%s2159_s1 + $0x24] sm:$0xf]  ;;  %v1358_v51 = vcombine.low %v1942_v45, %v1948_v48  ;;  %v1743_v59 = vld [vmem:[%s2157_s2 + $0x28] sm:$0xff]   ;;  %v1303_v2 = vcombine.low %v1860_v14, %v1865_v15  ;;  %v1749_v3 = vld [vmem:[%s2157_s2 + $0x70] sm:$0xff]  }
   0xc   :  { %1506 = vmatprep.subr.bf16.mxu0 %v1727_v9  ;;  %1538 = vmatprep.subr.bf16.mxu1 %v1727_v9  ;;  %v681_v47 = vrot.slane %v1937_v44, 2  ;;  %v1742_v50 = vld [vmem:[%s2157_s2 + $0x20] sm:$0xff]   ;;  %v1391_v52 = vcombine.low %v1948_v48, %v1953_v49  ;;  %v1747_v63 = vld [vmem:[%s2159_s1 + $0x8] sm:$0xff]   ;;  %v1352_v10 = vld [vmem:[%s2159_s1 + $0x14] sm:$0xc] }
   0xd   :  { %1544 = vmatprep.mubr.msk.bf16.mxu1 %vm109_vm1, %v279_v27  ;;  %v680_v46 = vrot.slane %v1332_v43, 2  ;;  %v1767_v53 = vld [vmem:[%s2158_s0 + $0x24] ss:$0 sps:$4 sm:$0x33]   ;;  %v1971_v56 = vrot.slane %v1358_v51, 2  ;;  %v1748_v0 = vld [vmem:[%s2157_s2 + $0x68] sm:$0xff]  }
   0xe   :  { %v1768_v55 = vld [vmem:[%s2159_s1 + $0x24] ss:$0 sps:$4 sm:$0x33]   ;;  %v683_v57 = vrot.slane %v1767_v53, 2  ;;  %v2023_v12 = vld [vmem:[%s2159_s1 + $0x18] sm:$0xf] }
   0xf   :  { %1507 = vmatpush3.bf16.msra.mxu0 %v1727_v9  ;;  %1539 = vmatpush3.bf16.msra.mxu1 %v1727_v9  ;;  %v1966_v54 = vsel %vm67_vm0, %v680_v46, %v681_v47  ;;  %v891_v58 = vrot.slane %v1768_v55, 2  ;;  %v1746_v62 = vld [vmem:[%s2157_s2 + $0x60] sm:$0xff]   ;;  %v1752_v13 = vld [vmem:[%s2157_s2 + $0x88] sm:$0xff]   ;;  %v1357_v14 = vcombine.low %v1352_v10, %v2023_v12  ;;  %v515_v15 = vld [vmem:[%s2159_s1 + $0x10] sm:$0xf] }
  0x10   :  { %1508 = vmatprep.subr.bf16.mxu0 %v1728_v20  ;;  %1540 = vmatprep.subr.bf16.mxu1 %v1728_v20  ;;  %v1977_v60 = vsel %vm67_vm0, %v681_v47, %v683_v57  ;;  %v2002_v6 = vld [vmem:[%s2158_s0 + $0x24] sm:$0xf]  ;;  %v1755_v16 = vld [vmem:[%s2157_s2 + $0x30] sm:$0xff]   ;;  %v1304_v18 = vcombine.low %v1870_v17, %v515_v15  ;;  %v1758_v5 = vld [vmem:[%s2157_s2 + $0x48] sm:$0xff]  }
  0x11   :  { %v1981_v61 = vsel %vm67_vm0, %v1971_v56, %v891_v58  ;;  %v1380_v4 = vcombine.low %v1929_v41, %v2002_v6  ;;  %v1751_v9 = vld [vmem:[%s2157_s2 + $0x80] sm:$0xff]   ;;  %v888_v19 = vrot.slane %v1357_v14, 2  ;;  %v1759_v8 = vld [vmem:[%s2157_s2 + $0x50] sm:$0xff]   ;;  %v1769_v24 = vld [vmem:[%s2157_s2 + $0x8] sm:$0xff]  }
  0x12   :  { %v1757_v17 = vld [vmem:[%s2157_s2 + $0x40] sm:$0xff]   ;;  %v1310_v23 = vld [vmem:[%s2158_s0 + $0x14] sm:$0xf]  ;;  %v1771_v28 = vld [vmem:[%s2157_s2 + $0x18] sm:$0xff]  }
  0x13   :  { %1509 = vmatpush3.bf16.msra.mxu0 %v1728_v20  ;;  %1541 = vmatpush3.bf16.msra.mxu1 %v1728_v20  ;;  %v1756_v20 = vld [vmem:[%s2157_s2 + $0x38] sm:$0xff]   ;;  %v890_v21 = vsel %vm67_vm0, %v888_v19, %v1971_v56  ;;  %v1763_v22 = vld [vmem:[%s2157_s2] sm:$0xff]   ;;  %v1343_v25 = vcombine.low %v1310_v23, %v1919_v39  ;;  %v1770_v27 = vld [vmem:[%s2157_s2 + $0x10] sm:$0xff]  }
  0x14   :  { %1510 = vmatprep.subr.bf16.mxu0 %v1729_v26  ;;  %1542 = vmatprep.subr.bf16.mxu1 %v1729_v26  ;;  %v1772_v29 = vld [vmem:[%s2157_s2 + $0x20] sm:$0xff]  }
  0x15   :  { %v1776_v31 = vld [vmem:[%s2157_s2 + $0x60] sm:$0xff]  }
  0x16   :  { %v1307_v42 = vld [vmem:[%s2160_s3] ss:$0 sm:$0xff] }
  0x17   :  { %1511 = vmatpush3.bf16.msra.mxu0 %v1729_v26  ;;  %1543 = vmatpush3.bf16.msra.mxu1 %v1729_v26  ;;  %v1775_v26 = vld [vmem:[%s2159_s1 + $0x14] sm:$0xff]  }
  0x18   :  { %1516 = vmatprep.subr.bf16.mxu0 %v1733_v30  ;;  %1548 = vmatprep.subr.bf16.mxu1 %v1733_v30 }
  0x1a   :  { %1513 = vmatmul.mubr.msk.bf16.vlgmr.msra.gmra.mrb[0].mxu0 %vm109_vm1, %v72_v32  ;;  %1545 = vmatmul.mubr.msk.bf16.vlgmr.msra.gmra.mrb[0].mxu1 %vm109_vm1, %v281_v33  ;;  %v1777_v32 = vld [vmem:[%s2159_s1 + $0x1c] sm:$0xff]   ;;  %v1778_v33 = vld [vmem:[%s2157_s2 + $0x68] sm:$0xff]  }
  0x1b   :  { %1517 = vmatpush3.bf16.msra.mxu0 %v1733_v30  ;;  %1549 = vmatpush3.bf16.msra.mxu1 %v1733_v30  ;;  %v1773_v30 = vld [vmem:[%s2157_s2 + $0x28] sm:$0xff]  }
  0x1c   :  { %1518 = vmatprep.subr.bf16.mxu0 %v1739_v34  ;;  %1550 = vmatprep.subr.bf16.mxu1 %v1739_v34 }
  0x1d   :  { %1528 = vmatprep.mubr.msk.bf16.mxu0 %vm109_vm1, %v1263_v35  ;;  %1560 = vmatprep.mubr.msk.bf16.mxu1 %vm109_vm1, %v1745_v36  ;;  %v1390_v35 = vcombine.low %v2023_v12, %v1942_v45  ;;  %v1779_v36 = vld [vmem:[%s2157_s2 + $0x70] sm:$0xff]  }
  0x1f   :  { %1519 = vmatpush3.bf16.msra.mxu0 %v1739_v34  ;;  %1551 = vmatpush3.bf16.msra.mxu1 %v1739_v34  ;;  %v1379_v34 = vcombine.low %v1919_v39, %v1924_v40  ;;  %v1782_v39 = vld [vmem:[%s2157_s2 + $0x88] sm:$0xff]  }
  0x20   :  { %1520 = vmatprep.subr.bf16.mxu0 %v1740_v37  ;;  %1552 = vmatprep.subr.bf16.mxu1 %v1740_v37 }
  0x23   :  { %1521 = vmatpush3.bf16.msra.mxu0 %v1740_v37  ;;  %1553 = vmatpush3.bf16.msra.mxu1 %v1740_v37  ;;  %v1780_v37 = vld [vmem:[%s2157_s2 + $0x78] sm:$0xff]  }
  0x24   :  { %1522 = vmatprep.subr.bf16.mxu0 %v1741_v38  ;;  %1554 = vmatprep.subr.bf16.mxu1 %v1741_v38 }
  0x27   :  { %1523 = vmatpush3.bf16.msra.mxu0 %v1741_v38  ;;  %1555 = vmatpush3.bf16.msra.mxu1 %v1741_v38  ;;  %v1781_v38 = vld [vmem:[%s2157_s2 + $0x80] sm:$0xff]  }
  0x28   :  { %1524 = vmatprep.subr.bf16.mxu0 %v1742_v50  ;;  %1556 = vmatprep.subr.bf16.mxu1 %v1742_v50 }
  0x2b   :  { %1525 = vmatpush3.bf16.msra.mxu0 %v1742_v50  ;;  %1557 = vmatpush3.bf16.msra.mxu1 %v1742_v50 }
  0x2c   :  { %1526 = vmatprep.subr.bf16.mxu0 %v1743_v59  ;;  %1558 = vmatprep.subr.bf16.mxu1 %v1743_v59 }
  0x2f   :  { %1527 = vmatpush3.bf16.msra.mxu0 %v1743_v59  ;;  %1559 = vmatpush3.bf16.msra.mxu1 %v1743_v59 }
  0x30   :  { %1564 = vmatprep.subr.bf16.mxu0 %v1746_v62  ;;  %1580 = vmatprep.subr.bf16.mxu1 %v1746_v62 }
  0x32   :  { %1529 = vmatmul.mubr.msk.bf16.vlgmr.msra.gmra.mrb[0].mxu0 %vm109_vm1, %v1840_v7  ;;  %1561 = vmatmul.mubr.msk.bf16.vlgmr.msra.gmra.mrb[0].mxu1 %vm109_vm1, %v1747_v63  ;;  %v1750_v7 = vld [vmem:[%s2157_s2 + $0x78] sm:$0xff]  }
  0x33   :  { %1565 = vmatpush3.bf16.msra.mxu0 %v1746_v62  ;;  %1581 = vmatpush3.bf16.msra.mxu1 %v1746_v62 }
  0x34   :  { %1566 = vmatprep.subr.bf16.mxu0 %v1748_v0  ;;  %1582 = vmatprep.subr.bf16.mxu1 %v1748_v0 }
  0x35   :  { %1576 = vmatprep.mubr.msk.bf16.mxu0 %vm109_vm1, %v1293_v1  ;;  %1592 = vmatprep.mubr.msk.bf16.mxu1 %vm109_vm1, %v1303_v2 }
  0x37   :  { %1567 = vmatpush3.bf16.msra.mxu0 %v1748_v0  ;;  %1583 = vmatpush3.bf16.msra.mxu1 %v1748_v0 }
  0x38   :  { %1568 = vmatprep.subr.bf16.mxu0 %v1749_v3  ;;  %1584 = vmatprep.subr.bf16.mxu1 %v1749_v3 }
  0x3b   :  { %1569 = vmatpush3.bf16.msra.mxu0 %v1749_v3  ;;  %1585 = vmatpush3.bf16.msra.mxu1 %v1749_v3 }
  0x3c   :  { %1570 = vmatprep.subr.bf16.mxu0 %v1750_v7  ;;  %1586 = vmatprep.subr.bf16.mxu1 %v1750_v7 }
  0x3f   :  { %1571 = vmatpush3.bf16.msra.mxu0 %v1750_v7  ;;  %1587 = vmatpush3.bf16.msra.mxu1 %v1750_v7 }
  0x40   :  { %1572 = vmatprep.subr.bf16.mxu0 %v1751_v9  ;;  %1588 = vmatprep.subr.bf16.mxu1 %v1751_v9 }
  0x43   :  { %1573 = vmatpush3.bf16.msra.mxu0 %v1751_v9  ;;  %1589 = vmatpush3.bf16.msra.mxu1 %v1751_v9 }
  0x44   :  { %1574 = vmatprep.subr.bf16.mxu0 %v1752_v13  ;;  %1590 = vmatprep.subr.bf16.mxu1 %v1752_v13 }
  0x47   :  { %1575 = vmatpush3.bf16.msra.mxu0 %v1752_v13  ;;  %1591 = vmatpush3.bf16.msra.mxu1 %v1752_v13 }
  0x48   :  { %1596 = vmatprep.subr.bf16.mxu0 %v1755_v16  ;;  %1628 = vmatprep.subr.bf16.mxu1 %v1755_v16 }
  0x4a   :  { %1577 = vmatmul.mubr.msk.bf16.vlgmr.msra.gmra.mrb[0].mxu0 %vm109_vm1, %v1294_v11  ;;  %1593 = vmatmul.mubr.msk.bf16.vlgmr.msra.gmra.mrb[0].mxu1 %vm109_vm1, %v1304_v18  ;;  %v1760_v11 = vld [vmem:[%s2157_s2 + $0x58] sm:$0xff]  }
  0x4b   :  { %1597 = vmatpush3.bf16.msra.mxu0 %v1755_v16  ;;  %1629 = vmatpush3.bf16.msra.mxu1 %v1755_v16 }
  0x4c   :  { %1598 = vmatprep.subr.bf16.mxu0 %v1756_v20  ;;  %1630 = vmatprep.subr.bf16.mxu1 %v1756_v20 }
  0x4d   :  { %1608 = vmatprep.mubr.msk.bf16.mxu0 %vm109_vm1, %v1966_v54  ;;  %1640 = vmatprep.mubr.msk.bf16.mxu1 %vm109_vm1, %v890_v21 }
  0x4f   :  { %1599 = vmatpush3.bf16.msra.mxu0 %v1756_v20  ;;  %1631 = vmatpush3.bf16.msra.mxu1 %v1756_v20 }
  0x50   :  { %1600 = vmatprep.subr.bf16.mxu0 %v1757_v17  ;;  %1632 = vmatprep.subr.bf16.mxu1 %v1757_v17 }
  0x53   :  { %1601 = vmatpush3.bf16.msra.mxu0 %v1757_v17  ;;  %1633 = vmatpush3.bf16.msra.mxu1 %v1757_v17 }
  0x54   :  { %1602 = vmatprep.subr.bf16.mxu0 %v1758_v5  ;;  %1634 = vmatprep.subr.bf16.mxu1 %v1758_v5 }
  0x57   :  { %1603 = vmatpush3.bf16.msra.mxu0 %v1758_v5  ;;  %1635 = vmatpush3.bf16.msra.mxu1 %v1758_v5 }
  0x58   :  { %1604 = vmatprep.subr.bf16.mxu0 %v1759_v8  ;;  %1636 = vmatprep.subr.bf16.mxu1 %v1759_v8 }
  0x5b   :  { %1605 = vmatpush3.bf16.msra.mxu0 %v1759_v8  ;;  %1637 = vmatpush3.bf16.msra.mxu1 %v1759_v8 }
  0x5c   :  { %1606 = vmatprep.subr.bf16.mxu0 %v1760_v11  ;;  %1638 = vmatprep.subr.bf16.mxu1 %v1760_v11 }
  0x5f   :  { %1607 = vmatpush3.bf16.msra.mxu0 %v1760_v11  ;;  %1639 = vmatpush3.bf16.msra.mxu1 %v1760_v11 }
  0x60   :  { %1612 = vmatprep.subr.bf16.mxu0 %v1763_v22  ;;  %1644 = vmatprep.subr.bf16.mxu1 %v1763_v22 }
  0x62   :  { %1609 = vmatmul.mubr.msk.bf16.vlgmr.msra.gmra.mrb[4].mxu0 %vm109_vm1, %v1977_v60  ;;  %1641 = vmatmul.mubr.msk.bf16.vlgmr.msra.gmra.mrb[4].mxu1 %vm109_vm1, %v1981_v61 }
  0x63   :  { %1613 = vmatpush3.bf16.msra.mxu0 %v1763_v22  ;;  %1645 = vmatpush3.bf16.msra.mxu1 %v1763_v22 }
  0x64   :  { %1614 = vmatprep.subr.bf16.mxu0 %v1769_v24  ;;  %1646 = vmatprep.subr.bf16.mxu1 %v1769_v24 }
  0x65   :  { %1624 = vmatprep.mubr.msk.bf16.mxu0 %vm109_vm1, %v1343_v25  ;;  %1656 = vmatprep.mubr.msk.bf16.mxu1 %vm109_vm1, %v1775_v26 }
  0x67   :  { %1615 = vmatpush3.bf16.msra.mxu0 %v1769_v24  ;;  %1647 = vmatpush3.bf16.msra.mxu1 %v1769_v24 }
  0x68   :  { %1616 = vmatprep.subr.bf16.mxu0 %v1770_v27  ;;  %1648 = vmatprep.subr.bf16.mxu1 %v1770_v27 }
  0x6b   :  { %1617 = vmatpush3.bf16.msra.mxu0 %v1770_v27  ;;  %1649 = vmatpush3.bf16.msra.mxu1 %v1770_v27 }
  0x6c   :  { %1618 = vmatprep.subr.bf16.mxu0 %v1771_v28  ;;  %1650 = vmatprep.subr.bf16.mxu1 %v1771_v28 }
  0x6f   :  { %1619 = vmatpush3.bf16.msra.mxu0 %v1771_v28  ;;  %1651 = vmatpush3.bf16.msra.mxu1 %v1771_v28 }
  0x70   :  { %1620 = vmatprep.subr.bf16.mxu0 %v1772_v29  ;;  %1652 = vmatprep.subr.bf16.mxu1 %v1772_v29 }
  0x73   :  { %1621 = vmatpush3.bf16.msra.mxu0 %v1772_v29  ;;  %1653 = vmatpush3.bf16.msra.mxu1 %v1772_v29 }
  0x74   :  { %1622 = vmatprep.subr.bf16.mxu0 %v1773_v30  ;;  %1654 = vmatprep.subr.bf16.mxu1 %v1773_v30 }
  0x77   :  { %1623 = vmatpush3.bf16.msra.mxu0 %v1773_v30  ;;  %1655 = vmatpush3.bf16.msra.mxu1 %v1773_v30 }
  0x78   :  { %1660 = vmatprep.subr.bf16.mxu0 %v1776_v31  ;;  %1676 = vmatprep.subr.bf16.mxu1 %v1776_v31 }
  0x7a   :  { %1625 = vmatmul.mubr.msk.bf16.vlgmr.msra.gmra.mrb[4].mxu0 %vm109_vm1, %v1937_v44  ;;  %1657 = vmatmul.mubr.msk.bf16.vlgmr.msra.gmra.mrb[4].mxu1 %vm109_vm1, %v1777_v32 }
  0x7b   :  { %1661 = vmatpush3.bf16.msra.mxu0 %v1776_v31  ;;  %1677 = vmatpush3.bf16.msra.mxu1 %v1776_v31 }
  0x7c   :  { %1662 = vmatprep.subr.bf16.mxu0 %v1778_v33  ;;  %1678 = vmatprep.subr.bf16.mxu1 %v1778_v33 }
  0x7d   :  { %1672 = vmatprep.mubr.msk.bf16.mxu0 %vm109_vm1, %v1379_v34  ;;  %1688 = vmatprep.mubr.msk.bf16.mxu1 %vm109_vm1, %v1390_v35 }
  0x7f   :  { %1663 = vmatpush3.bf16.msra.mxu0 %v1778_v33  ;;  %1679 = vmatpush3.bf16.msra.mxu1 %v1778_v33 }
  0x80   :  { %1664 = vmatprep.subr.bf16.mxu0 %v1779_v36  ;;  %1680 = vmatprep.subr.bf16.mxu1 %v1779_v36 }
  0x83   :  { %1665 = vmatpush3.bf16.msra.mxu0 %v1779_v36  ;;  %1681 = vmatpush3.bf16.msra.mxu1 %v1779_v36 }
  0x84   :  { %1666 = vmatprep.subr.bf16.mxu0 %v1780_v37  ;;  %1682 = vmatprep.subr.bf16.mxu1 %v1780_v37 }
  0x87   :  { %1667 = vmatpush3.bf16.msra.mxu0 %v1780_v37  ;;  %1683 = vmatpush3.bf16.msra.mxu1 %v1780_v37 }
  0x88   :  { %1668 = vmatprep.subr.bf16.mxu0 %v1781_v38  ;;  %1684 = vmatprep.subr.bf16.mxu1 %v1781_v38 }
  0x8b   :  { %1669 = vmatpush3.bf16.msra.mxu0 %v1781_v38  ;;  %1685 = vmatpush3.bf16.msra.mxu1 %v1781_v38 }
  0x8c   :  { %1670 = vmatprep.subr.bf16.mxu0 %v1782_v39  ;;  %1686 = vmatprep.subr.bf16.mxu1 %v1782_v39 }
  0x8f   :  { %1671 = vmatpush3.bf16.msra.mxu0 %v1782_v39  ;;  %1687 = vmatpush3.bf16.msra.mxu1 %v1782_v39 }
  0x92   :  { %1673 = vmatmul.mubr.msk.bf16.vlgmr.msra.gmra.mrb[4].mxu0 %vm109_vm1, %v1380_v4  ;;  %1689 = vmatmul.mubr.msk.bf16.vlgmr.msra.gmra.mrb[4].mxu1 %vm109_vm1, %v1391_v52 }
 0x11d   :  { %v1578_v40 = vpop.f32.mrb[0].mxu0  ;;  %v1594_v43 = vpop.f32.mrb[0].mxu1 }
 0x11e   :  { %v581_v44 = vmax.f32 %v1578_v40, %v1594_v43  ;;  %v496_v45 = vpop.f32.mrb[1].mxu0  ;;  %v560_v46 = vpop.f32.mrb[1].mxu1 }
 0x11f   :  { %v579_v47 = vmax.f32 %v496_v45, %v560_v46  ;;  %v1579_v50 = vpop.f32.mrb[2].mxu0  ;;  %v1595_v51 = vpop.f32.mrb[2].mxu1 }
 0x120   :  { %v591_v41 = vadd.f32 %v1307_v42, %v581_v44  ;;  %v582_v53 = vmax.f32 %v1579_v50, %v1595_v51  ;;  %v499_v54 = vpop.f32.mrb[3].mxu0  ;;  %v563_v55 = vpop.f32.mrb[3].mxu1 }
 0x121   :  { %v589_v56 = vadd.f32 %v1307_v42, %v579_v47  ;;  %v580_v48 = vmax.f32 %v499_v54, %v563_v55 }
 0x122   :  { %v595_v49 = vmax.f32 %v591_v41, 0.0  ;;  %v592_v52 = vadd.f32 %v1307_v42, %v582_v53 }
 0x123   :  { %v593_v57 = vmax.f32 %v589_v56, 0.0  ;;  %v590_v58 = vadd.f32 %v1307_v42, %v580_v48 }
 0x124   :  { %v615_v59 = vrot.slane %v595_v49, 4  ;;  %v596_v60 = vmax.f32 %v592_v52, 0.0 }
 0x125   :  { %v598_v61 = vrot.slane %v593_v57, 4  ;;  %v594_v62 = vmax.f32 %v590_v58, 0.0 }
 0x126   :  { %v617_v63 = vmax.f32 %v595_v49, %v615_v59  ;;  %v621_v0 = vrot.slane %v596_v60, 4 }
 0x127   :  { %v600_v1 = vmax.f32 %v593_v57, %v598_v61  ;;  %v604_v2 = vrot.slane %v594_v62, 4 }
 0x128   :  { %v618_v6 = vpack.c.bf16 %v617_v63, %v617_v63  ;;  %v623_v3 = vmax.f32 %v596_v60, %v621_v0 }
 0x129   :  { %v601_v4 = vpack.c.bf16 %v600_v1, %v600_v1  ;;  %v606_v7 = vmax.f32 %v594_v62, %v604_v2 }
 0x12a   :  { %619 = vst [vmem:[%s2161_s4 + $0x4] sm:$0x3] %v618_v6  ;;  %v1401_v9 = vpack.c.bf16 %v623_v3, %v623_v3 }
 0x12b   :  { %602 = vst [vmem:[%s2161_s4] sm:$0x3] %v601_v4  ;;  %v1400_v10 = vpack.c.bf16 %v606_v7, %v606_v7 }
 0x12c   :  { %v628_v12 = vrot.slane %v1401_v9, 6 }
 0x12d   :  { %v611_v13 = vrot.slane %v1400_v10, 6 }
 0x12e   :  { %630 = vst [vmem:[%s2161_s4 + $0x4] sm:$0xc] %v628_v12 }
 0x12f   :  { %613 = vst [vmem:[%s2161_s4] sm:$0xc] %v611_v13 }
 0x165   :  { %v1674_v14 = vpop.f32.mrb[4].mxu0  ;;  %v1690_v15 = vpop.f32.mrb[4].mxu1 }
 0x166   :  { %v1191_v16 = vmax.f32 %v1674_v14, %v1690_v15  ;;  %v1106_v18 = vpop.f32.mrb[5].mxu0  ;;  %v1170_v19 = vpop.f32.mrb[5].mxu1 }
 0x167   :  { %v1189_v20 = vmax.f32 %v1106_v18, %v1170_v19  ;;  %v1675_v21 = vpop.f32.mrb[6].mxu0  ;;  %v1691_v17 = vpop.f32.mrb[6].mxu1 }
 0x168   :  { %v1195_v5 = vadd.f32 %v1307_v42, %v1191_v16  ;;  %v1192_v8 = vmax.f32 %v1675_v21, %v1691_v17  ;;  %v1109_v11 = vpop.f32.mrb[7].mxu0  ;;  %v1173_v22 = vpop.f32.mrb[7].mxu1 }
 0x169   :  { %v1193_v23 = vadd.f32 %v1307_v42, %v1189_v20  ;;  %v1190_v24 = vmax.f32 %v1109_v11, %v1173_v22 }
 0x16a   :  { %v1199_v25 = vmax.f32 %v1195_v5, 0.0  ;;  %v1196_v26 = vadd.f32 %v1307_v42, %v1192_v8 }
 0x16b   :  { %v1197_v27 = vmax.f32 %v1193_v23, 0.0  ;;  %v1194_v28 = vadd.f32 %v1307_v42, %v1190_v24 }
 0x16c   :  { %v1220_v29 = vrot.slane %v1199_v25, 4  ;;  %v1200_v30 = vmax.f32 %v1196_v26, 0.0 }
 0x16d   :  { %v1202_v31 = vrot.slane %v1197_v27, 4  ;;  %v1198_v32 = vmax.f32 %v1194_v28, 0.0 }
 0x16e   :  { %v1222_v33 = vmax.f32 %v1199_v25, %v1220_v29  ;;  %v1226_v34 = vrot.slane %v1200_v30, 4 }
 0x16f   :  { %v1204_v35 = vmax.f32 %v1197_v27, %v1202_v31  ;;  %v1209_v36 = vrot.slane %v1198_v32, 4 }
 0x170   :  { %v1223_v37 = vpack.c.bf16 %v1222_v33, %v1222_v33  ;;  %v1228_v38 = vmax.f32 %v1200_v30, %v1226_v34 }
 0x171   :  { %v1205_v39 = vpack.c.bf16 %v1204_v35, %v1204_v35  ;;  %v1211_v40 = vmax.f32 %v1198_v32, %v1209_v36 }
 0x172   :  { %1397 = vst [vmem:[%s2161_s4 + $0xc] sm:$0x3] %v1223_v37  ;;  %v1403_v43 = vpack.c.bf16 %v1228_v38, %v1228_v38 }
 0x173   :  { %1394 = vst [vmem:[%s2161_s4 + $0x8] sm:$0x3] %v1205_v39  ;;  %v1402_v42 = vpack.c.bf16 %v1211_v40, %v1211_v40 }
 0x174   :  { %v1233_v44 = vrot.slane %v1403_v43, 6 }
 0x175   :  { %v1216_v45 = vrot.slane %v1402_v42, 6 }
 0x176   :  { %1399 = vst [vmem:[%s2161_s4 + $0xc] sm:$0xc] %v1233_v44 }
 0x177   :  { %1396 = vst [vmem:[%s2161_s4 + $0x8] sm:$0xc] %v1216_v45 }

// kernel: cnn_forward.7
= control target key start
LH: loop header
LB: loop body
LE: loop exit
PB: predicated region body
PF: predicated region fallthrough
CT: control target
= control target key end

     0   :  { %v1425_v0 = vmov 0.0   ;;  %vm1426_vm0 = vmmov 0   ;;  %vm90_vm1 = vcmask 785408   ;;  %v1427_v61 = vmov 1983009808   ;;  %s1720_s2 = inlined_call_operand.vmem [shape: bf16[3,96,128], index: 2, kind: input, shape index: {}]   ;;  %s1721_s0 = inlined_call_operand.vmem [shape: bf16[2,12,96], index: 0, kind: input, shape index: {}]   ;;  %s1722_s1 = inlined_call_operand.vmem [shape: bf16[2,12,96], index: 1, kind: input, shape index: {}]   ;;  %s1723_s3 = inlined_call_operand.vmem [shape: f32[1,128], index: 3, kind: input, shape index: {}]   ;;  %s1724_s4 = inlined_call_operand.vmem [shape: bf16[2,4,128], index: 4, kind: output, shape index: {}]  }
   0x1   :  { %1154 = vmatprep.subr.bf16.mxu0 %v1425_v0  ;;  %1186 = vmatprep.subr.bf16.mxu1 %v1425_v0  ;;  %v1381_v1 = vld [vmem:[%s1720_s2 + $0x30] sm:$0xff]   ;;  %v1382_v2 = vld [vmem:[%s1720_s2 + $0x38] sm:$0xff]   ;;  %v1383_v3 = vld [vmem:[%s1720_s2 + $0x40] sm:$0xff]   ;;  %v477_v62 = vunpack.c.l.s4 %v1427_v61  ;;  %v479_v63 = vlaneseq }
   0x2   :  { %1166 = vmatprep.mubr.msk.bf16.mxu0 %vm1426_vm0, %v1425_v0  ;;  %1198 = vmatprep.mubr.msk.bf16.mxu1 %vm1426_vm0, %v1425_v0  ;;  %v1384_v4 = vld [vmem:[%s1720_s2 + $0x48] sm:$0xff]   ;;  %v1385_v5 = vld [vmem:[%s1720_s2 + $0x50] sm:$0xff]   ;;  %v1387_v6 = vld [vmem:[%s1721_s0] sm:$0x1e]  }
   0x3   :  { %1155 = vmatpush3.bf16.msra.mxu0 %v1381_v1  ;;  %1187 = vmatpush3.bf16.msra.mxu1 %v1381_v1  ;;  %v1389_v7 = vld [vmem:[%s1722_s1] sm:$0x1e]   ;;  %v1386_v8 = vld [vmem:[%s1720_s2 + $0x58] sm:$0xff]   ;;  %v53_v9 = vrot.slane %v1387_v6, 1  ;;  %v1390_v12 = vld [vmem:[%s1720_s2 + $0x8] sm:$0xff]  }
   0x4   :  { %1156 = vmatprep.subr.bf16.mxu0 %v1425_v0  ;;  %1188 = vmatprep.subr.bf16.mxu1 %v1425_v0  ;;  %v220_v10 = vrot.slane %v1389_v7, 1  ;;  %v1388_v11 = vld [vmem:[%s1720_s2] sm:$0xff]   ;;  %v1391_v13 = vld [vmem:[%s1720_s2 + $0x10] sm:$0xff]   ;;  %v1392_v14 = vld [vmem:[%s1720_s2 + $0x18] sm:$0xff]  }
   0x5   :  { %v1393_v15 = vld [vmem:[%s1720_s2 + $0x20] sm:$0xff]   ;;  %v1394_v16 = vld [vmem:[%s1720_s2 + $0x28] sm:$0xff]   ;;  %v1397_v21 = vld [vmem:[%s1720_s2 + $0x70] sm:$0xff]  }
   0x6   :  { %v19_v17 = vld [vmem:[%s1721_s0] sm:$0xf]  ;;  %v1396_v20 = vld [vmem:[%s1720_s2 + $0x68] sm:$0xff]   ;;  %v1398_v22 = vld [vmem:[%s1720_s2 + $0x78] sm:$0xff]  }
   0x7   :  { %1157 = vmatpush3.bf16.msra.mxu0 %v1382_v2  ;;  %1189 = vmatpush3.bf16.msra.mxu1 %v1382_v2  ;;  %v32_v18 = vld [vmem:[%s1722_s1] sm:$0xf]  ;;  %v1400_v26 = vld [vmem:[%s1720_s2 + $0x88] sm:$0xff]   ;;  %v1403_v29 = vld [vmem:[%s1720_s2 + $0x30] sm:$0xff]  }
   0x8   :  { %1158 = vmatprep.subr.bf16.mxu0 %v1425_v0  ;;  %1190 = vmatprep.subr.bf16.mxu1 %v1425_v0  ;;  %v1395_v19 = vld [vmem:[%s1720_s2 + $0x60] sm:$0xff]   ;;  %v1404_v30 = vld [vmem:[%s1720_s2 + $0x38] sm:$0xff]   ;;  %v1406_v32 = vld [vmem:[%s1720_s2 + $0x48] sm:$0xff]  }
   0x9   :  { %v1399_v23 = vld [vmem:[%s1720_s2 + $0x80] sm:$0xff]   ;;  %v1407_v33 = vld [vmem:[%s1720_s2 + $0x50] sm:$0xff]   ;;  %v1409_v34 = vld [vmem:[%s1721_s0 + $0x8] sm:$0x1e]  }
   0xa   :  { %v1401_v24 = vld [vmem:[%s1721_s0] sm:$0x3c]   ;;  %v1411_v35 = vld [vmem:[%s1722_s1 + $0x8] sm:$0x1e]   ;;  %v1408_v36 = vld [vmem:[%s1720_s2 + $0x58] sm:$0xff]   ;;  %v522_v37 = vrot.slane %v1409_v34, 1 }
   0xb   :  { %1159 = vmatpush3.bf16.msra.mxu0 %v1383_v3  ;;  %1191 = vmatpush3.bf16.msra.mxu1 %v1383_v3  ;;  %v1402_v25 = vld [vmem:[%s1722_s1] sm:$0x3c]   ;;  %v327_v27 = vrot.slane %v1401_v24, 2  ;;  %v688_v38 = vrot.slane %v1411_v35, 1  ;;  %v1412_v40 = vld [vmem:[%s1720_s2 + $0x8] sm:$0xff]   ;;  %v1413_v41 = vld [vmem:[%s1720_s2 + $0x10] sm:$0xff]  }
   0xc   :  { %1160 = vmatprep.subr.bf16.mxu0 %v1425_v0  ;;  %1192 = vmatprep.subr.bf16.mxu1 %v1425_v0  ;;  %v415_v28 = vrot.slane %v1402_v25, 2  ;;  %v1405_v31 = vld [vmem:[%s1720_s2 + $0x40] sm:$0xff]   ;;  %v1414_v42 = vld [vmem:[%s1720_s2 + $0x18] sm:$0xff]   ;;  %v1416_v44 = vld [vmem:[%s1720_s2 + $0x28] sm:$0xff]  }
   0xd   :  { %v1410_v39 = vld [vmem:[%s1720_s2] sm:$0xff]   ;;  %v1006_v45 = vld [vmem:[%s1721_s0 + $0x8] sm:$0xf]  ;;  %v1419_v49 = vld [vmem:[%s1720_s2 + $0x70] sm:$0xff]  }
   0xe   :  { %v1415_v43 = vld [vmem:[%s1720_s2 + $0x20] sm:$0xff]   ;;  %v1007_v46 = vld [vmem:[%s1722_s1 + $0x8] sm:$0xf]  ;;  %v1420_v50 = vld [vmem:[%s1720_s2 + $0x78] sm:$0xff]  }
   0xf   :  { %1161 = vmatpush3.bf16.msra.mxu0 %v1384_v4  ;;  %1193 = vmatpush3.bf16.msra.mxu1 %v1384_v4  ;;  %v1417_v47 = vld [vmem:[%s1720_s2 + $0x60] sm:$0xff]   ;;  %v1418_v48 = vld [vmem:[%s1720_s2 + $0x68] sm:$0xff]  }
  0x10   :  { %1162 = vmatprep.subr.bf16.mxu0 %v1425_v0  ;;  %1194 = vmatprep.subr.bf16.mxu1 %v1425_v0  ;;  %v1421_v51 = vld [vmem:[%s1720_s2 + $0x80] sm:$0xff]   ;;  %v1423_v52 = vld [vmem:[%s1721_s0 + $0x8] sm:$0x3c]  }
  0x11   :  { %v1424_v53 = vld [vmem:[%s1722_s1 + $0x8] sm:$0x3c]   ;;  %v794_v55 = vrot.slane %v1423_v52, 2  ;;  %v1005_v58 = vld [vmem:[%s1723_s3] ss:$0 sm:$0xff] }
  0x12   :  { %v1422_v54 = vld [vmem:[%s1720_s2 + $0x88] sm:$0xff]   ;;  %v882_v56 = vrot.slane %v1424_v53, 2 }
  0x13   :  { %1163 = vmatpush3.bf16.msra.mxu0 %v1385_v5  ;;  %1195 = vmatpush3.bf16.msra.mxu1 %v1385_v5 }
  0x14   :  { %1164 = vmatprep.subr.bf16.mxu0 %v1425_v0  ;;  %1196 = vmatprep.subr.bf16.mxu1 %v1425_v0 }
  0x17   :  { %1165 = vmatpush3.bf16.msra.mxu0 %v1386_v8  ;;  %1197 = vmatpush3.bf16.msra.mxu1 %v1386_v8  ;;  %v478_v8 = vunpack.c.0.s8 %v477_v62 }
  0x18   :  { %1170 = vmatprep.subr.bf16.mxu0 %v1425_v0  ;;  %1202 = vmatprep.subr.bf16.mxu1 %v1425_v0 }
  0x1a   :  { %1167 = vmatmul.mubr.msk.bf16.vlgmr.msra.gmra.mrb[0].mxu0 %vm90_vm1, %v53_v9  ;;  %1199 = vmatmul.mubr.msk.bf16.vlgmr.msra.gmra.mrb[0].mxu1 %vm90_vm1, %v220_v10  ;;  %v480_v9 = vshrl.u32 %v479_v63, 7 }
  0x1b   :  { %1171 = vmatpush3.bf16.msra.mxu0 %v1388_v11  ;;  %1203 = vmatpush3.bf16.msra.mxu1 %v1388_v11 }
  0x1c   :  { %1172 = vmatprep.subr.bf16.mxu0 %v1425_v0  ;;  %1204 = vmatprep.subr.bf16.mxu1 %v1425_v0 }
  0x1d   :  { %1182 = vmatprep.mubr.msk.bf16.mxu0 %vm1426_vm0, %v1425_v0  ;;  %1214 = vmatprep.mubr.msk.bf16.mxu1 %vm1426_vm0, %v1425_v0 }
  0x1f   :  { %1173 = vmatpush3.bf16.msra.mxu0 %v1390_v12  ;;  %1205 = vmatpush3.bf16.msra.mxu1 %v1390_v12  ;;  %v481_v12 = vsub.s32 %v478_v8, %v480_v9 }
  0x20   :  { %1174 = vmatprep.subr.bf16.mxu0 %v1425_v0  ;;  %1206 = vmatprep.subr.bf16.mxu1 %v1425_v0 }
  0x23   :  { %1175 = vmatpush3.bf16.msra.mxu0 %v1391_v13  ;;  %1207 = vmatpush3.bf16.msra.mxu1 %v1391_v13 }
  0x24   :  { %1176 = vmatprep.subr.bf16.mxu0 %v1425_v0  ;;  %1208 = vmatprep.subr.bf16.mxu1 %v1425_v0 }
  0x27   :  { %1177 = vmatpush3.bf16.msra.mxu0 %v1392_v14  ;;  %1209 = vmatpush3.bf16.msra.mxu1 %v1392_v14 }
  0x28   :  { %1178 = vmatprep.subr.bf16.mxu0 %v1425_v0  ;;  %1210 = vmatprep.subr.bf16.mxu1 %v1425_v0 }
  0x2b   :  { %1179 = vmatpush3.bf16.msra.mxu0 %v1393_v15  ;;  %1211 = vmatpush3.bf16.msra.mxu1 %v1393_v15 }
  0x2c   :  { %1180 = vmatprep.subr.bf16.mxu0 %v1425_v0  ;;  %1212 = vmatprep.subr.bf16.mxu1 %v1425_v0 }
  0x2f   :  { %1181 = vmatpush3.bf16.msra.mxu0 %v1394_v16  ;;  %1213 = vmatpush3.bf16.msra.mxu1 %v1394_v16 }
  0x30   :  { %1218 = vmatprep.subr.bf16.mxu0 %v1425_v0  ;;  %1234 = vmatprep.subr.bf16.mxu1 %v1425_v0 }
  0x32   :  { %1183 = vmatmul.mubr.msk.bf16.vlgmr.msra.gmra.mrb[0].mxu0 %vm90_vm1, %v19_v17  ;;  %1215 = vmatmul.mubr.msk.bf16.vlgmr.msra.gmra.mrb[0].mxu1 %vm90_vm1, %v32_v18 }
  0x33   :  { %1219 = vmatpush3.bf16.msra.mxu0 %v1395_v19  ;;  %1235 = vmatpush3.bf16.msra.mxu1 %v1395_v19 }
  0x34   :  { %1220 = vmatprep.subr.bf16.mxu0 %v1425_v0  ;;  %1236 = vmatprep.subr.bf16.mxu1 %v1425_v0 }
  0x35   :  { %1230 = vmatprep.mubr.msk.bf16.mxu0 %vm1426_vm0, %v1425_v0  ;;  %1246 = vmatprep.mubr.msk.bf16.mxu1 %vm1426_vm0, %v1425_v0 }
  0x37   :  { %1221 = vmatpush3.bf16.msra.mxu0 %v1396_v20  ;;  %1237 = vmatpush3.bf16.msra.mxu1 %v1396_v20 }
  0x38   :  { %1222 = vmatprep.subr.bf16.mxu0 %v1425_v0  ;;  %1238 = vmatprep.subr.bf16.mxu1 %v1425_v0 }
  0x3b   :  { %1223 = vmatpush3.bf16.msra.mxu0 %v1397_v21  ;;  %1239 = vmatpush3.bf16.msra.mxu1 %v1397_v21 }
  0x3c   :  { %1224 = vmatprep.subr.bf16.mxu0 %v1425_v0  ;;  %1240 = vmatprep.subr.bf16.mxu1 %v1425_v0 }
  0x3f   :  { %1225 = vmatpush3.bf16.msra.mxu0 %v1398_v22  ;;  %1241 = vmatpush3.bf16.msra.mxu1 %v1398_v22 }
  0x40   :  { %1226 = vmatprep.subr.bf16.mxu0 %v1425_v0  ;;  %1242 = vmatprep.subr.bf16.mxu1 %v1425_v0 }
  0x43   :  { %1227 = vmatpush3.bf16.msra.mxu0 %v1399_v23  ;;  %1243 = vmatpush3.bf16.msra.mxu1 %v1399_v23 }
  0x44   :  { %1228 = vmatprep.subr.bf16.mxu0 %v1425_v0  ;;  %1244 = vmatprep.subr.bf16.mxu1 %v1425_v0 }
  0x47   :  { %1229 = vmatpush3.bf16.msra.mxu0 %v1400_v26  ;;  %1245 = vmatpush3.bf16.msra.mxu1 %v1400_v26 }
  0x48   :  { %1250 = vmatprep.subr.bf16.mxu0 %v1425_v0  ;;  %1282 = vmatprep.subr.bf16.mxu1 %v1425_v0 }
  0x4a   :  { %1231 = vmatmul.mubr.msk.bf16.vlgmr.msra.gmra.mrb[0].mxu0 %vm90_vm1, %v327_v27  ;;  %1247 = vmatmul.mubr.msk.bf16.vlgmr.msra.gmra.mrb[0].mxu1 %vm90_vm1, %v415_v28 }
  0x4b   :  { %1251 = vmatpush3.bf16.msra.mxu0 %v1403_v29  ;;  %1283 = vmatpush3.bf16.msra.mxu1 %v1403_v29 }
  0x4c   :  { %1252 = vmatprep.subr.bf16.mxu0 %v1425_v0  ;;  %1284 = vmatprep.subr.bf16.mxu1 %v1425_v0 }
  0x4d   :  { %1262 = vmatprep.mubr.msk.bf16.mxu0 %vm1426_vm0, %v1425_v0  ;;  %1294 = vmatprep.mubr.msk.bf16.mxu1 %vm1426_vm0, %v1425_v0 }
  0x4f   :  { %1253 = vmatpush3.bf16.msra.mxu0 %v1404_v30  ;;  %1285 = vmatpush3.bf16.msra.mxu1 %v1404_v30 }
  0x50   :  { %1254 = vmatprep.subr.bf16.mxu0 %v1425_v0  ;;  %1286 = vmatprep.subr.bf16.mxu1 %v1425_v0 }
  0x53   :  { %1255 = vmatpush3.bf16.msra.mxu0 %v1405_v31  ;;  %1287 = vmatpush3.bf16.msra.mxu1 %v1405_v31 }
  0x54   :  { %1256 = vmatprep.subr.bf16.mxu0 %v1425_v0  ;;  %1288 = vmatprep.subr.bf16.mxu1 %v1425_v0 }
  0x57   :  { %1257 = vmatpush3.bf16.msra.mxu0 %v1406_v32  ;;  %1289 = vmatpush3.bf16.msra.mxu1 %v1406_v32 }
  0x58   :  { %1258 = vmatprep.subr.bf16.mxu0 %v1425_v0  ;;  %1290 = vmatprep.subr.bf16.mxu1 %v1425_v0 }
  0x5b   :  { %1259 = vmatpush3.bf16.msra.mxu0 %v1407_v33  ;;  %1291 = vmatpush3.bf16.msra.mxu1 %v1407_v33 }
  0x5c   :  { %1260 = vmatprep.subr.bf16.mxu0 %v1425_v0  ;;  %1292 = vmatprep.subr.bf16.mxu1 %v1425_v0 }
  0x5f   :  { %1261 = vmatpush3.bf16.msra.mxu0 %v1408_v36  ;;  %1293 = vmatpush3.bf16.msra.mxu1 %v1408_v36 }
  0x60   :  { %1266 = vmatprep.subr.bf16.mxu0 %v1425_v0  ;;  %1298 = vmatprep.subr.bf16.mxu1 %v1425_v0 }
  0x62   :  { %1263 = vmatmul.mubr.msk.bf16.vlgmr.msra.gmra.mrb[4].mxu0 %vm90_vm1, %v522_v37  ;;  %1295 = vmatmul.mubr.msk.bf16.vlgmr.msra.gmra.mrb[4].mxu1 %vm90_vm1, %v688_v38 }
  0x63   :  { %1267 = vmatpush3.bf16.msra.mxu0 %v1410_v39  ;;  %1299 = vmatpush3.bf16.msra.mxu1 %v1410_v39 }
  0x64   :  { %1268 = vmatprep.subr.bf16.mxu0 %v1425_v0  ;;  %1300 = vmatprep.subr.bf16.mxu1 %v1425_v0 }
  0x65   :  { %1278 = vmatprep.mubr.msk.bf16.mxu0 %vm1426_vm0, %v1425_v0  ;;  %1310 = vmatprep.mubr.msk.bf16.mxu1 %vm1426_vm0, %v1425_v0 }
  0x67   :  { %1269 = vmatpush3.bf16.msra.mxu0 %v1412_v40  ;;  %1301 = vmatpush3.bf16.msra.mxu1 %v1412_v40 }
  0x68   :  { %1270 = vmatprep.subr.bf16.mxu0 %v1425_v0  ;;  %1302 = vmatprep.subr.bf16.mxu1 %v1425_v0 }
  0x6b   :  { %1271 = vmatpush3.bf16.msra.mxu0 %v1413_v41  ;;  %1303 = vmatpush3.bf16.msra.mxu1 %v1413_v41 }
  0x6c   :  { %1272 = vmatprep.subr.bf16.mxu0 %v1425_v0  ;;  %1304 = vmatprep.subr.bf16.mxu1 %v1425_v0 }
  0x6f   :  { %1273 = vmatpush3.bf16.msra.mxu0 %v1414_v42  ;;  %1305 = vmatpush3.bf16.msra.mxu1 %v1414_v42 }
  0x70   :  { %1274 = vmatprep.subr.bf16.mxu0 %v1425_v0  ;;  %1306 = vmatprep.subr.bf16.mxu1 %v1425_v0 }
  0x73   :  { %1275 = vmatpush3.bf16.msra.mxu0 %v1415_v43  ;;  %1307 = vmatpush3.bf16.msra.mxu1 %v1415_v43 }
  0x74   :  { %1276 = vmatprep.subr.bf16.mxu0 %v1425_v0  ;;  %1308 = vmatprep.subr.bf16.mxu1 %v1425_v0 }
  0x77   :  { %1277 = vmatpush3.bf16.msra.mxu0 %v1416_v44  ;;  %1309 = vmatpush3.bf16.msra.mxu1 %v1416_v44 }
  0x78   :  { %1314 = vmatprep.subr.bf16.mxu0 %v1425_v0  ;;  %1330 = vmatprep.subr.bf16.mxu1 %v1425_v0 }
  0x7a   :  { %1279 = vmatmul.mubr.msk.bf16.vlgmr.msra.gmra.mrb[4].mxu0 %vm90_vm1, %v1006_v45  ;;  %1311 = vmatmul.mubr.msk.bf16.vlgmr.msra.gmra.mrb[4].mxu1 %vm90_vm1, %v1007_v46 }
  0x7b   :  { %1315 = vmatpush3.bf16.msra.mxu0 %v1417_v47  ;;  %1331 = vmatpush3.bf16.msra.mxu1 %v1417_v47 }
  0x7c   :  { %1316 = vmatprep.subr.bf16.mxu0 %v1425_v0  ;;  %1332 = vmatprep.subr.bf16.mxu1 %v1425_v0 }
  0x7d   :  { %1326 = vmatprep.mubr.msk.bf16.mxu0 %vm1426_vm0, %v1425_v0  ;;  %1342 = vmatprep.mubr.msk.bf16.mxu1 %vm1426_vm0, %v1425_v0 }
  0x7f   :  { %1317 = vmatpush3.bf16.msra.mxu0 %v1418_v48  ;;  %1333 = vmatpush3.bf16.msra.mxu1 %v1418_v48 }
  0x80   :  { %1318 = vmatprep.subr.bf16.mxu0 %v1425_v0  ;;  %1334 = vmatprep.subr.bf16.mxu1 %v1425_v0 }
  0x83   :  { %1319 = vmatpush3.bf16.msra.mxu0 %v1419_v49  ;;  %1335 = vmatpush3.bf16.msra.mxu1 %v1419_v49 }
  0x84   :  { %1320 = vmatprep.subr.bf16.mxu0 %v1425_v0  ;;  %1336 = vmatprep.subr.bf16.mxu1 %v1425_v0 }
  0x87   :  { %1321 = vmatpush3.bf16.msra.mxu0 %v1420_v50  ;;  %1337 = vmatpush3.bf16.msra.mxu1 %v1420_v50 }
  0x88   :  { %1322 = vmatprep.subr.bf16.mxu0 %v1425_v0  ;;  %1338 = vmatprep.subr.bf16.mxu1 %v1425_v0 }
  0x8b   :  { %1323 = vmatpush3.bf16.msra.mxu0 %v1421_v51  ;;  %1339 = vmatpush3.bf16.msra.mxu1 %v1421_v51 }
  0x8c   :  { %1324 = vmatprep.subr.bf16.mxu0 %v1425_v0  ;;  %1340 = vmatprep.subr.bf16.mxu1 %v1425_v0 }
  0x8f   :  { %1325 = vmatpush3.bf16.msra.mxu0 %v1422_v54  ;;  %1341 = vmatpush3.bf16.msra.mxu1 %v1422_v54 }
  0x92   :  { %1327 = vmatmul.mubr.msk.bf16.vlgmr.msra.gmra.mrb[4].mxu0 %vm90_vm1, %v794_v55  ;;  %1343 = vmatmul.mubr.msk.bf16.vlgmr.msra.gmra.mrb[4].mxu1 %vm90_vm1, %v882_v56 }
 0x11d   :  { %v401_v57 = vpop.f32.mrb[0].mxu0  ;;  %v453_v59 = vpop.f32.mrb[0].mxu1 }
 0x11e   :  { %v460_v60 = vmax.f32 %v401_v57, %v453_v59  ;;  %v1232_v1 = vpop.f32.mrb[1].mxu0  ;;  %v1248_v0 = vpop.f32.mrb[1].mxu1 }
 0x11f   :  { %v404_v2 = vpop.f32.mrb[2].mxu0  ;;  %v456_v3 = vpop.f32.mrb[2].mxu1 }
 0x120   :  { %v467_v4 = vadd.f32 %v1005_v58, %v460_v60  ;;  %v1233_v5 = vpop.f32.mrb[3].mxu0  ;;  %v1249_v6 = vpop.f32.mrb[3].mxu1 }
 0x122   :  { %v468_v7 = vmax.f32 %v467_v4, 0.0 }
 0x124   :  { %v470_v10 = vrot.slane %v468_v7, 2 }
 0x126   :  { %v472_v11 = vmax.f32 %v468_v7, %v470_v10 }
 0x128   :  { %v473_v13 = vpack.c.bf16 %v472_v11, %v472_v11 }
 0x12a   :  { %474 = vst [vmem:[%s1724_s4] sm:$0x1] %v473_v13  ;;  %v482_v14 = vrot.slane %v473_v13, %v481_v12 }
 0x12c   :  { %v483_v15 = vcombine.high %v482_v14, %v482_v14 }
 0x12e   :  { %v484_v16 = vrot.slane %v483_v15, 7 }
 0x130   :  { %486 = vst [vmem:[%s1724_s4] sm:$0x2] %v484_v16 }
 0x165   :  { %v868_v17 = vpop.f32.mrb[4].mxu0  ;;  %v920_v18 = vpop.f32.mrb[4].mxu1 }
 0x166   :  { %v927_v19 = vmax.f32 %v868_v17, %v920_v18  ;;  %v1328_v20 = vpop.f32.mrb[5].mxu0  ;;  %v1344_v21 = vpop.f32.mrb[5].mxu1 }
 0x167   :  { %v871_v22 = vpop.f32.mrb[6].mxu0  ;;  %v923_v23 = vpop.f32.mrb[6].mxu1 }
 0x168   :  { %v928_v24 = vadd.f32 %v1005_v58, %v927_v19  ;;  %v1329_v25 = vpop.f32.mrb[7].mxu0  ;;  %v1345_v26 = vpop.f32.mrb[7].mxu1 }
 0x16a   :  { %v929_v27 = vmax.f32 %v928_v24, 0.0 }
 0x16c   :  { %v931_v28 = vrot.slane %v929_v27, 2 }
 0x16e   :  { %v933_v29 = vmax.f32 %v929_v27, %v931_v28 }
 0x170   :  { %v934_v30 = vpack.c.bf16 %v933_v29, %v933_v29 }
 0x172   :  { %1068 = vst [vmem:[%s1724_s4 + $0x2] sm:$0x1] %v934_v30  ;;  %v944_v31 = vrot.slane %v934_v30, %v481_v12 }
 0x174   :  { %v945_v32 = vcombine.high %v944_v31, %v944_v31 }
 0x176   :  { %v946_v33 = vrot.slane %v945_v32, 7 }
 0x178   :  { %1069 = vst [vmem:[%s1724_s4 + $0x2] sm:$0x2] %v946_v33 }

// kernel: cnn_forward.5
= control target key start
LH: loop header
LB: loop body
LE: loop exit
PB: predicated region body
PF: predicated region fallthrough
CT: control target
= control target key end

     0   :  { %vm133_vm0 = vcmask 1041408   ;;  %vm108_vm1 = vcmask 162816   ;;  %s6501_s2 = inlined_call_operand.vmem [shape: bf16[5,20,128], index: 2, kind: input, shape index: {}]   ;;  %s6502_s0 = inlined_call_operand.vmem [shape: bf16[2,160,20], index: 0, kind: input, shape index: {}]   ;;  %s6503_s1 = inlined_call_operand.vmem [shape: bf16[2,160,20], index: 1, kind: input, shape index: {}]   ;;  %s6504_s3 = inlined_call_operand.vmem [shape: f32[1,128], index: 3, kind: input, shape index: {}]   ;;  %s6505_s4 = inlined_call_operand.vmem [shape: bf16[2,64,128], index: 4, kind: output, shape index: {}]  }
   0x1   :  { %v5415_v0 = vld [vmem:[%s6501_s2 + $0xc] sm:$0xff]   ;;  %v5416_v1 = vld [vmem:[%s6501_s2 + $0x14] ss:$0 sps:$4 sm:$0x33]   ;;  %v5421_v2 = vld [vmem:[%s6503_s1 + $0x4] sm:$0xff]  }
   0x2   :  { %4739 = vmatprep.subr.bf16.mxu0 %v5415_v0  ;;  %4779 = vmatprep.subr.bf16.mxu1 %v5415_v0  ;;  %v5632_v3 = vld [vmem:[%s6502_s0 + $0x4] sm:$0xf]  ;;  %v5637_v4 = vld [vmem:[%s6502_s0 + $0x8] sm:$0xf]  ;;  %v135_v5 = vsel %vm133_vm0, %v5416_v1, 0  ;;  %v5423_v11 = vld [vmem:[%s6503_s1 + $0xc] sm:$0xff]  }
   0x3   :  { %4740 = vmatpush3.bf16.msra.mxu0 %v5415_v0  ;;  %4780 = vmatpush3.bf16.msra.mxu1 %v5415_v0  ;;  %v5643_v6 = vld [vmem:[%s6502_s0 + $0xc] sm:$0xf]  ;;  %v5648_v7 = vld [vmem:[%s6502_s0 + $0x10] sm:$0xf]  ;;  %v3977_v8 = vcombine.low %v5632_v3, %v5637_v4  ;;  %v5422_v9 = vld [vmem:[%s6501_s2] sm:$0xff]  }
   0x4   :  { %5395 = vmatprep.subr.msk.bf16.mxu0 %vm133_vm0, %v5416_v1  ;;  %5397 = vmatprep.subr.msk.bf16.mxu1 %vm133_vm0, %v5416_v1  ;;  %v3978_v10 = vcombine.low %v5643_v6, %v5648_v7  ;;  %v5667_v12 = vld [vmem:[%s6502_s0 + $0x14] sm:$0xf]  ;;  %v5672_v13 = vld [vmem:[%s6502_s0 + $0x18] sm:$0xf]  ;;  %v5684_v16 = vld [vmem:[%s6502_s0 + $0x1c] sm:$0xf]  ;;  %v3996_v42 = vcombine.low %v5637_v4, %v5643_v6 }
   0x5   :  { %4743 = vmatprep.mubr.msk.bf16.mxu0 %vm108_vm1, %v3977_v8  ;;  %4783 = vmatprep.mubr.msk.bf16.mxu1 %vm108_vm1, %v5421_v2  ;;  %v3979_v14 = vcombine.low %v5667_v12, %v5672_v13  ;;  %v5425_v15 = vld [vmem:[%s6503_s1 + $0x14] sm:$0xff]   ;;  %v5689_v17 = vld [vmem:[%s6502_s0 + $0x20] sm:$0xf]  ;;  %v5694_v18 = vld [vmem:[%s6502_s0 + $0x24] sm:$0xf]  ;;  %v3997_v44 = vcombine.low %v5648_v7, %v5667_v12  ;;  %v3998_v49 = vcombine.low %v5672_v13, %v5684_v16 }
   0x6   :  { %v5699_v19 = vld [vmem:[%s6502_s0 + $0x28] sm:$0xf]  ;;  %v3980_v21 = vcombine.low %v5684_v16, %v5689_v17  ;;  %v5427_v22 = vld [vmem:[%s6503_s1 + $0x1c] sm:$0xff]   ;;  %v30_v26 = vld [vmem:[%s6502_s0 + $0x2c] sm:$0xf]  ;;  %v3999_v51 = vcombine.low %v5689_v17, %v5694_v18 }
   0x7   :  { %4742 = vmatpush3.bf16.msra.mxu0 %v135_v5  ;;  %4782 = vmatpush3.bf16.msra.mxu1 %v135_v5  ;;  %v5431_v20 = vld [vmem:[%s6501_s2 + $0x8] ss:$0 sps:$4 sm:$0x33]   ;;  %v3981_v24 = vcombine.low %v5694_v18, %v5699_v19  ;;  %v5725_v27 = vld [vmem:[%s6502_s0 + $0x30] sm:$0xf]  ;;  %v5439_v29 = vld [vmem:[%s6501_s2 + $0x18] sm:$0xff]   ;;  %v4000_v53 = vcombine.low %v5699_v19, %v30_v26 }
   0x8   :  { %4759 = vmatprep.subr.bf16.mxu0 %v5422_v9  ;;  %4799 = vmatprep.subr.bf16.mxu1 %v5422_v9  ;;  %v278_v23 = vsel %vm133_vm0, %v5431_v20, 0  ;;  %v5429_v25 = vld [vmem:[%s6503_s1 + $0x24] sm:$0xff]   ;;  %v32_v28 = vld [vmem:[%s6502_s0 + $0x34] sm:$0xf]  ;;  %v33_v30 = vld [vmem:[%s6502_s0 + $0x38] sm:$0xf]  ;;  %v3982_v31 = vcombine.low %v30_v26, %v5725_v27 }
   0x9   :  { %v5432_v32 = vld [vmem:[%s6503_s1 + $0x2c] sm:$0xff]   ;;  %v3983_v33 = vcombine.low %v32_v28, %v33_v30  ;;  %v5434_v34 = vld [vmem:[%s6503_s1 + $0x34] sm:$0xff]   ;;  %v34_v35 = vld [vmem:[%s6502_s0 + $0x3c] sm:$0xf]  ;;  %v4001_v55 = vcombine.low %v5725_v27, %v32_v28 }
   0xa   :  { %4744 = vmatmul.mubr.msk.bf16.vlgmr.msra.gmra.mrb[0].mxu0 %vm108_vm1, %v3978_v10  ;;  %4784 = vmatmul.mubr.msk.bf16.vlgmr.msra.gmra.mrb[0].mxu1 %vm108_vm1, %v5423_v11  ;;  %v54_v36 = vld [vmem:[%s6502_s0 + $0x40] sm:$0xf]  ;;  %v5438_v43 = vld [vmem:[%s6503_s1 + $0x8] sm:$0xff]   ;;  %v5441_v45 = vld [vmem:[%s6503_s1 + $0x10] sm:$0xff]   ;;  %v4002_v58 = vcombine.low %v33_v30, %v34_v35 }
   0xb   :  { %4760 = vmatpush3.bf16.msra.mxu0 %v5422_v9  ;;  %4800 = vmatpush3.bf16.msra.mxu1 %v5422_v9  ;;  %v19_v37 = vld [vmem:[%s6502_s0] sm:$0xf]  ;;  %v3984_v38 = vcombine.low %v34_v35, %v54_v36  ;;  %v5457_v48 = vld [vmem:[%s6501_s2 + $0x24] sm:$0xff]   ;;  %v5443_v50 = vld [vmem:[%s6503_s1 + $0x18] sm:$0xff]  }
   0xc   :  { %4747 = vmatprep.mubr.msk.bf16.mxu0 %vm108_vm1, %v3979_v14  ;;  %4787 = vmatprep.mubr.msk.bf16.mxu1 %vm108_vm1, %v5425_v15  ;;  %v5436_v39 = vld [vmem:[%s6503_s1 + $0x3c] sm:$0xff]   ;;  %v3995_v40 = vcombine.low %v19_v37, %v5632_v3  ;;  %v5447_v54 = vld [vmem:[%s6503_s1 + $0x28] sm:$0xff]   ;;  %v5450_v56 = vld [vmem:[%s6503_s1 + $0x30] sm:$0xff]  }
   0xd   :  { %5396 = vmatprep.subr.msk.bf16.mxu0 %vm133_vm0, %v5431_v20  ;;  %5398 = vmatprep.subr.msk.bf16.mxu1 %vm133_vm0, %v5431_v20  ;;  %v5437_v41 = vld [vmem:[%s6503_s1] sm:$0xff]   ;;  %v5452_v57 = vld [vmem:[%s6503_s1 + $0x38] sm:$0xff]   ;;  %v5453_v59 = vld [vmem:[%s6502_s0 + $0x8] sm:$0xff]  }
   0xe   :  { %v5448_v46 = vld [vmem:[%s6501_s2 + $0x20] ss:$0 sps:$4 sm:$0x33]   ;;  %v5454_v60 = vld [vmem:[%s6503_s1 + $0x8] sm:$0xff]   ;;  %v5455_v61 = vld [vmem:[%s6502_s0 + $0x10] sm:$0xff]  }
   0xf   :  { %4762 = vmatpush3.bf16.msra.mxu0 %v278_v23  ;;  %4802 = vmatpush3.bf16.msra.mxu1 %v278_v23  ;;  %v809_v47 = vsel %vm133_vm0, %v5448_v46, 0  ;;  %v5445_v52 = vld [vmem:[%s6503_s1 + $0x20] sm:$0xff]   ;;  %v5466_v62 = vld [vmem:[%s6501_s2 + $0x2c] ss:$0 sps:$4 sm:$0x33]   ;;  %v5456_v63 = vld [vmem:[%s6503_s1 + $0x10] sm:$0xff]  }
  0x10   :  { %4819 = vmatprep.subr.bf16.mxu0 %v5439_v29  ;;  %4839 = vmatprep.subr.bf16.mxu1 %v5439_v29  ;;  %v5458_v0 = vld [vmem:[%s6502_s0 + $0x18] sm:$0xff]   ;;  %v1211_v2 = vsel %vm133_vm0, %v5466_v62, 0  ;;  %v5475_v3 = vld [vmem:[%s6501_s2 + $0x30] sm:$0xff]   ;;  %v5460_v4 = vld [vmem:[%s6502_s0 + $0x20] sm:$0xff]  }
  0x11   :  { %v5459_v1 = vld [vmem:[%s6503_s1 + $0x18] sm:$0xff]   ;;  %v5461_v5 = vld [vmem:[%s6503_s1 + $0x20] sm:$0xff]   ;;  %v5462_v6 = vld [vmem:[%s6502_s0 + $0x28] sm:$0xff]  }
  0x12   :  { %4748 = vmatmul.mubr.msk.bf16.gmra.mrb[4].mxu0 %vm108_vm1, %v3980_v21  ;;  %4788 = vmatmul.mubr.msk.bf16.gmra.mrb[4].mxu1 %vm108_vm1, %v5427_v22  ;;  %v5463_v7 = vld [vmem:[%s6503_s1 + $0x28] sm:$0xff]   ;;  %v5464_v8 = vld [vmem:[%s6502_s0 + $0x30] sm:$0xff]   ;;  %v5467_v10 = vld [vmem:[%s6502_s0 + $0x38] sm:$0xff]  }
  0x13   :  { %4751 = vmatprep.mubr.msk.bf16.mxu0 %vm108_vm1, %v3981_v24  ;;  %4791 = vmatprep.mubr.msk.bf16.mxu1 %vm108_vm1, %v5429_v25  ;;  %v5465_v9 = vld [vmem:[%s6503_s1 + $0x30] sm:$0xff]   ;;  %v5468_v11 = vld [vmem:[%s6503_s1 + $0x38] sm:$0xff]   ;;  %v5469_v12 = vld [vmem:[%s6502_s0 + $0x40] sm:$0xff]  }
  0x14   :  { %v5470_v13 = vld [vmem:[%s6503_s1 + $0x40] sm:$0xff]   ;;  %v5471_v14 = vld [vmem:[%s6502_s0 + $0xc] sm:$0xff]   ;;  %v5473_v16 = vld [vmem:[%s6502_s0 + $0x14] sm:$0xff]  }
  0x15   :  { %v5472_v15 = vld [vmem:[%s6503_s1 + $0xc] sm:$0xff]   ;;  %v5474_v17 = vld [vmem:[%s6503_s1 + $0x14] sm:$0xff]   ;;  %v5476_v18 = vld [vmem:[%s6502_s0 + $0x1c] sm:$0xff]  }
  0x16   :  { %v5484_v19 = vld [vmem:[%s6501_s2 + $0x38] ss:$0 sps:$4 sm:$0x33]   ;;  %v5477_v20 = vld [vmem:[%s6503_s1 + $0x1c] sm:$0xff]   ;;  %v5478_v21 = vld [vmem:[%s6502_s0 + $0x24] sm:$0xff]  }
  0x17   :  { %v1613_v22 = vsel %vm133_vm0, %v5484_v19, 0  ;;  %v5493_v23 = vld [vmem:[%s6501_s2 + $0xc] sm:$0xff]   ;;  %v5479_v24 = vld [vmem:[%s6503_s1 + $0x24] sm:$0xff]   ;;  %v5482_v27 = vld [vmem:[%s6502_s0 + $0x34] sm:$0xff]  }
  0x18   :  { %v5480_v25 = vld [vmem:[%s6502_s0 + $0x2c] sm:$0xff]   ;;  %v5483_v28 = vld [vmem:[%s6503_s1 + $0x34] sm:$0xff]   ;;  %v5486_v30 = vld [vmem:[%s6503_s1 + $0x3c] sm:$0xff]  }
  0x19   :  { %v5481_v26 = vld [vmem:[%s6503_s1 + $0x2c] sm:$0xff]   ;;  %v5491_v35 = vld [vmem:[%s6502_s0 + $0x18] sm:$0xff]   ;;  %v5494_v37 = vld [vmem:[%s6502_s0 + $0x20] sm:$0xff]  }
  0x1a   :  { %4752 = vmatmul.mubr.msk.bf16.gmra.mrb[8].mxu0 %vm108_vm1, %v3982_v31  ;;  %4792 = vmatmul.mubr.msk.bf16.gmra.mrb[8].mxu1 %vm108_vm1, %v5432_v32  ;;  %v5487_v31 = vld [vmem:[%s6502_s0 + $0x44] sm:$0xff]   ;;  %v5492_v36 = vld [vmem:[%s6503_s1 + $0x18] sm:$0xff]  }
  0x1b   :  { %4755 = vmatprep.mubr.msk.bf16.mxu0 %vm108_vm1, %v3983_v33  ;;  %4795 = vmatprep.mubr.msk.bf16.mxu1 %vm108_vm1, %v5434_v34  ;;  %v5488_v32 = vld [vmem:[%s6503_s1 + $0x44] sm:$0xff]   ;;  %v5489_v33 = vld [vmem:[%s6502_s0 + $0x10] sm:$0xff]  }
  0x1c   :  { %v5490_v34 = vld [vmem:[%s6503_s1 + $0x10] sm:$0xff]  }
  0x22   :  { %4756 = vmatmul.mubr.msk.bf16.gmra.mrb[12].mxu0 %vm108_vm1, %v3984_v38  ;;  %4796 = vmatmul.mubr.msk.bf16.gmra.mrb[12].mxu1 %vm108_vm1, %v5436_v39  ;;  %v5502_v38 = vld [vmem:[%s6501_s2 + $0x14] ss:$0 sps:$4 sm:$0x33]   ;;  %v5495_v39 = vld [vmem:[%s6503_s1 + $0x20] sm:$0xff]  }
  0x23   :  { %4763 = vmatprep.mubr.msk.bf16.mxu0 %vm108_vm1, %v3995_v40  ;;  %4803 = vmatprep.mubr.msk.bf16.mxu1 %vm108_vm1, %v5437_v41  ;;  %v5496_v40 = vld [vmem:[%s6502_s0 + $0x28] sm:$0xff]  }
  0x24   :  { %v5497_v41 = vld [vmem:[%s6503_s1 + $0x28] sm:$0xff]  }
  0x2a   :  { %4764 = vmatmul.mubr.msk.bf16.vlgmr.msra.gmra.mrb[0].mxu0 %vm108_vm1, %v3996_v42  ;;  %4804 = vmatmul.mubr.msk.bf16.vlgmr.msra.gmra.mrb[0].mxu1 %vm108_vm1, %v5438_v43  ;;  %v2114_v42 = vsel %vm133_vm0, %v5502_v38, 0  ;;  %v5511_v43 = vld [vmem:[%s6501_s2] sm:$0xff]  }
  0x2b   :  { %4820 = vmatpush3.bf16.msra.mxu0 %v5439_v29  ;;  %4840 = vmatpush3.bf16.msra.mxu1 %v5439_v29  ;;  %v5485_v29 = vld [vmem:[%s6502_s0 + $0x3c] sm:$0xff]  }
  0x2c   :  { %4767 = vmatprep.mubr.msk.bf16.mxu0 %vm108_vm1, %v3997_v44  ;;  %4807 = vmatprep.mubr.msk.bf16.mxu1 %vm108_vm1, %v5441_v45  ;;  %v5498_v44 = vld [vmem:[%s6502_s0 + $0x30] sm:$0xff]  }
  0x2d   :  { %5399 = vmatprep.subr.msk.bf16.mxu0 %vm133_vm0, %v5448_v46  ;;  %5400 = vmatprep.subr.msk.bf16.mxu1 %vm133_vm0, %v5448_v46  ;;  %v5499_v45 = vld [vmem:[%s6503_s1 + $0x30] sm:$0xff]   ;;  %v5500_v46 = vld [vmem:[%s6502_s0 + $0x38] sm:$0xff]  }
  0x2f   :  { %4822 = vmatpush3.bf16.msra.mxu0 %v809_v47  ;;  %4842 = vmatpush3.bf16.msra.mxu1 %v809_v47  ;;  %v5501_v47 = vld [vmem:[%s6503_s1 + $0x38] sm:$0xff]  }
  0x30   :  { %4859 = vmatprep.subr.bf16.mxu0 %v5457_v48  ;;  %4879 = vmatprep.subr.bf16.mxu1 %v5457_v48 }
  0x32   :  { %4768 = vmatmul.mubr.msk.bf16.gmra.mrb[4].mxu0 %vm108_vm1, %v3998_v49  ;;  %4808 = vmatmul.mubr.msk.bf16.gmra.mrb[4].mxu1 %vm108_vm1, %v5443_v50  ;;  %v5504_v49 = vld [vmem:[%s6503_s1 + $0x40] sm:$0xff]   ;;  %v6039_v50 = vld [vmem:[%s6502_s0 + $0x54] sm:$0xf] }
  0x33   :  { %4771 = vmatprep.mubr.msk.bf16.mxu0 %vm108_vm1, %v3999_v51  ;;  %4811 = vmatprep.mubr.msk.bf16.mxu1 %vm108_vm1, %v5445_v52  ;;  %v6044_v51 = vld [vmem:[%s6502_s0 + $0x58] sm:$0xf]  ;;  %v5505_v52 = vld [vmem:[%s6502_s0 + $0x48] sm:$0xff]  }
  0x3a   :  { %4772 = vmatmul.mubr.msk.bf16.gmra.mrb[8].mxu0 %vm108_vm1, %v4000_v53  ;;  %4812 = vmatmul.mubr.msk.bf16.gmra.mrb[8].mxu1 %vm108_vm1, %v5447_v54  ;;  %v5506_v53 = vld [vmem:[%s6503_s1 + $0x48] sm:$0xff]   ;;  %v4193_v54 = vcombine.low %v6039_v50, %v6044_v51 }
  0x3b   :  { %4775 = vmatprep.mubr.msk.bf16.mxu0 %vm108_vm1, %v4001_v55  ;;  %4815 = vmatprep.mubr.msk.bf16.mxu1 %vm108_vm1, %v5450_v56  ;;  %v5510_v55 = vld [vmem:[%s6503_s1 + $0x54] sm:$0xff]   ;;  %v6062_v56 = vld [vmem:[%s6502_s0 + $0x5c] sm:$0xf] }
  0x42   :  { %4776 = vmatmul.mubr.msk.bf16.gmra.mrb[12].mxu0 %vm108_vm1, %v4002_v58  ;;  %4816 = vmatmul.mubr.msk.bf16.gmra.mrb[12].mxu1 %vm108_vm1, %v5452_v57  ;;  %v6067_v57 = vld [vmem:[%s6502_s0 + $0x60] sm:$0xf]  ;;  %v6074_v58 = vld [vmem:[%s6502_s0 + $0x64] sm:$0xf] }
  0x43   :  { %4823 = vmatprep.mubr.msk.bf16.mxu0 %vm108_vm1, %v5453_v59  ;;  %4843 = vmatprep.mubr.msk.bf16.mxu1 %vm108_vm1, %v5454_v60  ;;  %v6079_v59 = vld [vmem:[%s6502_s0 + $0x68] sm:$0xf]  ;;  %v4194_v60 = vcombine.low %v6062_v56, %v6067_v57 }
  0x4a   :  { %4824 = vmatmul.mubr.msk.bf16.vlgmr.msra.gmra.mrb[0].mxu0 %vm108_vm1, %v5455_v61  ;;  %4844 = vmatmul.mubr.msk.bf16.vlgmr.msra.gmra.mrb[0].mxu1 %vm108_vm1, %v5456_v63  ;;  %v5512_v61 = vld [vmem:[%s6503_s1 + $0x5c] sm:$0xff]   ;;  %v5514_v63 = vld [vmem:[%s6503_s1 + $0x64] sm:$0xff]  }
  0x4b   :  { %4860 = vmatpush3.bf16.msra.mxu0 %v5457_v48  ;;  %4880 = vmatpush3.bf16.msra.mxu1 %v5457_v48  ;;  %v5503_v48 = vld [vmem:[%s6502_s0 + $0x40] sm:$0xff]  }
  0x4c   :  { %4827 = vmatprep.mubr.msk.bf16.mxu0 %vm108_vm1, %v5458_v0  ;;  %4847 = vmatprep.mubr.msk.bf16.mxu1 %vm108_vm1, %v5459_v1  ;;  %v5520_v0 = vld [vmem:[%s6501_s2 + $0x8] ss:$0 sps:$4 sm:$0x33]   ;;  %v6099_v1 = vld [vmem:[%s6502_s0 + $0x6c] sm:$0xf] }
  0x4d   :  { %5401 = vmatprep.subr.msk.bf16.mxu0 %vm133_vm0, %v5466_v62  ;;  %5402 = vmatprep.subr.msk.bf16.mxu1 %vm133_vm0, %v5466_v62  ;;  %v4195_v62 = vcombine.low %v6074_v58, %v6079_v59 }
  0x4f   :  { %4862 = vmatpush3.bf16.msra.mxu0 %v1211_v2  ;;  %4882 = vmatpush3.bf16.msra.mxu1 %v1211_v2  ;;  %v6104_v2 = vld [vmem:[%s6502_s0 + $0x70] sm:$0xf] }
  0x50   :  { %4899 = vmatprep.subr.bf16.mxu0 %v5475_v3  ;;  %4919 = vmatprep.subr.bf16.mxu1 %v5475_v3 }
  0x52   :  { %4828 = vmatmul.mubr.msk.bf16.gmra.mrb[4].mxu0 %vm108_vm1, %v5460_v4  ;;  %4848 = vmatmul.mubr.msk.bf16.gmra.mrb[4].mxu1 %vm108_vm1, %v5461_v5  ;;  %v6116_v4 = vld [vmem:[%s6502_s0 + $0x78] sm:$0xf]  ;;  %v2257_v5 = vsel %vm133_vm0, %v5520_v0, 0 }
  0x53   :  { %4831 = vmatprep.mubr.msk.bf16.mxu0 %vm108_vm1, %v5462_v6  ;;  %4851 = vmatprep.mubr.msk.bf16.mxu1 %vm108_vm1, %v5463_v7  ;;  %v5529_v6 = vld [vmem:[%s6501_s2 + $0x18] sm:$0xff]   ;;  %v4196_v7 = vcombine.low %v6099_v1, %v6104_v2 }
  0x5a   :  { %4832 = vmatmul.mubr.msk.bf16.gmra.mrb[8].mxu0 %vm108_vm1, %v5464_v8  ;;  %4852 = vmatmul.mubr.msk.bf16.gmra.mrb[8].mxu1 %vm108_vm1, %v5465_v9  ;;  %v5516_v8 = vld [vmem:[%s6503_s1 + $0x6c] sm:$0xff]  }
  0x5b   :  { %4835 = vmatprep.mubr.msk.bf16.mxu0 %vm108_vm1, %v5467_v10  ;;  %4855 = vmatprep.mubr.msk.bf16.mxu1 %vm108_vm1, %v5468_v11  ;;  %v5518_v10 = vld [vmem:[%s6503_s1 + $0x74] sm:$0xff]   ;;  %v4168_v11 = vld [vmem:[%s6502_s0 + $0x7c] sm:$0xf] }
  0x62   :  { %4836 = vmatmul.mubr.msk.bf16.gmra.mrb[12].mxu0 %vm108_vm1, %v5469_v12  ;;  %4856 = vmatmul.mubr.msk.bf16.gmra.mrb[12].mxu1 %vm108_vm1, %v5470_v13  ;;  %v4169_v12 = vld [vmem:[%s6502_s0 + $0x80] sm:$0xf]  ;;  %v4170_v13 = vld [vmem:[%s6502_s0 + $0x84] sm:$0xf] }
  0x63   :  { %4863 = vmatprep.mubr.msk.bf16.mxu0 %vm108_vm1, %v5471_v14  ;;  %4883 = vmatprep.mubr.msk.bf16.mxu1 %vm108_vm1, %v5472_v15  ;;  %v4171_v14 = vld [vmem:[%s6502_s0 + $0x88] sm:$0xf]  ;;  %v4198_v15 = vcombine.low %v4168_v11, %v4169_v12 }
  0x6a   :  { %4864 = vmatmul.mubr.msk.bf16.vlgmr.msra.gmra.mrb[0].mxu0 %vm108_vm1, %v5473_v16  ;;  %4884 = vmatmul.mubr.msk.bf16.vlgmr.msra.gmra.mrb[0].mxu1 %vm108_vm1, %v5474_v17  ;;  %v5521_v16 = vld [vmem:[%s6503_s1 + $0x7c] sm:$0xff]   ;;  %v4199_v17 = vcombine.low %v4170_v13, %v4171_v14 }
  0x6b   :  { %4900 = vmatpush3.bf16.msra.mxu0 %v5475_v3  ;;  %4920 = vmatpush3.bf16.msra.mxu1 %v5475_v3  ;;  %v6111_v3 = vld [vmem:[%s6502_s0 + $0x74] sm:$0xf] }
  0x6c   :  { %4867 = vmatprep.mubr.msk.bf16.mxu0 %vm108_vm1, %v5476_v18  ;;  %4887 = vmatprep.mubr.msk.bf16.mxu1 %vm108_vm1, %v5477_v20  ;;  %v4197_v9 = vcombine.low %v6111_v3, %v6116_v4  ;;  %v5523_v18 = vld [vmem:[%s6503_s1 + $0x84] sm:$0xff]   ;;  %v4189_v20 = vld [vmem:[%s6502_s0 + $0x90] sm:$0xf] }
  0x6d   :  { %5403 = vmatprep.subr.msk.bf16.mxu0 %vm133_vm0, %v5484_v19  ;;  %5404 = vmatprep.subr.msk.bf16.mxu1 %vm133_vm0, %v5484_v19  ;;  %v4172_v19 = vld [vmem:[%s6502_s0 + $0x8c] sm:$0xf] }
  0x6f   :  { %4902 = vmatpush3.bf16.msra.mxu0 %v1613_v22  ;;  %4922 = vmatpush3.bf16.msra.mxu1 %v1613_v22  ;;  %v4200_v22 = vcombine.low %v4172_v19, %v4189_v20  ;;  %v5583_v20 = vld [vmem:[%s6502_s0 + $0x70] sm:$0xff]  }
  0x70   :  { %4939 = vmatprep.subr.bf16.mxu0 %v5493_v23  ;;  %4979 = vmatprep.subr.bf16.mxu1 %v5493_v23 }
  0x72   :  { %4868 = vmatmul.mubr.msk.bf16.gmra.mrb[4].mxu0 %vm108_vm1, %v5478_v21  ;;  %4888 = vmatmul.mubr.msk.bf16.gmra.mrb[4].mxu1 %vm108_vm1, %v5479_v24  ;;  %v4157_v21 = vld [vmem:[%s6502_s0 + $0x50] sm:$0xf] }
  0x73   :  { %4871 = vmatprep.mubr.msk.bf16.mxu0 %vm108_vm1, %v5480_v25  ;;  %4891 = vmatprep.mubr.msk.bf16.mxu1 %vm108_vm1, %v5481_v26  ;;  %v4211_v24 = vcombine.low %v4157_v21, %v6039_v50  ;;  %v5527_v25 = vld [vmem:[%s6503_s1 + $0x50] sm:$0xff]   ;;  %v4212_v26 = vcombine.low %v6044_v51, %v6062_v56  ;;  %v5554_v56 = vld [vmem:[%s6502_s0 + $0x80] sm:$0xff]  }
  0x74   :  { %v5565_v51 = vld [vmem:[%s6501_s2 + $0x30] sm:$0xff]  }
  0x75   :  { %v5584_v21 = vld [vmem:[%s6503_s1 + $0x70] sm:$0xff]  }
  0x7a   :  { %4872 = vmatmul.mubr.msk.bf16.gmra.mrb[8].mxu0 %vm108_vm1, %v5482_v27  ;;  %4892 = vmatmul.mubr.msk.bf16.gmra.mrb[8].mxu1 %vm108_vm1, %v5483_v28  ;;  %v5528_v27 = vld [vmem:[%s6503_s1 + $0x58] sm:$0xff]   ;;  %v4213_v28 = vcombine.low %v6067_v57, %v6074_v58  ;;  %v5555_v57 = vld [vmem:[%s6503_s1 + $0x80] sm:$0xff]   ;;  %v5557_v58 = vld [vmem:[%s6502_s0 + $0x88] sm:$0xff]  }
  0x7b   :  { %4875 = vmatprep.mubr.msk.bf16.mxu0 %vm108_vm1, %v5485_v29  ;;  %4895 = vmatprep.mubr.msk.bf16.mxu1 %vm108_vm1, %v5486_v30  ;;  %v5531_v29 = vld [vmem:[%s6503_s1 + $0x60] sm:$0xff]  }
  0x7c   :  { %v5538_v30 = vld [vmem:[%s6501_s2 + $0x20] ss:$0 sps:$4 sm:$0x33]  }
  0x82   :  { %4876 = vmatmul.mubr.msk.bf16.gmra.mrb[12].mxu0 %vm108_vm1, %v5487_v31  ;;  %4896 = vmatmul.mubr.msk.bf16.gmra.mrb[12].mxu1 %vm108_vm1, %v5488_v32  ;;  %v2787_v31 = vsel %vm133_vm0, %v5538_v30, 0  ;;  %v5547_v32 = vld [vmem:[%s6501_s2 + $0x24] sm:$0xff]  }
  0x83   :  { %4903 = vmatprep.mubr.msk.bf16.mxu0 %vm108_vm1, %v5489_v33  ;;  %4923 = vmatprep.mubr.msk.bf16.mxu1 %vm108_vm1, %v5490_v34  ;;  %v4214_v33 = vcombine.low %v6079_v59, %v6099_v1  ;;  %v5533_v34 = vld [vmem:[%s6503_s1 + $0x68] sm:$0xff]  }
  0x84   :  { %v5558_v59 = vld [vmem:[%s6503_s1 + $0x88] sm:$0xff]  }
  0x85   :  { %v5564_v1 = vld [vmem:[%s6503_s1 + $0x64] sm:$0xff]  }
  0x8a   :  { %4904 = vmatmul.mubr.msk.bf16.vlgmr.msra.gmra.mrb[0].mxu0 %vm108_vm1, %v5491_v35  ;;  %4924 = vmatmul.mubr.msk.bf16.vlgmr.msra.gmra.mrb[0].mxu1 %vm108_vm1, %v5492_v36  ;;  %v4215_v35 = vcombine.low %v6104_v2, %v6111_v3  ;;  %v5535_v36 = vld [vmem:[%s6503_s1 + $0x70] sm:$0xff]  }
  0x8b   :  { %4940 = vmatpush3.bf16.msra.mxu0 %v5493_v23  ;;  %4980 = vmatpush3.bf16.msra.mxu1 %v5493_v23  ;;  %v5525_v23 = vld [vmem:[%s6503_s1 + $0x8c] sm:$0xff]  }
  0x8c   :  { %4907 = vmatprep.mubr.msk.bf16.mxu0 %vm108_vm1, %v5494_v37  ;;  %4927 = vmatprep.mubr.msk.bf16.mxu1 %vm108_vm1, %v5495_v39  ;;  %v4216_v37 = vcombine.low %v6116_v4, %v4168_v11  ;;  %v4217_v39 = vcombine.low %v4169_v12, %v4170_v13  ;;  %v5566_v2 = vld [vmem:[%s6502_s0 + $0x6c] sm:$0xff]   ;;  %v5574_v4 = vld [vmem:[%s6501_s2 + $0x38] ss:$0 sps:$4 sm:$0x33]   ;;  %v5573_v11 = vld [vmem:[%s6503_s1 + $0x84] sm:$0xff]  }
  0x8d   :  { %5405 = vmatprep.subr.msk.bf16.mxu0 %vm133_vm0, %v5502_v38  ;;  %5407 = vmatprep.subr.msk.bf16.mxu1 %vm133_vm0, %v5502_v38  ;;  %v5537_v38 = vld [vmem:[%s6503_s1 + $0x78] sm:$0xff]   ;;  %v5567_v3 = vld [vmem:[%s6503_s1 + $0x6c] sm:$0xff]  }
  0x8e   :  { %v5575_v12 = vld [vmem:[%s6502_s0 + $0x8c] sm:$0xff]  }
  0x8f   :  { %4942 = vmatpush3.bf16.msra.mxu0 %v2114_v42  ;;  %4982 = vmatpush3.bf16.msra.mxu1 %v2114_v42  ;;  %v5542_v42 = vld [vmem:[%s6503_s1 + $0x88] sm:$0xff]  }
  0x90   :  { %4959 = vmatprep.subr.bf16.mxu0 %v5511_v43  ;;  %4999 = vmatprep.subr.bf16.mxu1 %v5511_v43  ;;  %v5576_v13 = vld [vmem:[%s6503_s1 + $0x8c] sm:$0xff]  }
  0x92   :  { %4908 = vmatmul.mubr.msk.bf16.gmra.mrb[4].mxu0 %vm108_vm1, %v5496_v40  ;;  %4928 = vmatmul.mubr.msk.bf16.gmra.mrb[4].mxu1 %vm108_vm1, %v5497_v41  ;;  %v5540_v40 = vld [vmem:[%s6503_s1 + $0x80] sm:$0xff]   ;;  %v4218_v41 = vcombine.low %v4171_v14, %v4172_v19  ;;  %v5577_v14 = vld [vmem:[%s6502_s0 + $0x94] sm:$0xff]   ;;  %v5582_v19 = vld [vmem:[%s6503_s1 + $0x68] sm:$0xff]  }
  0x93   :  { %4911 = vmatprep.mubr.msk.bf16.mxu0 %vm108_vm1, %v5498_v44  ;;  %4931 = vmatprep.mubr.msk.bf16.mxu1 %vm108_vm1, %v5499_v45  ;;  %v5544_v44 = vld [vmem:[%s6503_s1 + $0x58] sm:$0xff]   ;;  %v5545_v45 = vld [vmem:[%s6502_s0 + $0x60] sm:$0xff]  }
  0x9a   :  { %4912 = vmatmul.mubr.msk.bf16.gmra.mrb[8].mxu0 %vm108_vm1, %v5500_v46  ;;  %4932 = vmatmul.mubr.msk.bf16.gmra.mrb[8].mxu1 %vm108_vm1, %v5501_v47  ;;  %v5546_v46 = vld [vmem:[%s6503_s1 + $0x60] sm:$0xff]   ;;  %v5548_v47 = vld [vmem:[%s6502_s0 + $0x68] sm:$0xff]  }
  0x9b   :  { %4915 = vmatprep.mubr.msk.bf16.mxu0 %vm108_vm1, %v5503_v48  ;;  %4935 = vmatprep.mubr.msk.bf16.mxu1 %vm108_vm1, %v5504_v49  ;;  %v5549_v48 = vld [vmem:[%s6503_s1 + $0x68] sm:$0xff]  }
  0x9c   :  { %v5556_v49 = vld [vmem:[%s6501_s2 + $0x2c] ss:$0 sps:$4 sm:$0x33]  }
  0x9d   :  { %v3188_v50 = vsel %vm133_vm0, %v5556_v49, 0 }
  0xa2   :  { %4916 = vmatmul.mubr.msk.bf16.gmra.mrb[12].mxu0 %vm108_vm1, %v5505_v52  ;;  %4936 = vmatmul.mubr.msk.bf16.gmra.mrb[12].mxu1 %vm108_vm1, %v5506_v53  ;;  %v5550_v52 = vld [vmem:[%s6502_s0 + $0x70] sm:$0xff]  }
  0xa3   :  { %4943 = vmatprep.mubr.msk.bf16.mxu0 %vm108_vm1, %v4193_v54  ;;  %4983 = vmatprep.mubr.msk.bf16.mxu1 %vm108_vm1, %v5510_v55  ;;  %v5551_v53 = vld [vmem:[%s6503_s1 + $0x70] sm:$0xff]   ;;  %v5552_v54 = vld [vmem:[%s6502_s0 + $0x78] sm:$0xff]  }
  0xa4   :  { %v5553_v55 = vld [vmem:[%s6503_s1 + $0x78] sm:$0xff]  }
  0xaa   :  { %4944 = vmatmul.mubr.msk.bf16.vlgmr.msra.gmra.mrb[16].mxu0 %vm108_vm1, %v4194_v60  ;;  %4984 = vmatmul.mubr.msk.bf16.vlgmr.msra.gmra.mrb[16].mxu1 %vm108_vm1, %v5512_v61  ;;  %v5559_v60 = vld [vmem:[%s6502_s0 + $0x90] sm:$0xff]  }
  0xab   :  { %4960 = vmatpush3.bf16.msra.mxu0 %v5511_v43  ;;  %5000 = vmatpush3.bf16.msra.mxu1 %v5511_v43  ;;  %v5543_v43 = vld [vmem:[%s6502_s0 + $0x58] sm:$0xff]   ;;  %v5560_v61 = vld [vmem:[%s6503_s1 + $0x90] sm:$0xff]  }
  0xac   :  { %4947 = vmatprep.mubr.msk.bf16.mxu0 %vm108_vm1, %v4195_v62  ;;  %4987 = vmatprep.mubr.msk.bf16.mxu1 %vm108_vm1, %v5514_v63  ;;  %v5561_v62 = vld [vmem:[%s6502_s0 + $0x5c] sm:$0xff]  }
  0xad   :  { %5406 = vmatprep.subr.msk.bf16.mxu0 %vm133_vm0, %v5520_v0  ;;  %5408 = vmatprep.subr.msk.bf16.mxu1 %vm133_vm0, %v5520_v0  ;;  %v5562_v63 = vld [vmem:[%s6503_s1 + $0x5c] sm:$0xff]   ;;  %v5563_v0 = vld [vmem:[%s6502_s0 + $0x64] sm:$0xff]  }
  0xaf   :  { %4962 = vmatpush3.bf16.msra.mxu0 %v2257_v5  ;;  %5002 = vmatpush3.bf16.msra.mxu1 %v2257_v5  ;;  %v3589_v5 = vsel %vm133_vm0, %v5574_v4, 0 }
  0xb0   :  { %5019 = vmatprep.subr.bf16.mxu0 %v5529_v6  ;;  %5039 = vmatprep.subr.bf16.mxu1 %v5529_v6 }
  0xb2   :  { %4948 = vmatmul.mubr.msk.bf16.gmra.mrb[20].mxu0 %vm108_vm1, %v4196_v7  ;;  %4988 = vmatmul.mubr.msk.bf16.gmra.mrb[20].mxu1 %vm108_vm1, %v5516_v8  ;;  %v5569_v7 = vld [vmem:[%s6503_s1 + $0x74] sm:$0xff]   ;;  %v5570_v8 = vld [vmem:[%s6502_s0 + $0x7c] sm:$0xff]  }
  0xb3   :  { %4951 = vmatprep.mubr.msk.bf16.mxu0 %vm108_vm1, %v4197_v9  ;;  %4991 = vmatprep.mubr.msk.bf16.mxu1 %vm108_vm1, %v5518_v10  ;;  %v5571_v9 = vld [vmem:[%s6503_s1 + $0x7c] sm:$0xff]   ;;  %v5572_v10 = vld [vmem:[%s6502_s0 + $0x84] sm:$0xff]  }
  0xba   :  { %4952 = vmatmul.mubr.msk.bf16.gmra.mrb[24].mxu0 %vm108_vm1, %v4198_v15  ;;  %4992 = vmatmul.mubr.msk.bf16.gmra.mrb[24].mxu1 %vm108_vm1, %v5521_v16  ;;  %v5578_v15 = vld [vmem:[%s6503_s1 + $0x94] sm:$0xff]   ;;  %v5579_v16 = vld [vmem:[%s6502_s0 + $0x60] sm:$0xff]  }
  0xbb   :  { %4955 = vmatprep.mubr.msk.bf16.mxu0 %vm108_vm1, %v4199_v17  ;;  %4995 = vmatprep.mubr.msk.bf16.mxu1 %vm108_vm1, %v5523_v18  ;;  %v5580_v17 = vld [vmem:[%s6503_s1 + $0x60] sm:$0xff]   ;;  %v5581_v18 = vld [vmem:[%s6502_s0 + $0x68] sm:$0xff]  }
  0xc2   :  { %4956 = vmatmul.mubr.msk.bf16.gmra.mrb[28].mxu0 %vm108_vm1, %v4200_v22  ;;  %4996 = vmatmul.mubr.msk.bf16.gmra.mrb[28].mxu1 %vm108_vm1, %v5525_v23  ;;  %v5585_v22 = vld [vmem:[%s6502_s0 + $0x78] sm:$0xff]  }
  0xc3   :  { %4963 = vmatprep.mubr.msk.bf16.mxu0 %vm108_vm1, %v4211_v24  ;;  %5003 = vmatprep.mubr.msk.bf16.mxu1 %vm108_vm1, %v5527_v25  ;;  %v5586_v23 = vld [vmem:[%s6503_s1 + $0x78] sm:$0xff]   ;;  %v5587_v24 = vld [vmem:[%s6502_s0 + $0x80] sm:$0xff]  }
  0xc4   :  { %v5588_v25 = vld [vmem:[%s6503_s1 + $0x80] sm:$0xff]  }
  0xca   :  { %4964 = vmatmul.mubr.msk.bf16.vlgmr.msra.gmra.mrb[16].mxu0 %vm108_vm1, %v4212_v26  ;;  %5004 = vmatmul.mubr.msk.bf16.vlgmr.msra.gmra.mrb[16].mxu1 %vm108_vm1, %v5528_v27  ;;  %v5589_v26 = vld [vmem:[%s6502_s0 + $0x88] sm:$0xff]  }
  0xcb   :  { %5020 = vmatpush3.bf16.msra.mxu0 %v5529_v6  ;;  %5040 = vmatpush3.bf16.msra.mxu1 %v5529_v6  ;;  %v5568_v6 = vld [vmem:[%s6502_s0 + $0x74] sm:$0xff]   ;;  %v5590_v27 = vld [vmem:[%s6503_s1 + $0x88] sm:$0xff]  }
  0xcc   :  { %4967 = vmatprep.mubr.msk.bf16.mxu0 %vm108_vm1, %v4213_v28  ;;  %5007 = vmatprep.mubr.msk.bf16.mxu1 %vm108_vm1, %v5531_v29  ;;  %v5591_v28 = vld [vmem:[%s6502_s0 + $0x90] sm:$0xff]  }
  0xcd   :  { %5409 = vmatprep.subr.msk.bf16.mxu0 %vm133_vm0, %v5538_v30  ;;  %5410 = vmatprep.subr.msk.bf16.mxu1 %vm133_vm0, %v5538_v30  ;;  %v5592_v29 = vld [vmem:[%s6503_s1 + $0x90] sm:$0xff]   ;;  %v5593_v30 = vld [vmem:[%s6502_s0 + $0x98] sm:$0xff]  }
  0xcf   :  { %5022 = vmatpush3.bf16.msra.mxu0 %v2787_v31  ;;  %5042 = vmatpush3.bf16.msra.mxu1 %v2787_v31  ;;  %v5594_v31 = vld [vmem:[%s6503_s1 + $0x98] sm:$0xff]  }
  0xd0   :  { %5059 = vmatprep.subr.bf16.mxu0 %v5547_v32  ;;  %5079 = vmatprep.subr.bf16.mxu1 %v5547_v32 }
  0xd2   :  { %4968 = vmatmul.mubr.msk.bf16.gmra.mrb[20].mxu0 %vm108_vm1, %v4214_v33  ;;  %5008 = vmatmul.mubr.msk.bf16.gmra.mrb[20].mxu1 %vm108_vm1, %v5533_v34  ;;  %v6443_v33 = vld [vmem:[%s6504_s3] ss:$0 sm:$0xff] }
  0xd3   :  { %4971 = vmatprep.mubr.msk.bf16.mxu0 %vm108_vm1, %v4215_v35  ;;  %5011 = vmatprep.mubr.msk.bf16.mxu1 %vm108_vm1, %v5535_v36 }
  0xda   :  { %4972 = vmatmul.mubr.msk.bf16.gmra.mrb[24].mxu0 %vm108_vm1, %v4216_v37  ;;  %5012 = vmatmul.mubr.msk.bf16.gmra.mrb[24].mxu1 %vm108_vm1, %v5537_v38 }
  0xdb   :  { %4975 = vmatprep.mubr.msk.bf16.mxu0 %vm108_vm1, %v4217_v39  ;;  %5015 = vmatprep.mubr.msk.bf16.mxu1 %vm108_vm1, %v5540_v40 }
  0xe2   :  { %4976 = vmatmul.mubr.msk.bf16.gmra.mrb[28].mxu0 %vm108_vm1, %v4218_v41  ;;  %5016 = vmatmul.mubr.msk.bf16.gmra.mrb[28].mxu1 %vm108_vm1, %v5542_v42 }
  0xe3   :  { %5023 = vmatprep.mubr.msk.bf16.mxu0 %vm108_vm1, %v5543_v43  ;;  %5043 = vmatprep.mubr.msk.bf16.mxu1 %vm108_vm1, %v5544_v44 }
  0xea   :  { %5024 = vmatmul.mubr.msk.bf16.vlgmr.msra.gmra.mrb[16].mxu0 %vm108_vm1, %v5545_v45  ;;  %5044 = vmatmul.mubr.msk.bf16.vlgmr.msra.gmra.mrb[16].mxu1 %vm108_vm1, %v5546_v46 }
  0xeb   :  { %5060 = vmatpush3.bf16.msra.mxu0 %v5547_v32  ;;  %5080 = vmatpush3.bf16.msra.mxu1 %v5547_v32 }
  0xec   :  { %5027 = vmatprep.mubr.msk.bf16.mxu0 %vm108_vm1, %v5548_v47  ;;  %5047 = vmatprep.mubr.msk.bf16.mxu1 %vm108_vm1, %v5549_v48 }
  0xed   :  { %5411 = vmatprep.subr.msk.bf16.mxu0 %vm133_vm0, %v5556_v49  ;;  %5412 = vmatprep.subr.msk.bf16.mxu1 %vm133_vm0, %v5556_v49 }
  0xef   :  { %5062 = vmatpush3.bf16.msra.mxu0 %v3188_v50  ;;  %5082 = vmatpush3.bf16.msra.mxu1 %v3188_v50 }
  0xf0   :  { %5099 = vmatprep.subr.bf16.mxu0 %v5565_v51  ;;  %5119 = vmatprep.subr.bf16.mxu1 %v5565_v51 }
  0xf2   :  { %5028 = vmatmul.mubr.msk.bf16.gmra.mrb[20].mxu0 %vm108_vm1, %v5550_v52  ;;  %5048 = vmatmul.mubr.msk.bf16.gmra.mrb[20].mxu1 %vm108_vm1, %v5551_v53 }
  0xf3   :  { %5031 = vmatprep.mubr.msk.bf16.mxu0 %vm108_vm1, %v5552_v54  ;;  %5051 = vmatprep.mubr.msk.bf16.mxu1 %vm108_vm1, %v5553_v55 }
  0xfa   :  { %5032 = vmatmul.mubr.msk.bf16.gmra.mrb[24].mxu0 %vm108_vm1, %v5554_v56  ;;  %5052 = vmatmul.mubr.msk.bf16.gmra.mrb[24].mxu1 %vm108_vm1, %v5555_v57 }
  0xfb   :  { %5035 = vmatprep.mubr.msk.bf16.mxu0 %vm108_vm1, %v5557_v58  ;;  %5055 = vmatprep.mubr.msk.bf16.mxu1 %vm108_vm1, %v5558_v59 }
 0x102   :  { %5036 = vmatmul.mubr.msk.bf16.gmra.mrb[28].mxu0 %vm108_vm1, %v5559_v60  ;;  %5056 = vmatmul.mubr.msk.bf16.gmra.mrb[28].mxu1 %vm108_vm1, %v5560_v61 }
 0x103   :  { %5063 = vmatprep.mubr.msk.bf16.mxu0 %vm108_vm1, %v5561_v62  ;;  %5083 = vmatprep.mubr.msk.bf16.mxu1 %vm108_vm1, %v5562_v63 }
 0x10a   :  { %5064 = vmatmul.mubr.msk.bf16.vlgmr.msra.gmra.mrb[16].mxu0 %vm108_vm1, %v5563_v0  ;;  %5084 = vmatmul.mubr.msk.bf16.vlgmr.msra.gmra.mrb[16].mxu1 %vm108_vm1, %v5564_v1 }
 0x10b   :  { %5100 = vmatpush3.bf16.msra.mxu0 %v5565_v51  ;;  %5120 = vmatpush3.bf16.msra.mxu1 %v5565_v51 }
 0x10c   :  { %5067 = vmatprep.mubr.msk.bf16.mxu0 %vm108_vm1, %v5566_v2  ;;  %5087 = vmatprep.mubr.msk.bf16.mxu1 %vm108_vm1, %v5567_v3 }
 0x10d   :  { %5413 = vmatprep.subr.msk.bf16.mxu0 %vm133_vm0, %v5574_v4  ;;  %5414 = vmatprep.subr.msk.bf16.mxu1 %vm133_vm0, %v5574_v4 }
 0x10f   :  { %5102 = vmatpush3.bf16.msra.mxu0 %v3589_v5  ;;  %5122 = vmatpush3.bf16.msra.mxu1 %v3589_v5 }
 0x112   :  { %5068 = vmatmul.mubr.msk.bf16.gmra.mrb[20].mxu0 %vm108_vm1, %v5568_v6  ;;  %5088 = vmatmul.mubr.msk.bf16.gmra.mrb[20].mxu1 %vm108_vm1, %v5569_v7 }
 0x113   :  { %5071 = vmatprep.mubr.msk.bf16.mxu0 %vm108_vm1, %v5570_v8  ;;  %5091 = vmatprep.mubr.msk.bf16.mxu1 %vm108_vm1, %v5571_v9 }
 0x11a   :  { %5072 = vmatmul.mubr.msk.bf16.gmra.mrb[24].mxu0 %vm108_vm1, %v5572_v10  ;;  %5092 = vmatmul.mubr.msk.bf16.gmra.mrb[24].mxu1 %vm108_vm1, %v5573_v11 }
 0x11b   :  { %5075 = vmatprep.mubr.msk.bf16.mxu0 %vm108_vm1, %v5575_v12  ;;  %5095 = vmatprep.mubr.msk.bf16.mxu1 %vm108_vm1, %v5576_v13 }
 0x122   :  { %5076 = vmatmul.mubr.msk.bf16.gmra.mrb[28].mxu0 %vm108_vm1, %v5577_v14  ;;  %5096 = vmatmul.mubr.msk.bf16.gmra.mrb[28].mxu1 %vm108_vm1, %v5578_v15 }
 0x123   :  { %5103 = vmatprep.mubr.msk.bf16.mxu0 %vm108_vm1, %v5579_v16  ;;  %5123 = vmatprep.mubr.msk.bf16.mxu1 %vm108_vm1, %v5580_v17 }
 0x12a   :  { %5104 = vmatmul.mubr.msk.bf16.vlgmr.msra.gmra.mrb[16].mxu0 %vm108_vm1, %v5581_v18  ;;  %5124 = vmatmul.mubr.msk.bf16.vlgmr.msra.gmra.mrb[16].mxu1 %vm108_vm1, %v5582_v19 }
 0x12b   :  { %5107 = vmatprep.mubr.msk.bf16.mxu0 %vm108_vm1, %v5583_v20  ;;  %5127 = vmatprep.mubr.msk.bf16.mxu1 %vm108_vm1, %v5584_v21 }
 0x132   :  { %5108 = vmatmul.mubr.msk.bf16.gmra.mrb[20].mxu0 %vm108_vm1, %v5585_v22  ;;  %5128 = vmatmul.mubr.msk.bf16.gmra.mrb[20].mxu1 %vm108_vm1, %v5586_v23 }
 0x133   :  { %5111 = vmatprep.mubr.msk.bf16.mxu0 %vm108_vm1, %v5587_v24  ;;  %5131 = vmatprep.mubr.msk.bf16.mxu1 %vm108_vm1, %v5588_v25 }
 0x13a   :  { %5112 = vmatmul.mubr.msk.bf16.gmra.mrb[24].mxu0 %vm108_vm1, %v5589_v26  ;;  %5132 = vmatmul.mubr.msk.bf16.gmra.mrb[24].mxu1 %vm108_vm1, %v5590_v27 }
 0x13b   :  { %5115 = vmatprep.mubr.msk.bf16.mxu0 %vm108_vm1, %v5591_v28  ;;  %5135 = vmatprep.mubr.msk.bf16.mxu1 %vm108_vm1, %v5592_v29 }
 0x142   :  { %5116 = vmatmul.mubr.msk.bf16.gmra.mrb[28].mxu0 %vm108_vm1, %v5593_v30  ;;  %5136 = vmatmul.mubr.msk.bf16.gmra.mrb[28].mxu1 %vm108_vm1, %v5594_v31 }
 0x15d   :  { %v4905_v32 = vpop.f32.mrb[0].mxu0  ;;  %v4925_v34 = vpop.f32.mrb[0].mxu1 }
 0x15e   :  { %v1923_v35 = vmax.f32 %v4905_v32, %v4925_v34  ;;  %v1649_v36 = vpop.f32.mrb[1].mxu0  ;;  %v1842_v37 = vpop.f32.mrb[1].mxu1 }
 0x15f   :  { %v1921_v38 = vmax.f32 %v1649_v36, %v1842_v37  ;;  %v4906_v39 = vpop.f32.mrb[2].mxu0  ;;  %v4926_v40 = vpop.f32.mrb[2].mxu1 }
 0x160   :  { %v1945_v41 = vadd.f32 %v6443_v33, %v1923_v35  ;;  %v1924_v42 = vmax.f32 %v4906_v39, %v4926_v40  ;;  %v1652_v43 = vpop.f32.mrb[3].mxu0  ;;  %v1845_v44 = vpop.f32.mrb[3].mxu1 }
 0x161   :  { %v1943_v45 = vadd.f32 %v6443_v33, %v1921_v38  ;;  %v1922_v46 = vmax.f32 %v1652_v43, %v1845_v44 }
 0x162   :  { %v1946_v47 = vadd.f32 %v6443_v33, %v1924_v42  ;;  %v1961_v49 = vmax.f32 %v1945_v41, 0.0 }
 0x163   :  { %v1944_v48 = vadd.f32 %v6443_v33, %v1922_v46  ;;  %v1959_v51 = vmax.f32 %v1943_v45, 0.0 }
 0x164   :  { %v1962_v50 = vmax.f32 %v1946_v47, 0.0 }
 0x165   :  { %v1960_v52 = vmax.f32 %v1944_v48, 0.0  ;;  %v4909_v53 = vpop.f32.mrb[4].mxu0  ;;  %v4929_v54 = vpop.f32.mrb[4].mxu1 }
 0x166   :  { %v1978_v55 = vmax.f32 %v1961_v49, %v1962_v50  ;;  %v1927_v56 = vmax.f32 %v4909_v53, %v4929_v54  ;;  %v1665_v57 = vpop.f32.mrb[5].mxu0  ;;  %v1858_v58 = vpop.f32.mrb[5].mxu1 }
 0x167   :  { %v1975_v59 = vmax.f32 %v1959_v51, %v1960_v52  ;;  %v1925_v60 = vmax.f32 %v1665_v57, %v1858_v58  ;;  %v4910_v61 = vpop.f32.mrb[6].mxu0  ;;  %v4930_v62 = vpop.f32.mrb[6].mxu1 }
 0x168   :  { %v1949_v63 = vadd.f32 %v6443_v33, %v1927_v56  ;;  %v1928_v0 = vmax.f32 %v4910_v61, %v4930_v62  ;;  %v1668_v1 = vpop.f32.mrb[7].mxu0  ;;  %v1861_v2 = vpop.f32.mrb[7].mxu1 }
 0x169   :  { %v4495_v3 = vpack.c.bf16 %v1978_v55, %v1975_v59  ;;  %v1947_v4 = vadd.f32 %v6443_v33, %v1925_v60  ;;  %v1926_v5 = vmax.f32 %v1668_v1, %v1861_v2 }
 0x16a   :  { %v1950_v6 = vadd.f32 %v6443_v33, %v1928_v0  ;;  %v1965_v8 = vmax.f32 %v1949_v63, 0.0 }
 0x16b   :  { %4496 = vst [vmem:[%s6505_s4] sm:$0xff] %v4495_v3   ;;  %v1948_v7 = vadd.f32 %v6443_v33, %v1926_v5  ;;  %v1963_v10 = vmax.f32 %v1947_v4, 0.0 }
 0x16c   :  { %v1966_v9 = vmax.f32 %v1950_v6, 0.0 }
 0x16d   :  { %v1964_v11 = vmax.f32 %v1948_v7, 0.0  ;;  %v4913_v12 = vpop.f32.mrb[8].mxu0  ;;  %v4933_v13 = vpop.f32.mrb[8].mxu1 }
 0x16e   :  { %v1984_v14 = vmax.f32 %v1965_v8, %v1966_v9  ;;  %v1931_v15 = vmax.f32 %v4913_v12, %v4933_v13  ;;  %v1681_v16 = vpop.f32.mrb[9].mxu0  ;;  %v1874_v17 = vpop.f32.mrb[9].mxu1 }
 0x16f   :  { %v1981_v18 = vmax.f32 %v1963_v10, %v1964_v11  ;;  %v1929_v19 = vmax.f32 %v1681_v16, %v1874_v17  ;;  %v4914_v20 = vpop.f32.mrb[10].mxu0  ;;  %v4934_v21 = vpop.f32.mrb[10].mxu1 }
 0x170   :  { %v1953_v22 = vadd.f32 %v6443_v33, %v1931_v15  ;;  %v1932_v23 = vmax.f32 %v4914_v20, %v4934_v21  ;;  %v1684_v24 = vpop.f32.mrb[11].mxu0  ;;  %v1877_v25 = vpop.f32.mrb[11].mxu1 }
 0x171   :  { %v4500_v26 = vpack.c.bf16 %v1984_v14, %v1981_v18  ;;  %v1951_v27 = vadd.f32 %v6443_v33, %v1929_v19  ;;  %v1930_v28 = vmax.f32 %v1684_v24, %v1877_v25 }
 0x172   :  { %v1954_v29 = vadd.f32 %v6443_v33, %v1932_v23  ;;  %v1969_v31 = vmax.f32 %v1953_v22, 0.0 }
 0x173   :  { %4532 = vst [vmem:[%s6505_s4 + $0x8] sm:$0xff] %v4500_v26   ;;  %v1952_v30 = vadd.f32 %v6443_v33, %v1930_v28  ;;  %v1967_v34 = vmax.f32 %v1951_v27, 0.0 }
 0x174   :  { %v1970_v32 = vmax.f32 %v1954_v29, 0.0 }
 0x175   :  { %v1968_v35 = vmax.f32 %v1952_v30, 0.0  ;;  %v4917_v36 = vpop.f32.mrb[12].mxu0  ;;  %v4937_v37 = vpop.f32.mrb[12].mxu1 }
 0x176   :  { %v1990_v38 = vmax.f32 %v1969_v31, %v1970_v32  ;;  %v1935_v39 = vmax.f32 %v4917_v36, %v4937_v37  ;;  %v1697_v40 = vpop.f32.mrb[13].mxu0  ;;  %v1890_v41 = vpop.f32.mrb[13].mxu1 }
 0x177   :  { %v1987_v42 = vmax.f32 %v1967_v34, %v1968_v35  ;;  %v1933_v43 = vmax.f32 %v1697_v40, %v1890_v41  ;;  %v4918_v44 = vpop.f32.mrb[14].mxu0  ;;  %v4938_v45 = vpop.f32.mrb[14].mxu1 }
 0x178   :  { %v1957_v46 = vadd.f32 %v6443_v33, %v1935_v39  ;;  %v1936_v47 = vmax.f32 %v4918_v44, %v4938_v45  ;;  %v1700_v48 = vpop.f32.mrb[15].mxu0  ;;  %v1893_v49 = vpop.f32.mrb[15].mxu1 }
 0x179   :  { %v4505_v50 = vpack.c.bf16 %v1990_v38, %v1987_v42  ;;  %v1955_v51 = vadd.f32 %v6443_v33, %v1933_v43  ;;  %v1934_v52 = vmax.f32 %v1700_v48, %v1893_v49 }
 0x17a   :  { %v1958_v53 = vadd.f32 %v6443_v33, %v1936_v47  ;;  %v1973_v55 = vmax.f32 %v1957_v46, 0.0 }
 0x17b   :  { %4533 = vst [vmem:[%s6505_s4 + $0x10] sm:$0xff] %v4505_v50   ;;  %v1956_v54 = vadd.f32 %v6443_v33, %v1934_v52  ;;  %v1971_v57 = vmax.f32 %v1955_v51, 0.0 }
 0x17c   :  { %v1974_v56 = vmax.f32 %v1958_v53, 0.0 }
 0x17d   :  { %v1972_v58 = vmax.f32 %v1956_v54, 0.0 }
 0x17e   :  { %v1996_v59 = vmax.f32 %v1973_v55, %v1974_v56 }
 0x17f   :  { %v1993_v60 = vmax.f32 %v1971_v57, %v1972_v58 }
 0x181   :  { %v4510_v61 = vpack.c.bf16 %v1996_v59, %v1993_v60 }
 0x183   :  { %4534 = vst [vmem:[%s6505_s4 + $0x18] sm:$0xff] %v4510_v61  }
 0x1fd   :  { %v5105_v62 = vpop.f32.mrb[16].mxu0  ;;  %v5125_v63 = vpop.f32.mrb[16].mxu1 }
 0x1fe   :  { %v3899_v0 = vmax.f32 %v5105_v62, %v5125_v63  ;;  %v3625_v1 = vpop.f32.mrb[17].mxu0  ;;  %v3818_v2 = vpop.f32.mrb[17].mxu1 }
 0x1ff   :  { %v3897_v3 = vmax.f32 %v3625_v1, %v3818_v2  ;;  %v5106_v4 = vpop.f32.mrb[18].mxu0  ;;  %v5126_v5 = vpop.f32.mrb[18].mxu1 }
 0x200   :  { %v3915_v6 = vadd.f32 %v6443_v33, %v3899_v0  ;;  %v3900_v7 = vmax.f32 %v5106_v4, %v5126_v5  ;;  %v3628_v8 = vpop.f32.mrb[19].mxu0  ;;  %v3821_v9 = vpop.f32.mrb[19].mxu1 }
 0x201   :  { %v3913_v10 = vadd.f32 %v6443_v33, %v3897_v3  ;;  %v3898_v11 = vmax.f32 %v3628_v8, %v3821_v9 }
 0x202   :  { %v3916_v12 = vadd.f32 %v6443_v33, %v3900_v7  ;;  %v3931_v14 = vmax.f32 %v3915_v6, 0.0 }
 0x203   :  { %v3914_v13 = vadd.f32 %v6443_v33, %v3898_v11  ;;  %v3929_v16 = vmax.f32 %v3913_v10, 0.0 }
 0x204   :  { %v3932_v15 = vmax.f32 %v3916_v12, 0.0 }
 0x205   :  { %v3930_v17 = vmax.f32 %v3914_v13, 0.0  ;;  %v5109_v18 = vpop.f32.mrb[20].mxu0  ;;  %v5129_v19 = vpop.f32.mrb[20].mxu1 }
 0x206   :  { %v3949_v20 = vmax.f32 %v3931_v14, %v3932_v15  ;;  %v3903_v21 = vmax.f32 %v5109_v18, %v5129_v19  ;;  %v3641_v22 = vpop.f32.mrb[21].mxu0  ;;  %v3834_v23 = vpop.f32.mrb[21].mxu1 }
 0x207   :  { %v3945_v24 = vmax.f32 %v3929_v16, %v3930_v17  ;;  %v3901_v25 = vmax.f32 %v3641_v22, %v3834_v23  ;;  %v5110_v26 = vpop.f32.mrb[22].mxu0  ;;  %v5130_v27 = vpop.f32.mrb[22].mxu1 }
 0x208   :  { %v3919_v28 = vadd.f32 %v6443_v33, %v3903_v21  ;;  %v3904_v29 = vmax.f32 %v5110_v26, %v5130_v27  ;;  %v3644_v30 = vpop.f32.mrb[23].mxu0  ;;  %v3837_v31 = vpop.f32.mrb[23].mxu1 }
 0x209   :  { %v4515_v32 = vpack.c.bf16 %v3949_v20, %v3945_v24  ;;  %v3917_v34 = vadd.f32 %v6443_v33, %v3901_v25  ;;  %v3902_v35 = vmax.f32 %v3644_v30, %v3837_v31 }
 0x20a   :  { %v3920_v36 = vadd.f32 %v6443_v33, %v3904_v29  ;;  %v3935_v38 = vmax.f32 %v3919_v28, 0.0 }
 0x20b   :  { %4535 = vst [vmem:[%s6505_s4 + $0x20] sm:$0xff] %v4515_v32   ;;  %v3918_v37 = vadd.f32 %v6443_v33, %v3902_v35  ;;  %v3933_v40 = vmax.f32 %v3917_v34, 0.0 }
 0x20c   :  { %v3936_v39 = vmax.f32 %v3920_v36, 0.0 }
 0x20d   :  { %v3934_v41 = vmax.f32 %v3918_v37, 0.0  ;;  %v5113_v42 = vpop.f32.mrb[24].mxu0  ;;  %v5133_v43 = vpop.f32.mrb[24].mxu1 }
 0x20e   :  { %v3955_v44 = vmax.f32 %v3935_v38, %v3936_v39  ;;  %v3907_v45 = vmax.f32 %v5113_v42, %v5133_v43  ;;  %v3657_v46 = vpop.f32.mrb[25].mxu0  ;;  %v3850_v47 = vpop.f32.mrb[25].mxu1 }
 0x20f   :  { %v3952_v48 = vmax.f32 %v3933_v40, %v3934_v41  ;;  %v3905_v49 = vmax.f32 %v3657_v46, %v3850_v47  ;;  %v5114_v50 = vpop.f32.mrb[26].mxu0  ;;  %v5134_v51 = vpop.f32.mrb[26].mxu1 }
 0x210   :  { %v3923_v52 = vadd.f32 %v6443_v33, %v3907_v45  ;;  %v3908_v53 = vmax.f32 %v5114_v50, %v5134_v51  ;;  %v3660_v54 = vpop.f32.mrb[27].mxu0  ;;  %v3853_v55 = vpop.f32.mrb[27].mxu1 }
 0x211   :  { %v4520_v56 = vpack.c.bf16 %v3955_v44, %v3952_v48  ;;  %v3921_v57 = vadd.f32 %v6443_v33, %v3905_v49  ;;  %v3906_v58 = vmax.f32 %v3660_v54, %v3853_v55 }
 0x212   :  { %v3924_v59 = vadd.f32 %v6443_v33, %v3908_v53  ;;  %v3939_v61 = vmax.f32 %v3923_v52, 0.0 }
 0x213   :  { %4536 = vst [vmem:[%s6505_s4 + $0x28] sm:$0xff] %v4520_v56   ;;  %v3922_v60 = vadd.f32 %v6443_v33, %v3906_v58  ;;  %v3937_v63 = vmax.f32 %v3921_v57, 0.0 }
 0x214   :  { %v3940_v62 = vmax.f32 %v3924_v59, 0.0 }
 0x215   :  { %v3938_v0 = vmax.f32 %v3922_v60, 0.0  ;;  %v5117_v1 = vpop.f32.mrb[28].mxu0  ;;  %v5137_v2 = vpop.f32.mrb[28].mxu1 }
 0x216   :  { %v3961_v3 = vmax.f32 %v3939_v61, %v3940_v62  ;;  %v3911_v4 = vmax.f32 %v5117_v1, %v5137_v2  ;;  %v3673_v5 = vpop.f32.mrb[29].mxu0  ;;  %v3866_v6 = vpop.f32.mrb[29].mxu1 }
 0x217   :  { %v3958_v7 = vmax.f32 %v3937_v63, %v3938_v0  ;;  %v3909_v8 = vmax.f32 %v3673_v5, %v3866_v6  ;;  %v5118_v9 = vpop.f32.mrb[30].mxu0  ;;  %v5138_v10 = vpop.f32.mrb[30].mxu1 }
 0x218   :  { %v3927_v11 = vadd.f32 %v6443_v33, %v3911_v4  ;;  %v3912_v12 = vmax.f32 %v5118_v9, %v5138_v10  ;;  %v3676_v13 = vpop.f32.mrb[31].mxu0  ;;  %v3869_v14 = vpop.f32.mrb[31].mxu1 }
 0x219   :  { %v4525_v15 = vpack.c.bf16 %v3961_v3, %v3958_v7  ;;  %v3925_v16 = vadd.f32 %v6443_v33, %v3909_v8  ;;  %v3910_v17 = vmax.f32 %v3676_v13, %v3869_v14 }
 0x21a   :  { %v3928_v18 = vadd.f32 %v6443_v33, %v3912_v12  ;;  %v3943_v20 = vmax.f32 %v3927_v11, 0.0 }
 0x21b   :  { %4537 = vst [vmem:[%s6505_s4 + $0x30] sm:$0xff] %v4525_v15   ;;  %v3926_v19 = vadd.f32 %v6443_v33, %v3910_v17  ;;  %v3941_v22 = vmax.f32 %v3925_v16, 0.0 }
 0x21c   :  { %v3944_v21 = vmax.f32 %v3928_v18, 0.0 }
 0x21d   :  { %v3942_v23 = vmax.f32 %v3926_v19, 0.0 }
 0x21e   :  { %v3967_v24 = vmax.f32 %v3943_v20, %v3944_v21 }
 0x21f   :  { %v3964_v25 = vmax.f32 %v3941_v22, %v3942_v23 }
 0x221   :  { %v4530_v26 = vpack.c.bf16 %v3967_v24, %v3964_v25 }
 0x223   :  { %4538 = vst [vmem:[%s6505_s4 + $0x38] sm:$0xff] %v4530_v26  }

// kernel: cnn_forward.8
= control target key start
LH: loop header
LB: loop body
LE: loop exit
PB: predicated region body
PF: predicated region fallthrough
CT: control target
= control target key end

     0   :  { %s987_s12 = smov 0   ;;  %s989_s13 = smov 0   ;;  %s1175_s0 = inlined_call_operand.vmem [shape: bf16[2,256], index: 0, kind: input, shape index: {}]   ;;  %s1176_s1 = inlined_call_operand.vmem [shape: bf16[256,512], index: 1, kind: input, shape index: {}]   ;;  %s1177_s2 = inlined_call_operand.vmem [shape: f32[1,512], index: 2, kind: input, shape index: {}]   ;;  %s1178_s3 = inlined_call_operand.vmem [shape: bf16[2,512], index: 3, kind: output, shape index: {}]  }
   0x1   :  { %s991_s14 = smov 0   ;;  %s993_s15 = smov 0  }
   0x2   :  { %s995_s16 = smov 0  }
   0x3 LB: > { %s22_s17 = sadd.s32 1, %s960_s15  ;;  %p65_p1 = scmp.ne.s32.totalorder %s952_s13, %s948_s12  ;;  %s964_s16 = sphi %s995_s16, %s13_s16   ;;  %s960_s15 = sphi %s993_s15, %s1182_s15   ;;  %s956_s14 = sphi %s991_s14, %s1181_s14   ;;  %s952_s13 = sphi %s989_s13, %s1180_s13   ;;  %s948_s12 = sphi %s987_s12, %s1179_s12  }
   0x4   : > { %p23_p0 = scmp.ge.s32.totalorder %s22_s17, 2  ;;  %p66_p2 = scmp.eq.s32.totalorder %s964_s16, 0 }
   0x5   : > { %s58_s19 = sadd.s32 1, %s952_s13  ;;  %p791_p5 = scmp.ge.s32.totalorder %s964_s16, 2 }
   0x6   : > { %s1184_s17 = smov (%p23_p0, %s22_s17), 0  ;;  %p67_p3 = por %p66_p2, %p65_p1 }
   0x7   : > { %s55_s18 = ssub.s32 %s960_s15, %s1184_s17  ;;  %152 = sbr.rel (%p791_p5) target bundleno = 34 (0x22), region = 20 }
   0x8   : > { %p56_p4 = scmp.eq.s32.totalorder %s55_s18, 0 }
   0xa   : > { %s1022_s20 = scalar_select %p56_p4, %s952_s13, %s58_s19  }
   0xe   : > { %155 = sbr.rel (!%p67_p3) target bundleno = 34 (0x22), region = 24  ;;  %s157_s21 = sand.u32 (%p67_p3), 1, %s952_s13  }
   0xf   : > { %s836_s22 = sshll.u32 (%p67_p3), %s960_s15, 3  ;;  %s792_s23 = sshll.u32 (%p67_p3), %s157_s21, 8 }
  0x10   : > { %s1030_s26 = scalar_lea.vmem (%p67_p3), %s1176_s1, %s836_s22  ;;  %s1035_s27 = scalar_lea.vmem (%p67_p3), [#allocation2], %s792_s23 }
  0x11   : > { %v252_v0 = vld [vmem:[%s1030_s26] sm:$0xff] (%p67_p3)  ;;  %v254_v1 = vld [vmem:[%s1030_s26 + $0x10] sm:$0xff] (%p67_p3) }
  0x12   : > { %v256_v2 = vld [vmem:[%s1030_s26 + $0x20] sm:$0xff] (%p67_p3)  ;;  %253 = vst [vmem:[%s1035_s27] sm:$0xff] (%p67_p3), %v252_v0  ;;  %255 = vst [vmem:[%s1035_s27 + $0x8] sm:$0xff] (%p67_p3), %v254_v1  ;;  %v258_v3 = vld [vmem:[%s1030_s26 + $0x30] sm:$0xff] (%p67_p3) }
  0x13   : > { %257 = vst [vmem:[%s1035_s27 + $0x10] sm:$0xff] (%p67_p3), %v256_v2  ;;  %v260_v4 = vld [vmem:[%s1030_s26 + $0x40] sm:$0xff] (%p67_p3)  ;;  %v262_v5 = vld [vmem:[%s1030_s26 + $0x50] sm:$0xff] (%p67_p3)  ;;  %259 = vst [vmem:[%s1035_s27 + $0x18] sm:$0xff] (%p67_p3), %v258_v3 }
  0x14   : > { %261 = vst [vmem:[%s1035_s27 + $0x20] sm:$0xff] (%p67_p3), %v260_v4  ;;  %263 = vst [vmem:[%s1035_s27 + $0x28] sm:$0xff] (%p67_p3), %v262_v5  ;;  %v264_v6 = vld [vmem:[%s1030_s26 + $0x60] sm:$0xff] (%p67_p3)  ;;  %v266_v7 = vld [vmem:[%s1030_s26 + $0x70] sm:$0xff] (%p67_p3) }
  0x15   : > { %v268_v8 = vld [vmem:[%s1030_s26 + $0x80] sm:$0xff]  ;;  %265 = vst [vmem:[%s1035_s27 + $0x30] sm:$0xff] %v264_v6  ;;  %267 = vst [vmem:[%s1035_s27 + $0x38] sm:$0xff] %v266_v7  ;;  %v270_v9 = vld [vmem:[%s1030_s26 + $0x90] sm:$0xff] }
  0x16   : > { %269 = vst [vmem:[%s1035_s27 + $0x40] sm:$0xff] %v268_v8  ;;  %v272_v10 = vld [vmem:[%s1030_s26 + $0xa0] sm:$0xff]  ;;  %v274_v11 = vld [vmem:[%s1030_s26 + $0xb0] sm:$0xff]  ;;  %271 = vst [vmem:[%s1035_s27 + $0x48] sm:$0xff] %v270_v9 }
  0x17   : > { %273 = vst [vmem:[%s1035_s27 + $0x50] sm:$0xff] %v272_v10  ;;  %275 = vst [vmem:[%s1035_s27 + $0x58] sm:$0xff] %v274_v11  ;;  %v276_v12 = vld [vmem:[%s1030_s26 + $0xc0] sm:$0xff]  ;;  %v278_v13 = vld [vmem:[%s1030_s26 + $0xd0] sm:$0xff] }
  0x18   : > { %v280_v14 = vld [vmem:[%s1030_s26 + $0xe0] sm:$0xff]  ;;  %277 = vst [vmem:[%s1035_s27 + $0x60] sm:$0xff] %v276_v12  ;;  %279 = vst [vmem:[%s1035_s27 + $0x68] sm:$0xff] %v278_v13  ;;  %v282_v15 = vld [vmem:[%s1030_s26 + $0xf0] sm:$0xff] }
  0x19   : > { %281 = vst [vmem:[%s1035_s27 + $0x70] sm:$0xff] %v280_v14  ;;  %v284_v16 = vld [vmem:[%s1030_s26 + $0x100] sm:$0xff]  ;;  %v286_v17 = vld [vmem:[%s1030_s26 + $0x110] sm:$0xff]  ;;  %283 = vst [vmem:[%s1035_s27 + $0x78] sm:$0xff] %v282_v15 }
  0x1a   : > { %285 = vst [vmem:[%s1035_s27 + $0x80] sm:$0xff] %v284_v16  ;;  %287 = vst [vmem:[%s1035_s27 + $0x88] sm:$0xff] %v286_v17  ;;  %v288_v18 = vld [vmem:[%s1030_s26 + $0x120] sm:$0xff]  ;;  %v290_v19 = vld [vmem:[%s1030_s26 + $0x130] sm:$0xff] }
  0x1b   : > { %v292_v20 = vld [vmem:[%s1030_s26 + $0x140] sm:$0xff]  ;;  %289 = vst [vmem:[%s1035_s27 + $0x90] sm:$0xff] %v288_v18  ;;  %291 = vst [vmem:[%s1035_s27 + $0x98] sm:$0xff] %v290_v19  ;;  %v294_v21 = vld [vmem:[%s1030_s26 + $0x150] sm:$0xff] }
  0x1c   : > { %293 = vst [vmem:[%s1035_s27 + $0xa0] sm:$0xff] %v292_v20  ;;  %v296_v22 = vld [vmem:[%s1030_s26 + $0x160] sm:$0xff]  ;;  %v298_v23 = vld [vmem:[%s1030_s26 + $0x170] sm:$0xff]  ;;  %295 = vst [vmem:[%s1035_s27 + $0xa8] sm:$0xff] %v294_v21 }
  0x1d   : > { %297 = vst [vmem:[%s1035_s27 + $0xb0] sm:$0xff] %v296_v22  ;;  %299 = vst [vmem:[%s1035_s27 + $0xb8] sm:$0xff] %v298_v23  ;;  %v300_v24 = vld [vmem:[%s1030_s26 + $0x180] sm:$0xff]  ;;  %v302_v25 = vld [vmem:[%s1030_s26 + $0x190] sm:$0xff] }
  0x1e   : > { %v304_v26 = vld [vmem:[%s1030_s26 + $0x1a0] sm:$0xff]  ;;  %301 = vst [vmem:[%s1035_s27 + $0xc0] sm:$0xff] %v300_v24  ;;  %303 = vst [vmem:[%s1035_s27 + $0xc8] sm:$0xff] %v302_v25  ;;  %v306_v27 = vld [vmem:[%s1030_s26 + $0x1b0] sm:$0xff] }
  0x1f   : > { %305 = vst [vmem:[%s1035_s27 + $0xd0] sm:$0xff] %v304_v26  ;;  %v308_v28 = vld [vmem:[%s1030_s26 + $0x1c0] sm:$0xff]  ;;  %v310_v29 = vld [vmem:[%s1030_s26 + $0x1d0] sm:$0xff]  ;;  %307 = vst [vmem:[%s1035_s27 + $0xd8] sm:$0xff] %v306_v27 }
  0x20   : > { %309 = vst [vmem:[%s1035_s27 + $0xe0] sm:$0xff] %v308_v28  ;;  %311 = vst [vmem:[%s1035_s27 + $0xe8] sm:$0xff] %v310_v29  ;;  %v312_v30 = vld [vmem:[%s1030_s26 + $0x1e0] sm:$0xff]  ;;  %v314_v31 = vld [vmem:[%s1030_s26 + $0x1f0] sm:$0xff] }
  0x21   : > { %313 = vst [vmem:[%s1035_s27 + $0xf0] sm:$0xff] %v312_v30  ;;  %315 = vst [vmem:[%s1035_s27 + $0xf8] sm:$0xff] %v314_v31 }
  0x22 PF: > { %p795_p6 = scmp.ge.s32.totalorder %s964_s16, 1  ;;  %p328_p7 = scmp.lt.s32.totalorder %s964_s16, 3 }
  0x24   : > { %p329_p8 = pnand %p795_p6, %p328_p7 }
  0x25   : > { %s335_s28 = sand.u32 (!%p329_p8), 1, %s948_s12   ;;  %v1104_v32 = vld.sshfl [vmem:[%s1175_s0] sm:$0x11 pattern:$0x75316420] (!%p329_p8)  ;;  %v423_v33 = vlaneseq (!%p329_p8)  ;;  %s797_s6 = sshll.u32 (!%p329_p8), %s956_s14, 1 }
  0x26   : > { %332 = sbr.rel (%p329_p8) target bundleno = 327 (0x147), region = 66  ;;  %s796_s4 = sshll.u32 (!%p329_p8), %s335_s28, 8  ;;  %v966_v35 = vmov (!%p329_p8), 1966171168   ;;  %v441_v39 = vcombine.high (!%p329_p8), %v1104_v32, %v1104_v32 }
  0x27   : > { %v1106_v34 = vshrl.u32 (!%p329_p8), %v423_v33, 7  ;;  %v443_v36 = vunpack.c.l.s4 (!%p329_p8), %v966_v35  ;;  %s1108_s5 = scalar_lea.vmem (!%p329_p8), [#allocation2], %s796_s4  ;;  %p375_p9 = scmp.lt.s32.totalorder (!%p329_p8), %s797_s6, 3 }
  0x28   : > { %v878_v37 = vld [vmem:[%s1108_s5 + $0x4] ss:$8 sps:$4 sm:$0xff] (!%p329_p8)   ;;  %v880_v38 = vld [vmem:[%s1108_s5] ss:$8 sps:$4 sm:$0xff] (!%p329_p8)   ;;  %v881_v41 = vld [vmem:[%s1108_s5 + $0x14] ss:$8 sps:$4 sm:$0xff] (!%p329_p8)  }
  0x29   : > { %v444_v40 = vunpack.c.0.s8 (!%p329_p8), %v443_v36  ;;  %618 = vmatprep.subr.bf16.mxu0 (!%p329_p8), %v878_v37  ;;  %v883_v42 = vld [vmem:[%s1108_s5 + $0x10] ss:$8 sps:$4 sm:$0xff] (!%p329_p8)   ;;  %v884_v44 = vld [vmem:[%s1108_s5 + $0x24] ss:$8 sps:$4 sm:$0xff] (!%p329_p8)   ;;  %v886_v46 = vld [vmem:[%s1108_s5 + $0x20] ss:$8 sps:$4 sm:$0xff] (!%p329_p8)  }
  0x2a   : > { %619 = vmatpush1.bf16.msra.mxu0 (!%p329_p8), %v880_v38  ;;  %v887_v47 = vld [vmem:[%s1108_s5 + $0x34] ss:$8 sps:$4 sm:$0xff] (!%p329_p8)   ;;  %v889_v48 = vld [vmem:[%s1108_s5 + $0x30] ss:$8 sps:$4 sm:$0xff] (!%p329_p8)   ;;  %v890_v49 = vld [vmem:[%s1108_s5 + $0x44] ss:$8 sps:$4 sm:$0xff] (!%p329_p8)  }
  0x2b   : > { %v1117_v43 = vsub.s32 (!%p329_p8), %v444_v40, %v1106_v34  ;;  %620 = vmatprep.subr.bf16.mxu0 (!%p329_p8), %v881_v41  ;;  %v892_v50 = vld [vmem:[%s1108_s5 + $0x40] ss:$8 sps:$4 sm:$0xff] (!%p329_p8)   ;;  %v893_v51 = vld [vmem:[%s1108_s5 + $0x54] ss:$8 sps:$4 sm:$0xff] (!%p329_p8)   ;;  %v895_v52 = vld [vmem:[%s1108_s5 + $0x50] ss:$8 sps:$4 sm:$0xff] (!%p329_p8)  }
  0x2c   : > { %v896_v53 = vld [vmem:[%s1108_s5 + $0x64] ss:$8 sps:$4 sm:$0xff] (!%p329_p8)   ;;  %v898_v54 = vld [vmem:[%s1108_s5 + $0x60] ss:$8 sps:$4 sm:$0xff] (!%p329_p8)   ;;  %v899_v55 = vld [vmem:[%s1108_s5 + $0x74] ss:$8 sps:$4 sm:$0xff] (!%p329_p8)  }
  0x2d   : > { %v455_v45 = vrot.slane %v441_v39, %v1117_v43  ;;  %v901_v56 = vld [vmem:[%s1108_s5 + $0x70] ss:$8 sps:$4 sm:$0xff]   ;;  %v902_v57 = vld [vmem:[%s1108_s5 + $0x84] ss:$8 sps:$4 sm:$0xff]   ;;  %v904_v58 = vld [vmem:[%s1108_s5 + $0x80] ss:$8 sps:$4 sm:$0xff]   ;;  %v448_v9 = vrot.slane %v1104_v32, %v1117_v43 }
  0x2e   : > { %621 = vmatpush1.bf16.msra.mxu0 %v883_v42  ;;  %v905_v59 = vld [vmem:[%s1108_s5 + $0x94] ss:$8 sps:$4 sm:$0xff]   ;;  %v907_v60 = vld [vmem:[%s1108_s5 + $0x90] ss:$8 sps:$4 sm:$0xff]   ;;  %v908_v61 = vld [vmem:[%s1108_s5 + $0xa4] ss:$8 sps:$4 sm:$0xff]  }
  0x2f   : > { %650 = vmatprep.mubr.bf16.mxu0 %v455_v45  ;;  %622 = vmatprep.subr.bf16.mxu0 %v884_v44  ;;  %v910_v62 = vld [vmem:[%s1108_s5 + $0xa0] ss:$8 sps:$4 sm:$0xff]   ;;  %v911_v63 = vld [vmem:[%s1108_s5 + $0xb4] ss:$8 sps:$4 sm:$0xff]   ;;  %v913_v0 = vld [vmem:[%s1108_s5 + $0xb0] ss:$8 sps:$4 sm:$0xff]  }
  0x30   : > { %v914_v1 = vld [vmem:[%s1108_s5 + $0xc4] ss:$8 sps:$4 sm:$0xff]   ;;  %v916_v2 = vld [vmem:[%s1108_s5 + $0xc0] ss:$8 sps:$4 sm:$0xff]   ;;  %v917_v3 = vld [vmem:[%s1108_s5 + $0xd4] ss:$8 sps:$4 sm:$0xff]  }
  0x31   : > { %v919_v4 = vld [vmem:[%s1108_s5 + $0xd0] ss:$8 sps:$4 sm:$0xff]   ;;  %v920_v5 = vld [vmem:[%s1108_s5 + $0xe4] ss:$8 sps:$4 sm:$0xff]   ;;  %v922_v6 = vld [vmem:[%s1108_s5 + $0xe0] ss:$8 sps:$4 sm:$0xff]  }
  0x32   : > { %623 = vmatpush1.bf16.msra.mxu0 %v886_v46  ;;  %v923_v7 = vld [vmem:[%s1108_s5 + $0xf4] ss:$8 sps:$4 sm:$0xff]   ;;  %v925_v8 = vld [vmem:[%s1108_s5 + $0xf0] ss:$8 sps:$4 sm:$0xff]   ;;  %s1186_s6 = smov (!%p375_p9, %s797_s6), 3  ;;  %v425_v10 = vsub.s32 0, %v1106_v34 }
  0x33   : > { %624 = vmatprep.subr.bf16.mxu0 %v887_v47  ;;  %s377_s9 = scalar_lea.vmem %s1177_s2, %s1186_s6  ;;  %v429_v12 = vsub.s32 1, %v1106_v34  ;;  %s386_s12 = scalar_lea.vmem %s1178_s3, %s1186_s6 }
  0x34   : > { %v421_v11 = vld [vmem:[%s377_s9] sm:$0x3] }
  0x35   : > { %v426_v13 = vrot.slane %v421_v11, %v425_v10  ;;  %v430_v14 = vrot.slane %v421_v11, %v429_v12 }
  0x36   : > { %625 = vmatpush1.bf16.msra.mxu0 %v889_v48 }
  0x37   : > { %626 = vmatprep.subr.bf16.mxu0 %v890_v49 }
  0x3a   : > { %627 = vmatpush1.bf16.msra.mxu0 %v892_v50 }
  0x3b   : > { %628 = vmatprep.subr.bf16.mxu0 %v893_v51 }
  0x3e   : > { %629 = vmatpush1.bf16.msra.mxu0 %v895_v52 }
  0x3f   : > { %630 = vmatprep.subr.bf16.mxu0 %v896_v53 }
  0x42   : > { %631 = vmatpush1.bf16.msra.mxu0 %v898_v54 }
  0x43   : > { %632 = vmatprep.subr.bf16.mxu0 %v899_v55 }
  0x46   : > { %633 = vmatpush1.bf16.msra.mxu0 %v901_v56 }
  0x47   : > { %634 = vmatprep.subr.bf16.mxu0 %v902_v57 }
  0x4a   : > { %635 = vmatpush1.bf16.msra.mxu0 %v904_v58 }
  0x4b   : > { %636 = vmatprep.subr.bf16.mxu0 %v905_v59 }
  0x4e   : > { %637 = vmatpush1.bf16.msra.mxu0 %v907_v60 }
  0x4f   : > { %638 = vmatprep.subr.bf16.mxu0 %v908_v61 }
  0x52   : > { %639 = vmatpush1.bf16.msra.mxu0 %v910_v62 }
  0x53   : > { %640 = vmatprep.subr.bf16.mxu0 %v911_v63 }
  0x56   : > { %641 = vmatpush1.bf16.msra.mxu0 %v913_v0 }
  0x57   : > { %642 = vmatprep.subr.bf16.mxu0 %v914_v1 }
  0x5a   : > { %643 = vmatpush1.bf16.msra.mxu0 %v916_v2 }
  0x5b   : > { %644 = vmatprep.subr.bf16.mxu0 %v917_v3 }
  0x5e   : > { %645 = vmatpush1.bf16.msra.mxu0 %v919_v4 }
  0x5f   : > { %646 = vmatprep.subr.bf16.mxu0 %v920_v5 }
  0x62   : > { %647 = vmatpush1.bf16.msra.mxu0 %v922_v6 }
  0x63   : > { %648 = vmatprep.subr.bf16.mxu0 %v923_v7 }
  0x66   : > { %649 = vmatpush1.bf16.msra.mxu0 %v925_v8 }
  0x69   : > { %651 = vmatmul.mubr.bf16.vlgmr.msra.gmra.mrb[0].mxu0 %v448_v9 }
 0x13c   : > { %v652_v15 = vpop.f32.mrb[0].mxu0 }
 0x13d   : > { %v653_v16 = vadd.f32 %v652_v15, %v426_v13  ;;  %v654_v17 = vpop.f32.mrb[1].mxu0 }
 0x13e   : > { %v655_v18 = vadd.f32 %v654_v17, %v430_v14  ;;  %v656_v19 = vpop.f32.mrb[2].mxu0 }
 0x13f   : > { %v659_v20 = vmax.f32 %v653_v16, 0.0  ;;  %v657_v21 = vpop.f32.mrb[3].mxu0 }
 0x140   : > { %v660_v22 = vmax.f32 %v655_v18, 0.0 }
 0x142   : > { %v832_v23 = vpack.c.bf16 %v660_v22, %v659_v20 }
 0x144   : > { %v672_v24 = vrot.slane %v832_v23, %v1117_v43 }
 0x146   : > { %833 = vst.sshfl [vmem:[%s386_s12] sm:$0x5 pattern:$0x73625140] %v672_v24 }
 0x147 PF: > { %s13_s16 = sadd.s32 1, %s964_s16   ;;  %s1179_s12 = smov %s952_s13 }
 0x148   : > { %p10_p10 = scmp.ge.s32.totalorder %s13_s16, 4   ;;  %s1180_s13 = smov %s1022_s20 }
 0x149   : > { %s1181_s14 = smov %s960_s15  ;;  %s1182_s15 = smov %s1184_s17 }
 0x14a   :  { %12 = sbr.rel (!%p10_p10) target bundleno = 3 (0x3), region = 111 }

// kernel: cnn_forward.9
= control target key start
LH: loop header
LB: loop body
LE: loop exit
PB: predicated region body
PF: predicated region fallthrough
CT: control target
= control target key end

     0   :  { %v100_v30 = vlaneseq  ;;  %v540_v34 = vmov 1966171168   ;;  %s676_s0 = inlined_call_operand.vmem [shape: bf16[2,512], index: 0, kind: input, shape index: {}]   ;;  %s677_s1 = inlined_call_operand.vmem [shape: bf16[512,128], index: 1, kind: input, shape index: {}]   ;;  %s678_s2 = inlined_call_operand.vmem [shape: f32[1,128], index: 2, kind: input, shape index: {}]   ;;  %s679_s3 = inlined_call_operand.hbm [shape: f32[2,128], index: 3, kind: output, shape index: {}]  }
   0x1   :  { %v484_v0 = vld [vmem:[%s677_s1 + $0x40] sm:$0xff]   ;;  %v488_v4 = vld [vmem:[%s677_s1 + $0x48] sm:$0xff]   ;;  %v492_v8 = vld [vmem:[%s677_s1 + $0x50] sm:$0xff]   ;;  %v98_v35 = vunpack.c.l.s4 %v540_v34 }
   0x2   :  { %v485_v1 = vld [vmem:[%s677_s1 + $0xc0] sm:$0xff]   ;;  %438 = vmatprep.subr.bf16.mxu0 %v484_v0  ;;  %v489_v5 = vld [vmem:[%s677_s1 + $0xc8] sm:$0xff]   ;;  %v493_v9 = vld [vmem:[%s677_s1 + $0xd0] sm:$0xff]   ;;  %v101_v36 = vshrl.u32 %v100_v30, 7 }
   0x3   :  { %v486_v2 = vld [vmem:[%s677_s1] sm:$0xff]   ;;  %460 = vmatprep.subr.bf16.mxu1 %v485_v1  ;;  %v490_v6 = vld [vmem:[%s677_s1 + $0x8] sm:$0xff]   ;;  %v494_v10 = vld [vmem:[%s677_s1 + $0x10] sm:$0xff]  }
   0x4   :  { %v487_v3 = vld [vmem:[%s677_s1 + $0x80] sm:$0xff]   ;;  %439 = vmatpush3.bf16.msra.mxu0 %v486_v2  ;;  %v491_v7 = vld [vmem:[%s677_s1 + $0x88] sm:$0xff]   ;;  %v495_v11 = vld [vmem:[%s677_s1 + $0x90] sm:$0xff]  }
   0x5   :  { %461 = vmatpush3.bf16.msra.mxu1 %v487_v3  ;;  %440 = vmatprep.subr.bf16.mxu0 %v488_v4  ;;  %v496_v12 = vld [vmem:[%s677_s1 + $0x58] sm:$0xff]   ;;  %v500_v16 = vld [vmem:[%s677_s1 + $0x60] sm:$0xff]   ;;  %v504_v20 = vld [vmem:[%s677_s1 + $0x68] sm:$0xff]  }
   0x6   :  { %462 = vmatprep.subr.bf16.mxu1 %v489_v5  ;;  %v497_v13 = vld [vmem:[%s677_s1 + $0xd8] sm:$0xff]   ;;  %v501_v17 = vld [vmem:[%s677_s1 + $0xe0] sm:$0xff]   ;;  %v505_v21 = vld [vmem:[%s677_s1 + $0xe8] sm:$0xff]  }
   0x7   :  { %v498_v14 = vld [vmem:[%s677_s1 + $0x18] sm:$0xff]   ;;  %v502_v18 = vld [vmem:[%s677_s1 + $0x20] sm:$0xff]   ;;  %v506_v22 = vld [vmem:[%s677_s1 + $0x28] sm:$0xff]  }
   0x8   :  { %441 = vmatpush3.bf16.msra.mxu0 %v490_v6  ;;  %v499_v15 = vld [vmem:[%s677_s1 + $0x98] sm:$0xff]   ;;  %v503_v19 = vld [vmem:[%s677_s1 + $0xa0] sm:$0xff]   ;;  %v507_v23 = vld [vmem:[%s677_s1 + $0xa8] sm:$0xff]  }
   0x9   :  { %463 = vmatpush3.bf16.msra.mxu1 %v491_v7  ;;  %442 = vmatprep.subr.bf16.mxu0 %v492_v8  ;;  %v508_v24 = vld [vmem:[%s677_s1 + $0x70] sm:$0xff]   ;;  %v512_v28 = vld [vmem:[%s677_s1 + $0x78] sm:$0xff]   ;;  %v405_v33 = vld.sshfl [vmem:[%s676_s0] sm:$0x33 pattern:$0x75316420] }
   0xa   :  { %464 = vmatprep.subr.bf16.mxu1 %v493_v9  ;;  %v509_v25 = vld [vmem:[%s677_s1 + $0xf0] sm:$0xff]   ;;  %v513_v29 = vld [vmem:[%s677_s1 + $0xf8] sm:$0xff]  }
   0xb   :  { %v510_v26 = vld [vmem:[%s677_s1 + $0x30] sm:$0xff]   ;;  %v514_v31 = vld [vmem:[%s677_s1 + $0x38] sm:$0xff]  }
   0xc   :  { %443 = vmatpush3.bf16.msra.mxu0 %v494_v10  ;;  %v511_v27 = vld [vmem:[%s677_s1 + $0xb0] sm:$0xff]   ;;  %v515_v32 = vld [vmem:[%s677_s1 + $0xb8] sm:$0xff]  }
   0xd   :  { %465 = vmatpush3.bf16.msra.mxu1 %v495_v11  ;;  %444 = vmatprep.subr.bf16.mxu0 %v496_v12 }
   0xe   :  { %466 = vmatprep.subr.bf16.mxu1 %v497_v13 }
  0x10   :  { %445 = vmatpush3.bf16.msra.mxu0 %v498_v14 }
  0x11   :  { %467 = vmatpush3.bf16.msra.mxu1 %v499_v15  ;;  %446 = vmatprep.subr.bf16.mxu0 %v500_v16 }
  0x12   :  { %468 = vmatprep.subr.bf16.mxu1 %v501_v17 }
  0x14   :  { %447 = vmatpush3.bf16.msra.mxu0 %v502_v18 }
  0x15   :  { %469 = vmatpush3.bf16.msra.mxu1 %v503_v19  ;;  %448 = vmatprep.subr.bf16.mxu0 %v504_v20 }
  0x16   :  { %470 = vmatprep.subr.bf16.mxu1 %v505_v21 }
  0x18   :  { %449 = vmatpush3.bf16.msra.mxu0 %v506_v22 }
  0x19   :  { %471 = vmatpush3.bf16.msra.mxu1 %v507_v23  ;;  %450 = vmatprep.subr.bf16.mxu0 %v508_v24 }
  0x1a   :  { %472 = vmatprep.subr.bf16.mxu1 %v509_v25 }
  0x1c   :  { %451 = vmatpush3.bf16.msra.mxu0 %v510_v26 }
  0x1d   :  { %473 = vmatpush3.bf16.msra.mxu1 %v511_v27  ;;  %452 = vmatprep.subr.bf16.mxu0 %v512_v28 }
  0x1e   :  { %474 = vmatprep.subr.bf16.mxu1 %v513_v29 }
  0x20   :  { %453 = vmatpush3.bf16.msra.mxu0 %v514_v31 }
  0x21   :  { %475 = vmatpush3.bf16.msra.mxu1 %v515_v32 }
  0x22   :  { %8 = vsyncpa [#allocation3], 0  ;;  %v96_v37 = vcombine.high %v405_v33, %v405_v33  ;;  %v99_v38 = vunpack.c.0.s8 %v98_v35  ;;  %v404_v45 = vld [vmem:[%s678_s2] ss:$0 sm:$0xff]  ;;  %s541_s0 = smov [#allocation2]  }
  0x23   :  { %s396_s25 = sshll.u32 %s541_s0, 4  ;;  %s397_s25 = int_to_ptr.vmem [resolvable:$true] %s396_s25 }
  0x24   :  { %v102_v39 = vsub.s32 %v99_v38, %v101_v36  ;;  %s516_s26 = scalar_lea.vmem %s397_s25, 32  ;;  %p521_p1 = scmp.lt.s32.totalorder %s397_s25, %s397_s25 }
  0x25   :  { %p517_p0 = scmp.ne.s32.totalorder %s397_s25, %s516_s26  ;;  %p522_p2 = scmp.lt.s32.totalorder %s516_s26, %s516_s26 }
  0x26   :  { %v110_v40 = vrot.slane %v96_v37, %v102_v39  ;;  %v103_v41 = vrot.slane %v405_v33, %v102_v39 }
  0x27   :  { %p523_p3 = por %p522_p2, %p521_p1 }
  0x28   :  { %341 = vmatprep.mubr.bf16.mxu0 %v110_v40  ;;  %v112_v42 = vcombine.high %v110_v40, %v110_v40  ;;  %v111_v43 = vcombine.high %v103_v41, %v103_v41 }
  0x29   :  { %342 = vmatmul.mubr.bf16.vlgmr.msra.gmra.mrb[0].mxu0 %v103_v41  ;;  %p524_p4 = pnand %p523_p3, %p517_p0 }
  0x2a   :  { %381 = vmatprep.mubr.bf16.mxu1 %v112_v42 }
  0x2b   :  { %382 = vmatmul.mubr.bf16.vlgmr.msra.gmra.mrb[0].mxu1 %v111_v43 }
  0xfc   :  { %v454_v44 = vpop.f32.mrb[0].mxu0 }
  0xfd   :  { %v455_v46 = vpop.f32.mrb[1].mxu0 }
  0xfe   :  { %v476_v47 = vpop.f32.mrb[0].mxu1  ;;  %v456_v48 = vadd.f32 %v455_v46, %v454_v44  ;;  %v457_v49 = vpop.f32.mrb[2].mxu0 }
  0xff   :  { %v477_v50 = vpop.f32.mrb[1].mxu1  ;;  %v458_v51 = vpop.f32.mrb[3].mxu0 }
 0x100   :  { %v344_v52 = vadd.f32 %v456_v48, %v404_v45  ;;  %v478_v53 = vadd.f32 %v477_v50, %v476_v47  ;;  %v479_v54 = vpop.f32.mrb[2].mxu1 }
 0x101   :  { %v480_v55 = vpop.f32.mrb[3].mxu1 }
 0x102   :  { %v384_v56 = vadd.f32 %v478_v53, %v344_v52 }
 0x104   :  { %389 = vst [vmem:[#allocation2] sm:$0x3] %v384_v56 }
 0x105   :  { %527 = shalt.err (!%p524_p4)
}
 0x106   :  { %s528_s28 = scalar_lea.hbm %s679_s3, 32 }
 0x107   :  { %p529_p5 = scmp.ne.s32.totalorder %s679_s3, %s528_s28  ;;  %p532_p6 = scmp.lt.u32.totalorder %s528_s28, %s679_s3 }
 0x109   :  { %p534_p7 = pnand %p532_p6, %p529_p5 }
 0x10b   :  { %537 = shalt.err (!%p534_p7)
}
 0x10c   :  { %399 = dma.vmem_to_hbm [thread:$0]  %s397_s25, 32, %s679_s3, [#allocation3]  }
 0x10d   :  { %538 = dma.done.wait [#allocation3], 32  }
 0x10e   :  { %539 = vsyncadd [#allocation3], 4294967264 }
 0x10f   :  { %403 = vsyncpa [#allocation3], 1 }

</bundles_post_ra>
